<compile_context>
chip_gen: v7x
topology: tpu7x:2x2x1
jax: 0.10.0
libtpu: 0.0.40
codegen_flags: <defaults>
</compile_context>

<pallas_src>
import numpy as np
import jax
import jax.numpy as jnp
from jax import lax
from jax.experimental import pallas as pl
from jax.experimental.pallas import tpu as pltpu

D_IN = 64            # xfeat descriptor input dim
D_MODEL = 96         # LightGlue descriptor dim (num_heads = 1 -> head_dim = 96)
DP = 128             # lane-padded model width
H_FFN = 2 * D_MODEL  # 192, true FFN hidden width (LayerNorm reduces over these)
HP = 256             # lane-padded FFN hidden width
N_LAYERS = 6
FILTER_THRESHOLD = 0.1
LN_EPS = 1e-5
ATTN_SCALE = 1.0 / (D_MODEL ** 0.5)   # scale uses the true head dim (96), not the padding
# TODO(synk): make VMEM limit generation-aware (raise toward ~100 MiB on v5e/v6e,
# cap <= ~56 MiB on v7x); 48 MiB is above every scoped default and below every
# physical limit, and more than enough at these shapes.
VMEM_LIMIT_BYTES = 48 * 1024 * 1024


# --------------------------- in-kernel helpers ------------------------------

def _erf_approx(x):
    # Abramowitz & Stegun 7.1.26 (|abs err| < 1.5e-7); avoids relying on a
    # lax.erf lowering inside Mosaic while keeping torch's exact-erf GELU semantics.
    a1, a2, a3, a4, a5 = 0.254829592, -0.284496736, 1.421413741, -1.453152027, 1.061405429
    p = 0.3275911
    sign = jnp.where(x >= 0.0, 1.0, -1.0)
    ax = jnp.abs(x)
    t = 1.0 / (1.0 + p * ax)
    poly = ((((a5 * t + a4) * t + a3) * t + a2) * t + a1) * t
    return sign * (1.0 - poly * jnp.exp(-ax * ax))


def _gelu_exact(x):
    return 0.5 * x * (1.0 + _erf_approx(x * (1.0 / np.sqrt(2.0))))


def _softmax_rows(s):
    s = s - jnp.max(s, axis=-1, keepdims=True)
    e = jnp.exp(s)
    return e * pl.reciprocal(jnp.sum(e, axis=-1, keepdims=True), approx=True)


def _ffn_residual(x, msg, ffn, hmask):
    # Out-projection is pre-folded into (w1m, b1):  msg branch consumes the raw
    # attention context directly.  Hidden width is lane-padded to HP=256; padded
    # hidden lanes of `h` are exactly zero (zero-padded weight columns / biases),
    # so mean uses 1/H_FFN and variance uses the 0/1 mask.
    w1x, w1m, b1, g, beta, w2, b2 = ffn
    h = (jnp.dot(x.astype(jnp.bfloat16), w1x, preferred_element_type=jnp.float32)
         + jnp.dot(msg.astype(jnp.bfloat16), w1m, preferred_element_type=jnp.float32)
         + b1)
    mu = jnp.sum(h, axis=-1, keepdims=True) * (1.0 / H_FFN)
    hc = (h - mu) * hmask
    var = jnp.sum(hc * hc, axis=-1, keepdims=True) * (1.0 / H_FFN)
    hn = hc * lax.rsqrt(var + LN_EPS) * g + beta        # g/beta zero on padded lanes
    hn = _gelu_exact(hn)
    return x + (jnp.dot(hn.astype(jnp.bfloat16), w2, preferred_element_type=jnp.float32)
                + b2)


def _self_update(x, cos, sin, wqkv, bqkv, ffn, hmask):
    # wqkv columns: [ q | k | v | q@rot | k@rot ]  (rotate_half folded at prep time)
    qkv = jnp.dot(x.astype(jnp.bfloat16), wqkv, preferred_element_type=jnp.float32) + bqkv
    q = qkv[:, 0 * DP:1 * DP] * cos + qkv[:, 3 * DP:4 * DP] * sin
    k = qkv[:, 1 * DP:2 * DP] * cos + qkv[:, 4 * DP:5 * DP] * sin
    v = qkv[:, 2 * DP:3 * DP]
    # TODO(synk): flash-style query-row tiling (online softmax) for production
    # keypoint counts (N ~ 2-4k) so the (N, N) score matrix never materializes.
    s = lax.dot_general(q.astype(jnp.bfloat16), k.astype(jnp.bfloat16),
                        (((1,), (1,)), ((), ())),
                        preferred_element_type=jnp.float32) * ATTN_SCALE
    p = _softmax_rows(s)
    ctx = jnp.dot(p.astype(jnp.bfloat16), v.astype(jnp.bfloat16),
                  preferred_element_type=jnp.float32)
    return _ffn_residual(x, ctx, ffn, hmask)


def _cross_update(x0, x1, wqk, bqk, wv, bv, ffn, hmask):
    x0b = x0.astype(jnp.bfloat16)
    x1b = x1.astype(jnp.bfloat16)
    qk0 = (jnp.dot(x0b, wqk, preferred_element_type=jnp.float32) + bqk).astype(jnp.bfloat16)
    qk1 = (jnp.dot(x1b, wqk, preferred_element_type=jnp.float32) + bqk).astype(jnp.bfloat16)
    v0 = (jnp.dot(x0b, wv, preferred_element_type=jnp.float32) + bv).astype(jnp.bfloat16)
    v1 = (jnp.dot(x1b, wv, preferred_element_type=jnp.float32) + bv).astype(jnp.bfloat16)
    # Directions processed sequentially so only one (N0,N1) f32 score matrix needs to
    # be live at a time; both orientations are A @ B^T on the MXU (no XLU transpose).
    # TODO(synk): derive the 1->0 message from the column-softmax of s01 (contract
    # axis 0) once the transposed-lhs dot_general lowering is verified on-target.
    s01 = lax.dot_general(qk0, qk1, (((1,), (1,)), ((), ())),
                          preferred_element_type=jnp.float32) * ATTN_SCALE
    m0 = jnp.dot(_softmax_rows(s01).astype(jnp.bfloat16), v1,
                 preferred_element_type=jnp.float32)
    y0 = _ffn_residual(x0, m0, ffn, hmask)
    s10 = lax.dot_general(qk1, qk0, (((1,), (1,)), ((), ())),
                          preferred_element_type=jnp.float32) * ATTN_SCALE
    m1 = jnp.dot(_softmax_rows(s10).astype(jnp.bfloat16), v0,
                 preferred_element_type=jnp.float32)
    y1 = _ffn_residual(x1, m1, ffn, hmask)
    return y0, y1


# ------------------------------ Pallas kernels ------------------------------

def _layers_kernel(desc0_ref, desc1_ref, cos0_ref, sin0_ref, cos1_ref, sin1_ref,
                   inw_ref, inb_ref,
                   s_wqkv_ref, s_bqkv_ref, s_w1x_ref, s_w1m_ref, s_b1_ref,
                   s_g_ref, s_beta_ref, s_w2_ref, s_b2_ref,
                   c_wqk_ref, c_bqk_ref, c_wv_ref, c_bv_ref, c_w1x_ref, c_w1m_ref,
                   c_b1_ref, c_g_ref, c_beta_ref, c_w2_ref, c_b2_ref,
                   o0_ref, o1_ref):
    layer = pl.program_id(1)

    # Layer 0: project the raw 64-d descriptors into the (lane-padded) model width.
    # The outputs double as VMEM-resident activation accumulators across the layer axis.
    @pl.when(layer == 0)
    def _():
        inw = inw_ref[...]
        inb = inb_ref[...]
        o0_ref[...] = (jnp.dot(desc0_ref[...].astype(jnp.bfloat16), inw,
                               preferred_element_type=jnp.float32) + inb)
        o1_ref[...] = (jnp.dot(desc1_ref[...].astype(jnp.bfloat16), inw,
                               preferred_element_type=jnp.float32) + inb)

    hmask = (lax.broadcasted_iota(jnp.int32, (1, HP), 1) < H_FFN).astype(jnp.float32)

    x0 = o0_ref[...]
    x1 = o1_ref[...]
    cos0 = cos0_ref[...]
    sin0 = sin0_ref[...]
    cos1 = cos1_ref[...]
    sin1 = sin1_ref[...]

    s_ffn = (s_w1x_ref[...], s_w1m_ref[...], s_b1_ref[...], s_g_ref[...],
             s_beta_ref[...], s_w2_ref[...], s_b2_ref[...])
    x0 = _self_update(x0, cos0, sin0, s_wqkv_ref[...], s_bqkv_ref[...], s_ffn, hmask)
    x1 = _self_update(x1, cos1, sin1, s_wqkv_ref[...], s_bqkv_ref[...], s_ffn, hmask)

    c_ffn = (c_w1x_ref[...], c_w1m_ref[...], c_b1_ref[...], c_g_ref[...],
             c_beta_ref[...], c_w2_ref[...], c_b2_ref[...])
    x0, x1 = _cross_update(x0, x1, c_wqk_ref[...], c_bqk_ref[...],
                           c_wv_ref[...], c_bv_ref[...], c_ffn, hmask)

    o0_ref[...] = x0
    o1_ref[...] = x1


def _assignment_kernel(d0_ref, d1_ref, lsz0_ref, lsz1_ref, wf_ref, bf_ref, o_ref):
    wf = wf_ref[...]                               # final_proj with d**-0.25 folded in
    bf = bf_ref[...]
    md0 = (jnp.dot(d0_ref[...].astype(jnp.bfloat16), wf,
                   preferred_element_type=jnp.float32) + bf).astype(jnp.bfloat16)
    md1 = (jnp.dot(d1_ref[...].astype(jnp.bfloat16), wf,
                   preferred_element_type=jnp.float32) + bf).astype(jnp.bfloat16)
    sim = lax.dot_general(md0, md1, (((1,), (1,)), ((), ())),
                          preferred_element_type=jnp.float32)        # (M, N)
    # Log double-softmax without transposing sim: rows (lane) + columns (sublane).
    # Two exp passes kept on purpose -- the shared-exp rescale can over/underflow
    # for wide score ranges (see review note).
    r = sim - jnp.max(sim, axis=-1, keepdims=True)
    ls0 = r - jnp.log(jnp.sum(jnp.exp(r), axis=-1, keepdims=True))
    c = sim - jnp.max(sim, axis=0, keepdims=True)
    ls1 = c - jnp.log(jnp.sum(jnp.exp(c), axis=0, keepdims=True))
    # Lane-dense (M, N) store only; dust bins are assembled outside the kernel.
    o_ref[...] = ls0 + ls1 + lsz0_ref[...] + lsz1_ref[...]


# ----------------------------- kernel wrappers ------------------------------

def transformer_stack(desc0, desc1, cos0, sin0, cos1, sin1, prepped):
    """Input projection + all n_layers (self, self, cross) blocks in one pallas_call."""
    bsz, n0 = desc0.shape[:2]
    n1 = desc1.shape[1]
    sp, cp = prepped['self'], prepped['cross']
    n_layers = sp['wqkv'].shape[0]

    def act_spec(n, d):
        return pl.BlockSpec((None, n, d), lambda b, l: (b, 0, 0))

    def layer_spec(a):          # per-layer weight slab, selected by the layer axis
        return pl.BlockSpec((None,) + a.shape[1:], lambda b, l: (l, 0, 0))

    def const_spec(a):          # grid-invariant weight
        return pl.BlockSpec(a.shape, lambda b, l: (0,) * a.ndim)

    self_keys = ('wqkv', 'bqkv', 'w1x', 'w1m', 'b1', 'ln_g', 'ln_b', 'w2', 'b2')
    cross_keys = ('wqk', 'bqk', 'wv', 'bv', 'w1x', 'w1m', 'b1', 'ln_g', 'ln_b', 'w2', 'b2')
    layer_args = [sp[k] for k in self_keys] + [cp[k] for k in cross_keys]

    args = (desc0, desc1, cos0, sin0, cos1, sin1,
            prepped['in_w'], prepped['in_b'], *layer_args)
    in_specs = ([act_spec(n0, D_IN), act_spec(n1, D_IN),
                 act_spec(n0, DP), act_spec(n0, DP),
                 act_spec(n1, DP), act_spec(n1, DP),
                 const_spec(prepped['in_w']), const_spec(prepped['in_b'])]
                + [layer_spec(a) for a in layer_args])

    return pl.pallas_call(
        _layers_kernel,
        out_shape=(jax.ShapeDtypeStruct((bsz, n0, DP), jnp.float32),
                   jax.ShapeDtypeStruct((bsz, n1, DP), jnp.float32)),
        grid=(bsz, n_layers),
        in_specs=in_specs,
        out_specs=(act_spec(n0, DP), act_spec(n1, DP)),
        compiler_params=pltpu.CompilerParams(
            dimension_semantics=("parallel", "arbitrary"),
            vmem_limit_bytes=VMEM_LIMIT_BYTES),
    )(*args)


def log_assignment_inner(d0, d1, lsz0, lsz1, wf, bf):
    bsz, m, dp = d0.shape
    n = d1.shape[1]

    def const_spec(a):
        return pl.BlockSpec(a.shape, lambda b: (0,) * a.ndim)

    in_specs = [pl.BlockSpec((None, m, dp), lambda b: (b, 0, 0)),
                pl.BlockSpec((None, n, dp), lambda b: (b, 0, 0)),
                pl.BlockSpec((None, m, 1), lambda b: (b, 0, 0)),
                pl.BlockSpec((None, 1, n), lambda b: (b, 0, 0)),
                const_spec(wf), const_spec(bf)]
    return pl.pallas_call(
        _assignment_kernel,
        out_shape=jax.ShapeDtypeStruct((bsz, m, n), jnp.float32),
        grid=(bsz,),
        in_specs=in_specs,
        out_specs=pl.BlockSpec((None, m, n), lambda b: (b, 0, 0)),
        compiler_params=pltpu.CompilerParams(
            dimension_semantics=("parallel",),
            vmem_limit_bytes=VMEM_LIMIT_BYTES),
    )(d0, d1, lsz0, lsz1, wf, bf)


# --------------------------- parameters (torch layout) ----------------------

def _init_linear(key, din, dout):
    kw, kb = jax.random.split(key)
    w = jax.random.normal(kw, (din, dout), jnp.float32) * (1.0 / jnp.sqrt(din))
    b = jax.random.normal(kb, (dout,), jnp.float32) * 0.01
    return {'w': w, 'b': b}


def init_params(key, n_layers=N_LAYERS, d_in=D_IN, d=D_MODEL):
    keys = iter(jax.random.split(key, 8 + 16 * n_layers))
    params = {
        'input_proj': _init_linear(next(keys), d_in, d),
        'posenc_wr': jax.random.normal(next(keys), (2, d // 2), jnp.float32),
        'final_proj': _init_linear(next(keys), d, d),
        'matchability': _init_linear(next(keys), d, 1),
        'layers': [],
    }
    for _ in range(n_layers):
        params['layers'].append({
            'self': {
                'Wqkv': _init_linear(next(keys), d, 3 * d),
                'out_proj': _init_linear(next(keys), d, d),
                'ffn1': _init_linear(next(keys), 2 * d, 2 * d),
                'ln_g': jnp.ones((2 * d,), jnp.float32),
                'ln_b': jnp.zeros((2 * d,), jnp.float32),
                'ffn2': _init_linear(next(keys), 2 * d, d),
            },
            'cross': {
                'to_qk': _init_linear(next(keys), d, d),
                'to_v': _init_linear(next(keys), d, d),
                'to_out': _init_linear(next(keys), d, d),
                'ffn1': _init_linear(next(keys), 2 * d, 2 * d),
                'ln_g': jnp.ones((2 * d,), jnp.float32),
                'ln_b': jnp.zeros((2 * d,), jnp.float32),
                'ffn2': _init_linear(next(keys), 2 * d, d),
            },
        })
    return params


# --------------------- parameter prep (fold / pad / split / cast) -----------

def _rotate_half_matrix(d, dp):
    # (t @ R) == rotate_half(t): out[2k] = -t[2k+1], out[2k+1] = t[2k]; zero on padding.
    r = np.zeros((dp, dp), np.float32)
    idx = np.arange(0, d, 2)
    r[idx + 1, idx] = -1.0
    r[idx, idx + 1] = 1.0
    return jnp.asarray(r)


def prepare_params(params):
    d, dp, h, hp = D_MODEL, DP, H_FFN, HP
    f32 = jnp.float32
    rot = _rotate_half_matrix(d, dp)

    def pad2(w, rows, cols):
        return jnp.pad(w, ((0, rows - w.shape[0]), (0, cols - w.shape[1])))

    def pad1(b, n):
        return jnp.pad(b, (0, n - b.shape[0]))

    def wcast(w):
        return w.astype(jnp.bfloat16)

    out = {
        'posenc_wr': params['posenc_wr'],
        'in_w': wcast(pad2(params['input_proj']['w'], D_IN, dp)),
        'in_b': pad1(params['input_proj']['b'], dp).reshape(1, dp).astype(f32),
    }
    s = float(d) ** -0.25                       # fold d**-0.25 scaling into final_proj
    out['fin_w'] = wcast(pad2(params['final_proj']['w'] * s, dp, dp))
    out['fin_b'] = pad1(params['final_proj']['b'] * s, dp).reshape(1, dp).astype(f32)
    out['match_w'] = jnp.pad(params['matchability']['w'], ((0, dp - d), (0, 0))).astype(f32)
    out['match_b'] = params['matchability']['b'].reshape(()).astype(f32)

    def ffn_prep(p, wo, bo):
        # Fold the attention out-projection into the FFN's message branch:
        #   (ctx @ wo + bo) @ w1m  ==  ctx @ (wo @ w1m) + bo @ w1m
        w1 = p['ffn1']['w']                     # (2d, 2d): rows [:d] hit x, rows [d:] hit msg
        w1x = pad2(w1[:d, :], dp, hp)
        w1m_raw = pad2(w1[d:, :], dp, hp)
        wo_p = pad2(wo, dp, dp)
        bo_p = pad1(bo, dp)
        return {
            'w1x': wcast(w1x),
            'w1m': wcast(wo_p @ w1m_raw),
            'b1': (pad1(p['ffn1']['b'], hp) + bo_p @ w1m_raw).reshape(1, hp).astype(f32),
            'ln_g': pad1(p['ln_g'], hp).reshape(1, hp).astype(f32),
            'ln_b': pad1(p['ln_b'], hp).reshape(1, hp).astype(f32),
            'w2': wcast(pad2(p['ffn2']['w'], hp, dp)),
            'b2': pad1(p['ffn2']['b'], dp).reshape(1, dp).astype(f32),
        }

    self_layers, cross_layers = [], []
    for lp in params['layers']:
        sp, cp = lp['self'], lp['cross']
        # De-interleave torch's Wqkv column layout (col = d_idx*3 + {0:q, 1:k, 2:v}).
        wqkv, bqkv = sp['Wqkv']['w'], sp['Wqkv']['b']
        wq, wk, wv = wqkv[:, 0::3], wqkv[:, 1::3], wqkv[:, 2::3]
        bq, bk, bv = bqkv[0::3], bqkv[1::3], bqkv[2::3]
        wq_p, wk_p, wv_p = pad2(wq, dp, dp), pad2(wk, dp, dp), pad2(wv, dp, dp)
        bq_p, bk_p, bv_p = pad1(bq, dp), pad1(bk, dp), pad1(bv, dp)
        # Fold rotate_half into the projection: [ q | k | v | q@rot | k@rot ] columns.
        self_p = {
            'wqkv': wcast(jnp.concatenate(
                [wq_p, wk_p, wv_p, wq_p @ rot, wk_p @ rot], axis=1)),
            'bqkv': jnp.concatenate(
                [bq_p, bk_p, bv_p, bq_p @ rot, bk_p @ rot]).reshape(1, 5 * dp).astype(f32),
        }
        self_p.update(ffn_prep(sp, sp['out_proj']['w'], sp['out_proj']['b']))
        cross_p = {
            'wqk': wcast(pad2(cp['to_qk']['w'], dp, dp)),
            'bqk': pad1(cp['to_qk']['b'], dp).reshape(1, dp).astype(f32),
            'wv': wcast(pad2(cp['to_v']['w'], dp, dp)),
            'bv': pad1(cp['to_v']['b'], dp).reshape(1, dp).astype(f32),
        }
        cross_p.update(ffn_prep(cp, cp['to_out']['w'], cp['to_out']['b']))
        self_layers.append(self_p)
        cross_layers.append(cross_p)

    # Stack per-layer weights along a leading layer axis (selected by the grid index_map).
    out['self'] = {k: jnp.stack([l[k] for l in self_layers]) for k in self_layers[0]}
    out['cross'] = {k: jnp.stack([l[k] for l in cross_layers]) for k in cross_layers[0]}
    return out


# ------------------------------- glue (JAX) ---------------------------------

def rotary_encoding(kpts, wr):
    # TODO(synk): pixel-coord keypoint normalization against image size is assumed
    # to have been done by the caller (inputs already in [-1, 1]).
    proj = kpts @ wr                                      # (B, N, D/2)
    cos = jnp.repeat(jnp.cos(proj), 2, axis=-1)           # repeat_interleave -> (B, N, D)
    sin = jnp.repeat(jnp.sin(proj), 2, axis=-1)
    pad = DP - cos.shape[-1]
    cos = jnp.pad(cos, ((0, 0), (0, 0), (0, pad)))
    sin = jnp.pad(sin, ((0, 0), (0, 0), (0, pad)))
    return cos, sin


def _filter_matches(scores, th):
    inner = scores[:, :-1, :-1]
    max0_v = jnp.max(inner, axis=2)
    m0 = jnp.argmax(inner, axis=2).astype(jnp.int32)
    m1 = jnp.argmax(inner, axis=1).astype(jnp.int32)
    ind0 = jnp.arange(m0.shape[1], dtype=jnp.int32)[None, :]
    ind1 = jnp.arange(m1.shape[1], dtype=jnp.int32)[None, :]
    mutual0 = ind0 == jnp.take_along_axis(m1, m0, axis=1)
    mutual1 = ind1 == jnp.take_along_axis(m0, m1, axis=1)
    max0_exp = jnp.exp(max0_v)
    mscores0 = jnp.where(mutual0, max0_exp, 0.0)
    mscores1 = jnp.where(mutual1, jnp.take_along_axis(mscores0, m1, axis=1), 0.0)
    valid0 = mutual0 & (mscores0 > th)
    valid1 = mutual1 & jnp.take_along_axis(valid0, m1, axis=1)
    m0 = jnp.where(valid0, m0, -1)
    m1 = jnp.where(valid1, m1, -1)
    return m0, m1, mscores0, mscores1


def lighterglue_forward(prepped, kpt0, kpt1, desc0, desc1):
    """kpt*: (B,N,2) normalized to [-1,1]; desc*: (B,N,64). Returns LightGlue outputs."""
    # TODO(synk): .pt checkpoint loading and depth/width-confidence pruning (disabled
    # in the default xfeat conf) are not reproduced here.
    cos0, sin0 = rotary_encoding(kpt0, prepped['posenc_wr'])
    cos1, sin1 = rotary_encoding(kpt1, prepped['posenc_wr'])

    # Input projection + all transformer layers, fused into one pallas_call.
    d0, d1 = transformer_stack(desc0, desc1, cos0, sin0, cos1, sin1, prepped)

    # Matchability logits: tiny matvec kept in XLA.
    z0 = jnp.einsum('bmd,dk->bmk', d0, prepped['match_w'])[..., 0] + prepped['match_b']
    z1 = jnp.einsum('bnd,dk->bnk', d1, prepped['match_w'])[..., 0] + prepped['match_b']
    lsz0 = jax.nn.log_sigmoid(z0)[:, :, None]        # (B, M, 1)
    lsz1 = jax.nn.log_sigmoid(z1)[:, None, :]        # (B, 1, N)
    nlsz0 = jax.nn.log_sigmoid(-z0)[:, :, None]
    nlsz1 = jax.nn.log_sigmoid(-z1)[:, None, :]

    inner = log_assignment_inner(d0, d1, lsz0, lsz1,
                                 prepped['fin_w'], prepped['fin_b'])  # (B, M, N)

    # Dust-bin row/column/corner assembled lane-dense outside the kernel.
    bsz = inner.shape[0]
    top = jnp.concatenate([inner, nlsz0], axis=2)                     # (B, M, N+1)
    bot = jnp.concatenate([nlsz1, jnp.zeros((bsz, 1, 1), jnp.float32)], axis=2)
    scores = jnp.concatenate([top, bot], axis=1)                      # (B, M+1, N+1)

    m0, m1, ms0, ms1 = _filter_matches(scores, FILTER_THRESHOLD)
    return {
        'log_assignment': scores,
        'matches0': m0,
        'matches1': m1,
        'matching_scores0': ms0,
        'matching_scores1': ms1,
    }


if __name__ == "__main__":
    B, N = 2, 8
    key = jax.random.PRNGKey(0)
    kparam, kk0, kk1, kd0, kd1 = jax.random.split(key, 5)
    params = init_params(kparam)
    prepped = prepare_params(params)
    kpt0 = jax.random.uniform(kk0, (B, N, 2), jnp.float32, -1.0, 1.0)
    kpt1 = jax.random.uniform(kk1, (B, N, 2), jnp.float32, -1.0, 1.0)
    desc0 = jax.random.normal(kd0, (B, N, D_IN), jnp.float32)
    desc1 = jax.random.normal(kd1, (B, N, D_IN), jnp.float32)

    out = jax.jit(lighterglue_forward)(prepped, kpt0, kpt1, desc0, desc1)
    jax.block_until_ready(out)
    assert out['log_assignment'].shape == (B, N + 1, N + 1)
    assert out['matches0'].shape == (B, N)
    assert out['matching_scores0'].shape == (B, N)
    print("KERNEL_OK")
</pallas_src>

<mosaic_0001>
module attributes {stable_mosaic.version = 11 : i64} {
  func.func @_assignment_kernel(%arg0: i32, %arg1: memref<1x8x128xf32, #tpu.memory_space<vmem>>, %arg2: memref<1x8x128xf32, #tpu.memory_space<vmem>>, %arg3: memref<1x8x1xf32, #tpu.memory_space<vmem>>, %arg4: memref<1x1x8xf32, #tpu.memory_space<vmem>>, %arg5: memref<128x128xbf16, #tpu.memory_space<vmem>>, %arg6: memref<1x128xf32, #tpu.memory_space<vmem>>, %arg7: memref<1x8x8xf32, #tpu.memory_space<vmem>>) attributes {dimension_semantics = [#tpu.dimension_semantics<parallel>], iteration_bounds = array<i64: 2>, scalar_prefetch = 0 : i64, scratch_operands = 0 : i64, tpu.core_type = #tpu.core_type<tc>, window_params = [{transform_indices = @transform_0, window_bounds = array<i64: 1, 8, 128>}, {transform_indices = @transform_1, window_bounds = array<i64: 1, 8, 128>}, {transform_indices = @transform_2, window_bounds = array<i64: 1, 8, 1>}, {transform_indices = @transform_3, window_bounds = array<i64: 1, 1, 8>}, {pipeline_mode = #tpu.pipeline_mode<synchronous>, transform_indices = @transform_4, window_bounds = array<i64: 128, 128>}, {pipeline_mode = #tpu.pipeline_mode<synchronous>, transform_indices = @transform_5, window_bounds = array<i64: 1, 128>}, {transform_indices = @transform_6, window_bounds = array<i64: 1, 8, 8>}]} {
    %c0 = arith.constant 0 : index
    %c0_0 = arith.constant 0 : index
    %0 = vector.load %arg5[%c0, %c0_0] : memref<128x128xbf16, #tpu.memory_space<vmem>>, vector<128x128xbf16>
    %c0_1 = arith.constant 0 : index
    %c0_2 = arith.constant 0 : index
    %1 = vector.load %arg6[%c0_1, %c0_2] : memref<1x128xf32, #tpu.memory_space<vmem>>, vector<1x128xf32>
    %c0_3 = arith.constant 0 : index
    %c0_4 = arith.constant 0 : index
    %c0_5 = arith.constant 0 : index
    %2 = vector.load %arg1[%c0_3, %c0_4, %c0_5] : memref<1x8x128xf32, #tpu.memory_space<vmem>>, vector<1x8x128xf32>
    %3 = vector.shape_cast %2 : vector<1x8x128xf32> to vector<8x128xf32>
    %4 = arith.truncf %3 : vector<8x128xf32> to vector<8x128xbf16>
    %cst = arith.constant dense<0.000000e+00> : vector<8x128xf32>
    %5 = tpu.matmul %4, %0, %cst {dimension_numbers = #tpu.dot_dimension_numbers<[1], [0], [0], [1], [0, 0, 1, 1], [], []>} : vector<8x128xbf16>, vector<128x128xbf16>, vector<8x128xf32> -> vector<8x128xf32>
    %6 = vector.broadcast %1 : vector<1x128xf32> to vector<8x128xf32>
    %7 = arith.addf %5, %6 : vector<8x128xf32>
    %8 = arith.truncf %7 : vector<8x128xf32> to vector<8x128xbf16>
    %c0_6 = arith.constant 0 : index
    %c0_7 = arith.constant 0 : index
    %c0_8 = arith.constant 0 : index
    %9 = vector.load %arg2[%c0_6, %c0_7, %c0_8] : memref<1x8x128xf32, #tpu.memory_space<vmem>>, vector<1x8x128xf32>
    %10 = vector.shape_cast %9 : vector<1x8x128xf32> to vector<8x128xf32>
    %11 = arith.truncf %10 : vector<8x128xf32> to vector<8x128xbf16>
    %cst_9 = arith.constant dense<0.000000e+00> : vector<8x128xf32>
    %12 = tpu.matmul %11, %0, %cst_9 {dimension_numbers = #tpu.dot_dimension_numbers<[1], [0], [0], [1], [0, 0, 1, 1], [], []>} : vector<8x128xbf16>, vector<128x128xbf16>, vector<8x128xf32> -> vector<8x128xf32>
    %13 = vector.broadcast %1 : vector<1x128xf32> to vector<8x128xf32>
    %14 = arith.addf %12, %13 : vector<8x128xf32>
    %15 = arith.truncf %14 : vector<8x128xf32> to vector<8x128xbf16>
    %cst_10 = arith.constant dense<0.000000e+00> : vector<8x8xf32>
    %16 = tpu.matmul %8, %15, %cst_10 {dimension_numbers = #tpu.dot_dimension_numbers<[1], [1], [0], [0], [0, 0, 1, 0], [], []>} : vector<8x128xbf16>, vector<8x128xbf16>, vector<8x8xf32> -> vector<8x8xf32>
    %cst_11 = arith.constant dense<0xFF800000> : vector<8xf32>
    %17 = vector.multi_reduction <maximumf>, %16, %cst_11 [1] : vector<8x8xf32> to vector<8xf32>
    %18 = vector.shape_cast %17 : vector<8xf32> to vector<8x1xf32>
    %19 = vector.broadcast %18 : vector<8x1xf32> to vector<8x8xf32>
    %20 = arith.subf %16, %19 : vector<8x8xf32>
    %21 = math.exp %20 : vector<8x8xf32>
    %cst_12 = arith.constant dense<0.000000e+00> : vector<8xf32>
    %22 = vector.multi_reduction <add>, %21, %cst_12 [1] : vector<8x8xf32> to vector<8xf32>
    %23 = vector.shape_cast %22 : vector<8xf32> to vector<8x1xf32>
    %24 = math.log %23 : vector<8x1xf32>
    %25 = vector.broadcast %24 : vector<8x1xf32> to vector<8x8xf32>
    %26 = arith.subf %20, %25 : vector<8x8xf32>
    %cst_13 = arith.constant dense<0xFF800000> : vector<8xf32>
    %27 = vector.multi_reduction <maximumf>, %16, %cst_13 [0] : vector<8x8xf32> to vector<8xf32>
    %28 = vector.shape_cast %27 : vector<8xf32> to vector<1x8xf32>
    %29 = vector.broadcast %28 : vector<1x8xf32> to vector<8x8xf32>
    %30 = arith.subf %16, %29 : vector<8x8xf32>
    %31 = math.exp %30 : vector<8x8xf32>
    %cst_14 = arith.constant dense<0.000000e+00> : vector<8xf32>
    %32 = vector.multi_reduction <add>, %31, %cst_14 [0] : vector<8x8xf32> to vector<8xf32>
    %33 = vector.shape_cast %32 : vector<8xf32> to vector<1x8xf32>
    %34 = math.log %33 : vector<1x8xf32>
    %35 = vector.broadcast %34 : vector<1x8xf32> to vector<8x8xf32>
    %36 = arith.subf %30, %35 : vector<8x8xf32>
    %37 = arith.addf %26, %36 : vector<8x8xf32>
    %c0_15 = arith.constant 0 : index
    %c0_16 = arith.constant 0 : index
    %c0_17 = arith.constant 0 : index
    %38 = vector.load %arg3[%c0_15, %c0_16, %c0_17] : memref<1x8x1xf32, #tpu.memory_space<vmem>>, vector<1x8x1xf32>
    %39 = vector.shape_cast %38 : vector<1x8x1xf32> to vector<8x1xf32>
    %40 = vector.broadcast %39 : vector<8x1xf32> to vector<8x8xf32>
    %41 = arith.addf %37, %40 : vector<8x8xf32>
    %c0_18 = arith.constant 0 : index
    %c0_19 = arith.constant 0 : index
    %c0_20 = arith.constant 0 : index
    %42 = vector.load %arg4[%c0_18, %c0_19, %c0_20] : memref<1x1x8xf32, #tpu.memory_space<vmem>>, vector<1x1x8xf32>
    %43 = vector.shape_cast %42 : vector<1x1x8xf32> to vector<1x8xf32>
    %44 = vector.broadcast %43 : vector<1x8xf32> to vector<8x8xf32>
    %45 = arith.addf %41, %44 : vector<8x8xf32>
    %c0_21 = arith.constant 0 : index
    %c0_22 = arith.constant 0 : index
    %c0_23 = arith.constant 0 : index
    %46 = vector.load %arg7[%c0_21, %c0_22, %c0_23] : memref<1x8x8xf32, #tpu.memory_space<vmem>>, vector<1x8x8xf32>
    %47 = vector.shape_cast %46 : vector<1x8x8xf32> to vector<8x8xf32>
    %48 = vector.shape_cast %45 : vector<8x8xf32> to vector<1x8x8xf32>
    tpu.vector_store %arg7[%c0_21, %c0_22, %c0_23], %48 {strides = array<i32>} : memref<1x8x8xf32, #tpu.memory_space<vmem>>, vector<1x8x8xf32>,
    return
  }
  func.func @transform_0(%arg0: i32) -> (i32, i32, i32) {
    %c0_i32 = arith.constant 0 : i32
    %c0_i32_0 = arith.constant 0 : i32
    %c0_i32_1 = arith.constant 0 : i32
    return %arg0, %c0_i32, %c0_i32_0 : i32, i32, i32
  }
  func.func @transform_1(%arg0: i32) -> (i32, i32, i32) {
    %c0_i32 = arith.constant 0 : i32
    %c0_i32_0 = arith.constant 0 : i32
    %c0_i32_1 = arith.constant 0 : i32
    return %arg0, %c0_i32, %c0_i32_0 : i32, i32, i32
  }
  func.func @transform_2(%arg0: i32) -> (i32, i32, i32) {
    %c0_i32 = arith.constant 0 : i32
    %c0_i32_0 = arith.constant 0 : i32
    %c0_i32_1 = arith.constant 0 : i32
    return %arg0, %c0_i32, %c0_i32_0 : i32, i32, i32
  }
  func.func @transform_3(%arg0: i32) -> (i32, i32, i32) {
    %c0_i32 = arith.constant 0 : i32
    %c0_i32_0 = arith.constant 0 : i32
    %c0_i32_1 = arith.constant 0 : i32
    return %arg0, %c0_i32, %c0_i32_0 : i32, i32, i32
  }
  func.func @transform_4(%arg0: i32) -> (i32, i32) {
    %c0_i32 = arith.constant 0 : i32
    %c0_i32_0 = arith.constant 0 : i32
    %c0_i32_1 = arith.constant 0 : i32
    return %c0_i32, %c0_i32_0 : i32, i32
  }
  func.func @transform_5(%arg0: i32) -> (i32, i32) {
    %c0_i32 = arith.constant 0 : i32
    %c0_i32_0 = arith.constant 0 : i32
    %c0_i32_1 = arith.constant 0 : i32
    return %c0_i32, %c0_i32_0 : i32, i32
  }
  func.func @transform_6(%arg0: i32) -> (i32, i32, i32) {
    %c0_i32 = arith.constant 0 : i32
    %c0_i32_0 = arith.constant 0 : i32
    %c0_i32_1 = arith.constant 0 : i32
    return %arg0, %c0_i32, %c0_i32_0 : i32, i32, i32
  }
}

module attributes {stable_mosaic.version = 11 : i64} {
  func.func @_layers_kernel(%arg0: i32, %arg1: i32, %arg2: memref<1x8x64xf32, #tpu.memory_space<vmem>>, %arg3: memref<1x8x64xf32, #tpu.memory_space<vmem>>, %arg4: memref<1x8x128xf32, #tpu.memory_space<vmem>>, %arg5: memref<1x8x128xf32, #tpu.memory_space<vmem>>, %arg6: memref<1x8x128xf32, #tpu.memory_space<vmem>>, %arg7: memref<1x8x128xf32, #tpu.memory_space<vmem>>, %arg8: memref<64x128xbf16, #tpu.memory_space<vmem>>, %arg9: memref<1x128xf32, #tpu.memory_space<vmem>>, %arg10: memref<1x128x640xbf16, #tpu.memory_space<vmem>>, %arg11: memref<1x1x640xf32, #tpu.memory_space<vmem>>, %arg12: memref<1x128x256xbf16, #tpu.memory_space<vmem>>, %arg13: memref<1x128x256xbf16, #tpu.memory_space<vmem>>, %arg14: memref<1x1x256xf32, #tpu.memory_space<vmem>>, %arg15: memref<1x1x256xf32, #tpu.memory_space<vmem>>, %arg16: memref<1x1x256xf32, #tpu.memory_space<vmem>>, %arg17: memref<1x256x128xbf16, #tpu.memory_space<vmem>>, %arg18: memref<1x1x128xf32, #tpu.memory_space<vmem>>, %arg19: memref<1x128x128xbf16, #tpu.memory_space<vmem>>, %arg20: memref<1x1x128xf32, #tpu.memory_space<vmem>>, %arg21: memref<1x128x128xbf16, #tpu.memory_space<vmem>>, %arg22: memref<1x1x128xf32, #tpu.memory_space<vmem>>, %arg23: memref<1x128x256xbf16, #tpu.memory_space<vmem>>, %arg24: memref<1x128x256xbf16, #tpu.memory_space<vmem>>, %arg25: memref<1x1x256xf32, #tpu.memory_space<vmem>>, %arg26: memref<1x1x256xf32, #tpu.memory_space<vmem>>, %arg27: memref<1x1x256xf32, #tpu.memory_space<vmem>>, %arg28: memref<1x256x128xbf16, #tpu.memory_space<vmem>>, %arg29: memref<1x1x128xf32, #tpu.memory_space<vmem>>, %arg30: memref<1x8x128xf32, #tpu.memory_space<vmem>>, %arg31: memref<1x8x128xf32, #tpu.memory_space<vmem>>) attributes {dimension_semantics = [#tpu.dimension_semantics<parallel>, #tpu.dimension_semantics<arbitrary>], iteration_bounds = array<i64: 2, 6>, scalar_prefetch = 0 : i64, scratch_operands = 0 : i64, tpu.core_type = #tpu.core_type<tc>, window_params = [{transform_indices = @transform_0, window_bounds = array<i64: 1, 8, 64>}, {transform_indices = @transform_1, window_bounds = array<i64: 1, 8, 64>}, {transform_indices = @transform_2, window_bounds = array<i64: 1, 8, 128>}, {transform_indices = @transform_3, window_bounds = array<i64: 1, 8, 128>}, {transform_indices = @transform_4, window_bounds = array<i64: 1, 8, 128>}, {transform_indices = @transform_5, window_bounds = array<i64: 1, 8, 128>}, {pipeline_mode = #tpu.pipeline_mode<synchronous>, transform_indices = @transform_6, window_bounds = array<i64: 64, 128>}, {pipeline_mode = #tpu.pipeline_mode<synchronous>, transform_indices = @transform_7, window_bounds = array<i64: 1, 128>}, {transform_indices = @transform_8, window_bounds = array<i64: 1, 128, 640>}, {transform_indices = @transform_9, window_bounds = array<i64: 1, 1, 640>}, {transform_indices = @transform_10, window_bounds = array<i64: 1, 128, 256>}, {transform_indices = @transform_11, window_bounds = array<i64: 1, 128, 256>}, {transform_indices = @transform_12, window_bounds = array<i64: 1, 1, 256>}, {transform_indices = @transform_13, window_bounds = array<i64: 1, 1, 256>}, {transform_indices = @transform_14, window_bounds = array<i64: 1, 1, 256>}, {transform_indices = @transform_15, window_bounds = array<i64: 1, 256, 128>}, {transform_indices = @transform_16, window_bounds = array<i64: 1, 1, 128>}, {transform_indices = @transform_17, window_bounds = array<i64: 1, 128, 128>}, {transform_indices = @transform_18, window_bounds = array<i64: 1, 1, 128>}, {transform_indices = @transform_19, window_bounds = array<i64: 1, 128, 128>}, {transform_indices = @transform_20, window_bounds = array<i64: 1, 1, 128>}, {transform_indices = @transform_21, window_bounds = array<i64: 1, 128, 256>}, {transform_indices = @transform_22, window_bounds = array<i64: 1, 128, 256>}, {transform_indices = @transform_23, window_bounds = array<i64: 1, 1, 256>}, {transform_indices = @transform_24, window_bounds = array<i64: 1, 1, 256>}, {transform_indices = @transform_25, window_bounds = array<i64: 1, 1, 256>}, {transform_indices = @transform_26, window_bounds = array<i64: 1, 256, 128>}, {transform_indices = @transform_27, window_bounds = array<i64: 1, 1, 128>}, {transform_indices = @transform_28, window_bounds = array<i64: 1, 8, 128>}, {transform_indices = @transform_29, window_bounds = array<i64: 1, 8, 128>}]} {
    %c0_i32 = arith.constant 0 : i32
    %0 = arith.cmpi eq, %arg1, %c0_i32 : i32
    %1 = arith.extui %0 : i1 to i32
    %c0_i32_0 = arith.constant 0 : i32
    %2 = arith.cmpi ne, %1, %c0_i32_0 : i32
    scf.if %2 {
      %c0_211 = arith.constant 0 : index
      %c0_212 = arith.constant 0 : index
      %484 = vector.load %arg8[%c0_211, %c0_212] : memref<64x128xbf16, #tpu.memory_space<vmem>>, vector<64x128xbf16>
      %c0_213 = arith.constant 0 : index
      %c0_214 = arith.constant 0 : index
      %485 = vector.load %arg9[%c0_213, %c0_214] : memref<1x128xf32, #tpu.memory_space<vmem>>, vector<1x128xf32>
      %c0_215 = arith.constant 0 : index
      %c0_216 = arith.constant 0 : index
      %c0_217 = arith.constant 0 : index
      %486 = vector.load %arg2[%c0_215, %c0_216, %c0_217] : memref<1x8x64xf32, #tpu.memory_space<vmem>>, vector<1x8x64xf32>
      %487 = vector.shape_cast %486 : vector<1x8x64xf32> to vector<8x64xf32>
      %488 = arith.truncf %487 : vector<8x64xf32> to vector<8x64xbf16>
      %cst_218 = arith.constant dense<0.000000e+00> : vector<8x128xf32>
      %489 = tpu.matmul %488, %484, %cst_218 {dimension_numbers = #tpu.dot_dimension_numbers<[1], [0], [0], [1], [0, 0, 1, 1], [], []>} : vector<8x64xbf16>, vector<64x128xbf16>, vector<8x128xf32> -> vector<8x128xf32>
      %490 = vector.broadcast %485 : vector<1x128xf32> to vector<8x128xf32>
      %491 = arith.addf %489, %490 : vector<8x128xf32>
      %c0_219 = arith.constant 0 : index
      %c0_220 = arith.constant 0 : index
      %c0_221 = arith.constant 0 : index
      %492 = vector.load %arg30[%c0_219, %c0_220, %c0_221] : memref<1x8x128xf32, #tpu.memory_space<vmem>>, vector<1x8x128xf32>
      %493 = vector.shape_cast %492 : vector<1x8x128xf32> to vector<8x128xf32>
      %494 = vector.shape_cast %491 : vector<8x128xf32> to vector<1x8x128xf32>
      tpu.vector_store %arg30[%c0_219, %c0_220, %c0_221], %494 {strides = array<i32>} : memref<1x8x128xf32, #tpu.memory_space<vmem>>, vector<1x8x128xf32>,
      %c0_222 = arith.constant 0 : index
      %c0_223 = arith.constant 0 : index
      %c0_224 = arith.constant 0 : index
      %495 = vector.load %arg3[%c0_222, %c0_223, %c0_224] : memref<1x8x64xf32, #tpu.memory_space<vmem>>, vector<1x8x64xf32>
      %496 = vector.shape_cast %495 : vector<1x8x64xf32> to vector<8x64xf32>
      %497 = arith.truncf %496 : vector<8x64xf32> to vector<8x64xbf16>
      %cst_225 = arith.constant dense<0.000000e+00> : vector<8x128xf32>
      %498 = tpu.matmul %497, %484, %cst_225 {dimension_numbers = #tpu.dot_dimension_numbers<[1], [0], [0], [1], [0, 0, 1, 1], [], []>} : vector<8x64xbf16>, vector<64x128xbf16>, vector<8x128xf32> -> vector<8x128xf32>
      %499 = vector.broadcast %485 : vector<1x128xf32> to vector<8x128xf32>
      %500 = arith.addf %498, %499 : vector<8x128xf32>
      %c0_226 = arith.constant 0 : index
      %c0_227 = arith.constant 0 : index
      %c0_228 = arith.constant 0 : index
      %501 = vector.load %arg31[%c0_226, %c0_227, %c0_228] : memref<1x8x128xf32, #tpu.memory_space<vmem>>, vector<1x8x128xf32>
      %502 = vector.shape_cast %501 : vector<1x8x128xf32> to vector<8x128xf32>
      %503 = vector.shape_cast %500 : vector<8x128xf32> to vector<1x8x128xf32>
      tpu.vector_store %arg31[%c0_226, %c0_227, %c0_228], %503 {strides = array<i32>} : memref<1x8x128xf32, #tpu.memory_space<vmem>>, vector<1x8x128xf32>,
    } else {
    }
    %3 = tpu.iota {dimensions = array<i32: 1>} : vector<1x256xi32>
    %c192_i32 = arith.constant 192 : i32
    %4 = vector.broadcast %c192_i32 : i32 to vector<1x256xi32>
    %5 = arith.cmpi slt, %3, %4 : vector<1x256xi32>
    %6 = arith.extui %5 : vector<1x256xi1> to vector<1x256xi32>
    %7 = arith.sitofp %6 : vector<1x256xi32> to vector<1x256xf32>
    %c0 = arith.constant 0 : index
    %c0_1 = arith.constant 0 : index
    %c0_2 = arith.constant 0 : index
    %8 = vector.load %arg30[%c0, %c0_1, %c0_2] : memref<1x8x128xf32, #tpu.memory_space<vmem>>, vector<1x8x128xf32>
    %9 = vector.shape_cast %8 : vector<1x8x128xf32> to vector<8x128xf32>
    %c0_3 = arith.constant 0 : index
    %c0_4 = arith.constant 0 : index
    %c0_5 = arith.constant 0 : index
    %10 = vector.load %arg31[%c0_3, %c0_4, %c0_5] : memref<1x8x128xf32, #tpu.memory_space<vmem>>, vector<1x8x128xf32>
    %11 = vector.shape_cast %10 : vector<1x8x128xf32> to vector<8x128xf32>
    %c0_6 = arith.constant 0 : index
    %c0_7 = arith.constant 0 : index
    %c0_8 = arith.constant 0 : index
    %12 = vector.load %arg4[%c0_6, %c0_7, %c0_8] : memref<1x8x128xf32, #tpu.memory_space<vmem>>, vector<1x8x128xf32>
    %13 = vector.shape_cast %12 : vector<1x8x128xf32> to vector<8x128xf32>
    %c0_9 = arith.constant 0 : index
    %c0_10 = arith.constant 0 : index
    %c0_11 = arith.constant 0 : index
    %14 = vector.load %arg5[%c0_9, %c0_10, %c0_11] : memref<1x8x128xf32, #tpu.memory_space<vmem>>, vector<1x8x128xf32>
    %15 = vector.shape_cast %14 : vector<1x8x128xf32> to vector<8x128xf32>
    %c0_12 = arith.constant 0 : index
    %c0_13 = arith.constant 0 : index
    %c0_14 = arith.constant 0 : index
    %16 = vector.load %arg6[%c0_12, %c0_13, %c0_14] : memref<1x8x128xf32, #tpu.memory_space<vmem>>, vector<1x8x128xf32>
    %17 = vector.shape_cast %16 : vector<1x8x128xf32> to vector<8x128xf32>
    %c0_15 = arith.constant 0 : index
    %c0_16 = arith.constant 0 : index
    %c0_17 = arith.constant 0 : index
    %18 = vector.load %arg7[%c0_15, %c0_16, %c0_17] : memref<1x8x128xf32, #tpu.memory_space<vmem>>, vector<1x8x128xf32>
    %19 = vector.shape_cast %18 : vector<1x8x128xf32> to vector<8x128xf32>
    %c0_18 = arith.constant 0 : index
    %c0_19 = arith.constant 0 : index
    %c0_20 = arith.constant 0 : index
    %20 = vector.load %arg12[%c0_18, %c0_19, %c0_20] : memref<1x128x256xbf16, #tpu.memory_space<vmem>>, vector<1x128x256xbf16>
    %21 = vector.shape_cast %20 : vector<1x128x256xbf16> to vector<128x256xbf16>
    %c0_21 = arith.constant 0 : index
    %c0_22 = arith.constant 0 : index
    %c0_23 = arith.constant 0 : index
    %22 = vector.load %arg13[%c0_21, %c0_22, %c0_23] : memref<1x128x256xbf16, #tpu.memory_space<vmem>>, vector<1x128x256xbf16>
    %23 = vector.shape_cast %22 : vector<1x128x256xbf16> to vector<128x256xbf16>
    %c0_24 = arith.constant 0 : index
    %c0_25 = arith.constant 0 : index
    %c0_26 = arith.constant 0 : index
    %24 = vector.load %arg14[%c0_24, %c0_25, %c0_26] : memref<1x1x256xf32, #tpu.memory_space<vmem>>, vector<1x1x256xf32>
    %25 = vector.shape_cast %24 : vector<1x1x256xf32> to vector<1x256xf32>
    %c0_27 = arith.constant 0 : index
    %c0_28 = arith.constant 0 : index
    %c0_29 = arith.constant 0 : index
    %26 = vector.load %arg15[%c0_27, %c0_28, %c0_29] : memref<1x1x256xf32, #tpu.memory_space<vmem>>, vector<1x1x256xf32>
    %27 = vector.shape_cast %26 : vector<1x1x256xf32> to vector<1x256xf32>
    %c0_30 = arith.constant 0 : index
    %c0_31 = arith.constant 0 : index
    %c0_32 = arith.constant 0 : index
    %28 = vector.load %arg16[%c0_30, %c0_31, %c0_32] : memref<1x1x256xf32, #tpu.memory_space<vmem>>, vector<1x1x256xf32>
    %29 = vector.shape_cast %28 : vector<1x1x256xf32> to vector<1x256xf32>
    %c0_33 = arith.constant 0 : index
    %c0_34 = arith.constant 0 : index
    %c0_35 = arith.constant 0 : index
    %30 = vector.load %arg17[%c0_33, %c0_34, %c0_35] : memref<1x256x128xbf16, #tpu.memory_space<vmem>>, vector<1x256x128xbf16>
    %31 = vector.shape_cast %30 : vector<1x256x128xbf16> to vector<256x128xbf16>
    %c0_36 = arith.constant 0 : index
    %c0_37 = arith.constant 0 : index
    %c0_38 = arith.constant 0 : index
    %32 = vector.load %arg18[%c0_36, %c0_37, %c0_38] : memref<1x1x128xf32, #tpu.memory_space<vmem>>, vector<1x1x128xf32>
    %33 = vector.shape_cast %32 : vector<1x1x128xf32> to vector<1x128xf32>
    %c0_39 = arith.constant 0 : index
    %c0_40 = arith.constant 0 : index
    %c0_41 = arith.constant 0 : index
    %34 = vector.load %arg10[%c0_39, %c0_40, %c0_41] : memref<1x128x640xbf16, #tpu.memory_space<vmem>>, vector<1x128x640xbf16>
    %35 = vector.shape_cast %34 : vector<1x128x640xbf16> to vector<128x640xbf16>
    %c0_42 = arith.constant 0 : index
    %c0_43 = arith.constant 0 : index
    %c0_44 = arith.constant 0 : index
    %36 = vector.load %arg11[%c0_42, %c0_43, %c0_44] : memref<1x1x640xf32, #tpu.memory_space<vmem>>, vector<1x1x640xf32>
    %37 = vector.shape_cast %36 : vector<1x1x640xf32> to vector<1x640xf32>
    %38 = arith.truncf %9 : vector<8x128xf32> to vector<8x128xbf16>
    %cst = arith.constant dense<0.000000e+00> : vector<8x640xf32>
    %39 = tpu.matmul %38, %35, %cst {dimension_numbers = #tpu.dot_dimension_numbers<[1], [0], [0], [1], [0, 0, 1, 1], [], []>} : vector<8x128xbf16>, vector<128x640xbf16>, vector<8x640xf32> -> vector<8x640xf32>
    %40 = vector.broadcast %37 : vector<1x640xf32> to vector<8x640xf32>
    %41 = arith.addf %39, %40 : vector<8x640xf32>
    %42 = vector.extract_strided_slice %41 {offsets = [0, 0], sizes = [8, 128], strides = [1, 1]} : vector<8x640xf32> to vector<8x128xf32>
    %43 = arith.mulf %42, %13 : vector<8x128xf32>
    %44 = vector.extract_strided_slice %41 {offsets = [0, 384], sizes = [8, 128], strides = [1, 1]} : vector<8x640xf32> to vector<8x128xf32>
    %45 = arith.mulf %44, %15 : vector<8x128xf32>
    %46 = arith.addf %43, %45 : vector<8x128xf32>
    %47 = vector.extract_strided_slice %41 {offsets = [0, 128], sizes = [8, 128], strides = [1, 1]} : vector<8x640xf32> to vector<8x128xf32>
    %48 = arith.mulf %47, %13 : vector<8x128xf32>
    %49 = vector.extract_strided_slice %41 {offsets = [0, 512], sizes = [8, 128], strides = [1, 1]} : vector<8x640xf32> to vector<8x128xf32>
    %50 = arith.mulf %49, %15 : vector<8x128xf32>
    %51 = arith.addf %48, %50 : vector<8x128xf32>
    %52 = vector.extract_strided_slice %41 {offsets = [0, 256], sizes = [8, 128], strides = [1, 1]} : vector<8x640xf32> to vector<8x128xf32>
    %53 = arith.truncf %46 : vector<8x128xf32> to vector<8x128xbf16>
    %54 = arith.truncf %51 : vector<8x128xf32> to vector<8x128xbf16>
    %cst_45 = arith.constant dense<0.000000e+00> : vector<8x8xf32>
    %55 = tpu.matmul %53, %54, %cst_45 {dimension_numbers = #tpu.dot_dimension_numbers<[1], [1], [0], [0], [0, 0, 1, 0], [], []>} : vector<8x128xbf16>, vector<8x128xbf16>, vector<8x8xf32> -> vector<8x8xf32>
    %cst_46 = arith.constant 0.102062076 : f32
    %56 = vector.broadcast %cst_46 : f32 to vector<8x8xf32>
    %57 = arith.mulf %55, %56 : vector<8x8xf32>
    %cst_47 = arith.constant dense<0xFF800000> : vector<8xf32>
    %58 = vector.multi_reduction <maximumf>, %57, %cst_47 [1] : vector<8x8xf32> to vector<8xf32>
    %59 = vector.shape_cast %58 : vector<8xf32> to vector<8x1xf32>
    %60 = vector.broadcast %59 : vector<8x1xf32> to vector<8x8xf32>
    %61 = arith.subf %57, %60 : vector<8x8xf32>
    %62 = math.exp %61 : vector<8x8xf32>
    %cst_48 = arith.constant dense<0.000000e+00> : vector<8xf32>
    %63 = vector.multi_reduction <add>, %62, %cst_48 [1] : vector<8x8xf32> to vector<8xf32>
    %64 = vector.shape_cast %63 : vector<8xf32> to vector<8x1xf32>
    %65 = tpu.reciprocal %64 {approx = true} : vector<8x1xf32> -> vector<8x1xf32>
    %66 = vector.broadcast %65 : vector<8x1xf32> to vector<8x8xf32>
    %67 = arith.mulf %62, %66 : vector<8x8xf32>
    %68 = arith.truncf %67 : vector<8x8xf32> to vector<8x8xbf16>
    %69 = arith.truncf %52 : vector<8x128xf32> to vector<8x128xbf16>
    %cst_49 = arith.constant dense<0.000000e+00> : vector<8x128xf32>
    %70 = tpu.matmul %68, %69, %cst_49 {dimension_numbers = #tpu.dot_dimension_numbers<[1], [0], [0], [1], [0, 0, 1, 1], [], []>} : vector<8x8xbf16>, vector<8x128xbf16>, vector<8x128xf32> -> vector<8x128xf32>
    %71 = arith.truncf %9 : vector<8x128xf32> to vector<8x128xbf16>
    %cst_50 = arith.constant dense<0.000000e+00> : vector<8x256xf32>
    %72 = tpu.matmul %71, %21, %cst_50 {dimension_numbers = #tpu.dot_dimension_numbers<[1], [0], [0], [1], [0, 0, 1, 1], [], []>} : vector<8x128xbf16>, vector<128x256xbf16>, vector<8x256xf32> -> vector<8x256xf32>
    %73 = arith.truncf %70 : vector<8x128xf32> to vector<8x128xbf16>
    %cst_51 = arith.constant dense<0.000000e+00> : vector<8x256xf32>
    %74 = tpu.matmul %73, %23, %cst_51 {dimension_numbers = #tpu.dot_dimension_numbers<[1], [0], [0], [1], [0, 0, 1, 1], [], []>} : vector<8x128xbf16>, vector<128x256xbf16>, vector<8x256xf32> -> vector<8x256xf32>
    %75 = arith.addf %72, %74 : vector<8x256xf32>
    %76 = vector.broadcast %25 : vector<1x256xf32> to vector<8x256xf32>
    %77 = arith.addf %75, %76 : vector<8x256xf32>
    %cst_52 = arith.constant dense<0.000000e+00> : vector<8xf32>
    %78 = vector.multi_reduction <add>, %77, %cst_52 [1] : vector<8x256xf32> to vector<8xf32>
    %79 = vector.shape_cast %78 : vector<8xf32> to vector<8x1xf32>
    %cst_53 = arith.constant 0.00520833349 : f32
    %80 = vector.broadcast %cst_53 : f32 to vector<8x1xf32>
    %81 = arith.mulf %79, %80 : vector<8x1xf32>
    %82 = vector.broadcast %81 : vector<8x1xf32> to vector<8x256xf32>
    %83 = arith.subf %77, %82 : vector<8x256xf32>
    %84 = vector.broadcast %7 : vector<1x256xf32> to vector<8x256xf32>
    %85 = arith.mulf %83, %84 : vector<8x256xf32>
    %86 = arith.mulf %85, %85 : vector<8x256xf32>
    %cst_54 = arith.constant dense<0.000000e+00> : vector<8xf32>
    %87 = vector.multi_reduction <add>, %86, %cst_54 [1] : vector<8x256xf32> to vector<8xf32>
    %88 = vector.shape_cast %87 : vector<8xf32> to vector<8x1xf32>
    %cst_55 = arith.constant 0.00520833349 : f32
    %89 = vector.broadcast %cst_55 : f32 to vector<8x1xf32>
    %90 = arith.mulf %88, %89 : vector<8x1xf32>
    %cst_56 = arith.constant 9.99999974E-6 : f32
    %91 = vector.broadcast %cst_56 : f32 to vector<8x1xf32>
    %92 = arith.addf %90, %91 : vector<8x1xf32>
    %93 = math.rsqrt %92 : vector<8x1xf32>
    %94 = vector.broadcast %93 : vector<8x1xf32> to vector<8x256xf32>
    %95 = arith.mulf %85, %94 : vector<8x256xf32>
    %96 = vector.broadcast %27 : vector<1x256xf32> to vector<8x256xf32>
    %97 = arith.mulf %95, %96 : vector<8x256xf32>
    %98 = vector.broadcast %29 : vector<1x256xf32> to vector<8x256xf32>
    %99 = arith.addf %97, %98 : vector<8x256xf32>
    %cst_57 = arith.constant 5.000000e-01 : f32
    %100 = vector.broadcast %cst_57 : f32 to vector<8x256xf32>
    %101 = arith.mulf %100, %99 : vector<8x256xf32>
    %cst_58 = arith.constant 0.707106769 : f32
    %102 = vector.broadcast %cst_58 : f32 to vector<8x256xf32>
    %103 = arith.mulf %99, %102 : vector<8x256xf32>
    %cst_59 = arith.constant 0.000000e+00 : f32
    %104 = vector.broadcast %cst_59 : f32 to vector<8x256xf32>
    %105 = arith.cmpf oge, %103, %104 : vector<8x256xf32>
    %cst_60 = arith.constant 1.000000e+00 : f32
    %cst_61 = arith.constant -1.000000e+00 : f32
    %106 = vector.broadcast %cst_60 : f32 to vector<8x256xf32>
    %107 = vector.broadcast %cst_61 : f32 to vector<8x256xf32>
    %108 = arith.select %105, %106, %107 : vector<8x256xi1>, vector<8x256xf32>
    %109 = math.absf %103 : vector<8x256xf32>
    %cst_62 = arith.constant 0.327591091 : f32
    %110 = vector.broadcast %cst_62 : f32 to vector<8x256xf32>
    %111 = arith.mulf %110, %109 : vector<8x256xf32>
    %cst_63 = arith.constant 1.000000e+00 : f32
    %112 = vector.broadcast %cst_63 : f32 to vector<8x256xf32>
    %113 = arith.addf %112, %111 : vector<8x256xf32>
    %cst_64 = arith.constant 1.000000e+00 : f32
    %114 = vector.broadcast %cst_64 : f32 to vector<8x256xf32>
    %115 = arith.divf %114, %113 : vector<8x256xf32>
    %cst_65 = arith.constant 1.06140542 : f32
    %116 = vector.broadcast %cst_65 : f32 to vector<8x256xf32>
    %117 = arith.mulf %116, %115 : vector<8x256xf32>
    %cst_66 = arith.constant -1.45315206 : f32
    %118 = vector.broadcast %cst_66 : f32 to vector<8x256xf32>
    %119 = arith.addf %117, %118 : vector<8x256xf32>
    %120 = arith.mulf %119, %115 : vector<8x256xf32>
    %cst_67 = arith.constant 1.42141378 : f32
    %121 = vector.broadcast %cst_67 : f32 to vector<8x256xf32>
    %122 = arith.addf %120, %121 : vector<8x256xf32>
    %123 = arith.mulf %122, %115 : vector<8x256xf32>
    %cst_68 = arith.constant -0.284496725 : f32
    %124 = vector.broadcast %cst_68 : f32 to vector<8x256xf32>
    %125 = arith.addf %123, %124 : vector<8x256xf32>
    %126 = arith.mulf %125, %115 : vector<8x256xf32>
    %cst_69 = arith.constant 0.254829586 : f32
    %127 = vector.broadcast %cst_69 : f32 to vector<8x256xf32>
    %128 = arith.addf %126, %127 : vector<8x256xf32>
    %129 = arith.mulf %128, %115 : vector<8x256xf32>
    %cst_70 = arith.constant 0.000000e+00 : f32
    %130 = vector.broadcast %cst_70 : f32 to vector<8x256xf32>
    %131 = arith.subf %130, %109 : vector<8x256xf32>
    %132 = arith.mulf %131, %109 : vector<8x256xf32>
    %133 = math.exp %132 : vector<8x256xf32>
    %134 = arith.mulf %129, %133 : vector<8x256xf32>
    %cst_71 = arith.constant 1.000000e+00 : f32
    %135 = vector.broadcast %cst_71 : f32 to vector<8x256xf32>
    %136 = arith.subf %135, %134 : vector<8x256xf32>
    %137 = arith.mulf %108, %136 : vector<8x256xf32>
    %cst_72 = arith.constant 1.000000e+00 : f32
    %138 = vector.broadcast %cst_72 : f32 to vector<8x256xf32>
    %139 = arith.addf %138, %137 : vector<8x256xf32>
    %140 = arith.mulf %101, %139 : vector<8x256xf32>
    %141 = arith.truncf %140 : vector<8x256xf32> to vector<8x256xbf16>
    %cst_73 = arith.constant dense<0.000000e+00> : vector<8x128xf32>
    %142 = tpu.matmul %141, %31, %cst_73 {dimension_numbers = #tpu.dot_dimension_numbers<[1], [0], [0], [1], [0, 0, 1, 1], [], []>} : vector<8x256xbf16>, vector<256x128xbf16>, vector<8x128xf32> -> vector<8x128xf32>
    %143 = vector.broadcast %33 : vector<1x128xf32> to vector<8x128xf32>
    %144 = arith.addf %142, %143 : vector<8x128xf32>
    %145 = arith.addf %9, %144 : vector<8x128xf32>
    %c0_74 = arith.constant 0 : index
    %c0_75 = arith.constant 0 : index
    %c0_76 = arith.constant 0 : index
    %146 = vector.load %arg10[%c0_74, %c0_75, %c0_76] : memref<1x128x640xbf16, #tpu.memory_space<vmem>>, vector<1x128x640xbf16>
    %147 = vector.shape_cast %146 : vector<1x128x640xbf16> to vector<128x640xbf16>
    %c0_77 = arith.constant 0 : index
    %c0_78 = arith.constant 0 : index
    %c0_79 = arith.constant 0 : index
    %148 = vector.load %arg11[%c0_77, %c0_78, %c0_79] : memref<1x1x640xf32, #tpu.memory_space<vmem>>, vector<1x1x640xf32>
    %149 = vector.shape_cast %148 : vector<1x1x640xf32> to vector<1x640xf32>
    %150 = arith.truncf %11 : vector<8x128xf32> to vector<8x128xbf16>
    %cst_80 = arith.constant dense<0.000000e+00> : vector<8x640xf32>
    %151 = tpu.matmul %150, %147, %cst_80 {dimension_numbers = #tpu.dot_dimension_numbers<[1], [0], [0], [1], [0, 0, 1, 1], [], []>} : vector<8x128xbf16>, vector<128x640xbf16>, vector<8x640xf32> -> vector<8x640xf32>
    %152 = vector.broadcast %149 : vector<1x640xf32> to vector<8x640xf32>
    %153 = arith.addf %151, %152 : vector<8x640xf32>
    %154 = vector.extract_strided_slice %153 {offsets = [0, 0], sizes = [8, 128], strides = [1, 1]} : vector<8x640xf32> to vector<8x128xf32>
    %155 = arith.mulf %154, %17 : vector<8x128xf32>
    %156 = vector.extract_strided_slice %153 {offsets = [0, 384], sizes = [8, 128], strides = [1, 1]} : vector<8x640xf32> to vector<8x128xf32>
    %157 = arith.mulf %156, %19 : vector<8x128xf32>
    %158 = arith.addf %155, %157 : vector<8x128xf32>
    %159 = vector.extract_strided_slice %153 {offsets = [0, 128], sizes = [8, 128], strides = [1, 1]} : vector<8x640xf32> to vector<8x128xf32>
    %160 = arith.mulf %159, %17 : vector<8x128xf32>
    %161 = vector.extract_strided_slice %153 {offsets = [0, 512], sizes = [8, 128], strides = [1, 1]} : vector<8x640xf32> to vector<8x128xf32>
    %162 = arith.mulf %161, %19 : vector<8x128xf32>
    %163 = arith.addf %160, %162 : vector<8x128xf32>
    %164 = vector.extract_strided_slice %153 {offsets = [0, 256], sizes = [8, 128], strides = [1, 1]} : vector<8x640xf32> to vector<8x128xf32>
    %165 = arith.truncf %158 : vector<8x128xf32> to vector<8x128xbf16>
    %166 = arith.truncf %163 : vector<8x128xf32> to vector<8x128xbf16>
    %cst_81 = arith.constant dense<0.000000e+00> : vector<8x8xf32>
    %167 = tpu.matmul %165, %166, %cst_81 {dimension_numbers = #tpu.dot_dimension_numbers<[1], [1], [0], [0], [0, 0, 1, 0], [], []>} : vector<8x128xbf16>, vector<8x128xbf16>, vector<8x8xf32> -> vector<8x8xf32>
    %cst_82 = arith.constant 0.102062076 : f32
    %168 = vector.broadcast %cst_82 : f32 to vector<8x8xf32>
    %169 = arith.mulf %167, %168 : vector<8x8xf32>
    %cst_83 = arith.constant dense<0xFF800000> : vector<8xf32>
    %170 = vector.multi_reduction <maximumf>, %169, %cst_83 [1] : vector<8x8xf32> to vector<8xf32>
    %171 = vector.shape_cast %170 : vector<8xf32> to vector<8x1xf32>
    %172 = vector.broadcast %171 : vector<8x1xf32> to vector<8x8xf32>
    %173 = arith.subf %169, %172 : vector<8x8xf32>
    %174 = math.exp %173 : vector<8x8xf32>
    %cst_84 = arith.constant dense<0.000000e+00> : vector<8xf32>
    %175 = vector.multi_reduction <add>, %174, %cst_84 [1] : vector<8x8xf32> to vector<8xf32>
    %176 = vector.shape_cast %175 : vector<8xf32> to vector<8x1xf32>
    %177 = tpu.reciprocal %176 {approx = true} : vector<8x1xf32> -> vector<8x1xf32>
    %178 = vector.broadcast %177 : vector<8x1xf32> to vector<8x8xf32>
    %179 = arith.mulf %174, %178 : vector<8x8xf32>
    %180 = arith.truncf %179 : vector<8x8xf32> to vector<8x8xbf16>
    %181 = arith.truncf %164 : vector<8x128xf32> to vector<8x128xbf16>
    %cst_85 = arith.constant dense<0.000000e+00> : vector<8x128xf32>
    %182 = tpu.matmul %180, %181, %cst_85 {dimension_numbers = #tpu.dot_dimension_numbers<[1], [0], [0], [1], [0, 0, 1, 1], [], []>} : vector<8x8xbf16>, vector<8x128xbf16>, vector<8x128xf32> -> vector<8x128xf32>
    %183 = arith.truncf %11 : vector<8x128xf32> to vector<8x128xbf16>
    %cst_86 = arith.constant dense<0.000000e+00> : vector<8x256xf32>
    %184 = tpu.matmul %183, %21, %cst_86 {dimension_numbers = #tpu.dot_dimension_numbers<[1], [0], [0], [1], [0, 0, 1, 1], [], []>} : vector<8x128xbf16>, vector<128x256xbf16>, vector<8x256xf32> -> vector<8x256xf32>
    %185 = arith.truncf %182 : vector<8x128xf32> to vector<8x128xbf16>
    %cst_87 = arith.constant dense<0.000000e+00> : vector<8x256xf32>
    %186 = tpu.matmul %185, %23, %cst_87 {dimension_numbers = #tpu.dot_dimension_numbers<[1], [0], [0], [1], [0, 0, 1, 1], [], []>} : vector<8x128xbf16>, vector<128x256xbf16>, vector<8x256xf32> -> vector<8x256xf32>
    %187 = arith.addf %184, %186 : vector<8x256xf32>
    %188 = vector.broadcast %25 : vector<1x256xf32> to vector<8x256xf32>
    %189 = arith.addf %187, %188 : vector<8x256xf32>
    %cst_88 = arith.constant dense<0.000000e+00> : vector<8xf32>
    %190 = vector.multi_reduction <add>, %189, %cst_88 [1] : vector<8x256xf32> to vector<8xf32>
    %191 = vector.shape_cast %190 : vector<8xf32> to vector<8x1xf32>
    %cst_89 = arith.constant 0.00520833349 : f32
    %192 = vector.broadcast %cst_89 : f32 to vector<8x1xf32>
    %193 = arith.mulf %191, %192 : vector<8x1xf32>
    %194 = vector.broadcast %193 : vector<8x1xf32> to vector<8x256xf32>
    %195 = arith.subf %189, %194 : vector<8x256xf32>
    %196 = vector.broadcast %7 : vector<1x256xf32> to vector<8x256xf32>
    %197 = arith.mulf %195, %196 : vector<8x256xf32>
    %198 = arith.mulf %197, %197 : vector<8x256xf32>
    %cst_90 = arith.constant dense<0.000000e+00> : vector<8xf32>
    %199 = vector.multi_reduction <add>, %198, %cst_90 [1] : vector<8x256xf32> to vector<8xf32>
    %200 = vector.shape_cast %199 : vector<8xf32> to vector<8x1xf32>
    %cst_91 = arith.constant 0.00520833349 : f32
    %201 = vector.broadcast %cst_91 : f32 to vector<8x1xf32>
    %202 = arith.mulf %200, %201 : vector<8x1xf32>
    %cst_92 = arith.constant 9.99999974E-6 : f32
    %203 = vector.broadcast %cst_92 : f32 to vector<8x1xf32>
    %204 = arith.addf %202, %203 : vector<8x1xf32>
    %205 = math.rsqrt %204 : vector<8x1xf32>
    %206 = vector.broadcast %205 : vector<8x1xf32> to vector<8x256xf32>
    %207 = arith.mulf %197, %206 : vector<8x256xf32>
    %208 = vector.broadcast %27 : vector<1x256xf32> to vector<8x256xf32>
    %209 = arith.mulf %207, %208 : vector<8x256xf32>
    %210 = vector.broadcast %29 : vector<1x256xf32> to vector<8x256xf32>
    %211 = arith.addf %209, %210 : vector<8x256xf32>
    %cst_93 = arith.constant 5.000000e-01 : f32
    %212 = vector.broadcast %cst_93 : f32 to vector<8x256xf32>
    %213 = arith.mulf %212, %211 : vector<8x256xf32>
    %cst_94 = arith.constant 0.707106769 : f32
    %214 = vector.broadcast %cst_94 : f32 to vector<8x256xf32>
    %215 = arith.mulf %211, %214 : vector<8x256xf32>
    %cst_95 = arith.constant 0.000000e+00 : f32
    %216 = vector.broadcast %cst_95 : f32 to vector<8x256xf32>
    %217 = arith.cmpf oge, %215, %216 : vector<8x256xf32>
    %cst_96 = arith.constant 1.000000e+00 : f32
    %cst_97 = arith.constant -1.000000e+00 : f32
    %218 = vector.broadcast %cst_96 : f32 to vector<8x256xf32>
    %219 = vector.broadcast %cst_97 : f32 to vector<8x256xf32>
    %220 = arith.select %217, %218, %219 : vector<8x256xi1>, vector<8x256xf32>
    %221 = math.absf %215 : vector<8x256xf32>
    %cst_98 = arith.constant 0.327591091 : f32
    %222 = vector.broadcast %cst_98 : f32 to vector<8x256xf32>
    %223 = arith.mulf %222, %221 : vector<8x256xf32>
    %cst_99 = arith.constant 1.000000e+00 : f32
    %224 = vector.broadcast %cst_99 : f32 to vector<8x256xf32>
    %225 = arith.addf %224, %223 : vector<8x256xf32>
    %cst_100 = arith.constant 1.000000e+00 : f32
    %226 = vector.broadcast %cst_100 : f32 to vector<8x256xf32>
    %227 = arith.divf %226, %225 : vector<8x256xf32>
    %cst_101 = arith.constant 1.06140542 : f32
    %228 = vector.broadcast %cst_101 : f32 to vector<8x256xf32>
    %229 = arith.mulf %228, %227 : vector<8x256xf32>
    %cst_102 = arith.constant -1.45315206 : f32
    %230 = vector.broadcast %cst_102 : f32 to vector<8x256xf32>
    %231 = arith.addf %229, %230 : vector<8x256xf32>
    %232 = arith.mulf %231, %227 : vector<8x256xf32>
    %cst_103 = arith.constant 1.42141378 : f32
    %233 = vector.broadcast %cst_103 : f32 to vector<8x256xf32>
    %234 = arith.addf %232, %233 : vector<8x256xf32>
    %235 = arith.mulf %234, %227 : vector<8x256xf32>
    %cst_104 = arith.constant -0.284496725 : f32
    %236 = vector.broadcast %cst_104 : f32 to vector<8x256xf32>
    %237 = arith.addf %235, %236 : vector<8x256xf32>
    %238 = arith.mulf %237, %227 : vector<8x256xf32>
    %cst_105 = arith.constant 0.254829586 : f32
    %239 = vector.broadcast %cst_105 : f32 to vector<8x256xf32>
    %240 = arith.addf %238, %239 : vector<8x256xf32>
    %241 = arith.mulf %240, %227 : vector<8x256xf32>
    %cst_106 = arith.constant 0.000000e+00 : f32
    %242 = vector.broadcast %cst_106 : f32 to vector<8x256xf32>
    %243 = arith.subf %242, %221 : vector<8x256xf32>
    %244 = arith.mulf %243, %221 : vector<8x256xf32>
    %245 = math.exp %244 : vector<8x256xf32>
    %246 = arith.mulf %241, %245 : vector<8x256xf32>
    %cst_107 = arith.constant 1.000000e+00 : f32
    %247 = vector.broadcast %cst_107 : f32 to vector<8x256xf32>
    %248 = arith.subf %247, %246 : vector<8x256xf32>
    %249 = arith.mulf %220, %248 : vector<8x256xf32>
    %cst_108 = arith.constant 1.000000e+00 : f32
    %250 = vector.broadcast %cst_108 : f32 to vector<8x256xf32>
    %251 = arith.addf %250, %249 : vector<8x256xf32>
    %252 = arith.mulf %213, %251 : vector<8x256xf32>
    %253 = arith.truncf %252 : vector<8x256xf32> to vector<8x256xbf16>
    %cst_109 = arith.constant dense<0.000000e+00> : vector<8x128xf32>
    %254 = tpu.matmul %253, %31, %cst_109 {dimension_numbers = #tpu.dot_dimension_numbers<[1], [0], [0], [1], [0, 0, 1, 1], [], []>} : vector<8x256xbf16>, vector<256x128xbf16>, vector<8x128xf32> -> vector<8x128xf32>
    %255 = vector.broadcast %33 : vector<1x128xf32> to vector<8x128xf32>
    %256 = arith.addf %254, %255 : vector<8x128xf32>
    %257 = arith.addf %11, %256 : vector<8x128xf32>
    %c0_110 = arith.constant 0 : index
    %c0_111 = arith.constant 0 : index
    %c0_112 = arith.constant 0 : index
    %258 = vector.load %arg23[%c0_110, %c0_111, %c0_112] : memref<1x128x256xbf16, #tpu.memory_space<vmem>>, vector<1x128x256xbf16>
    %259 = vector.shape_cast %258 : vector<1x128x256xbf16> to vector<128x256xbf16>
    %c0_113 = arith.constant 0 : index
    %c0_114 = arith.constant 0 : index
    %c0_115 = arith.constant 0 : index
    %260 = vector.load %arg24[%c0_113, %c0_114, %c0_115] : memref<1x128x256xbf16, #tpu.memory_space<vmem>>, vector<1x128x256xbf16>
    %261 = vector.shape_cast %260 : vector<1x128x256xbf16> to vector<128x256xbf16>
    %c0_116 = arith.constant 0 : index
    %c0_117 = arith.constant 0 : index
    %c0_118 = arith.constant 0 : index
    %262 = vector.load %arg25[%c0_116, %c0_117, %c0_118] : memref<1x1x256xf32, #tpu.memory_space<vmem>>, vector<1x1x256xf32>
    %263 = vector.shape_cast %262 : vector<1x1x256xf32> to vector<1x256xf32>
    %c0_119 = arith.constant 0 : index
    %c0_120 = arith.constant 0 : index
    %c0_121 = arith.constant 0 : index
    %264 = vector.load %arg26[%c0_119, %c0_120, %c0_121] : memref<1x1x256xf32, #tpu.memory_space<vmem>>, vector<1x1x256xf32>
    %265 = vector.shape_cast %264 : vector<1x1x256xf32> to vector<1x256xf32>
    %c0_122 = arith.constant 0 : index
    %c0_123 = arith.constant 0 : index
    %c0_124 = arith.constant 0 : index
    %266 = vector.load %arg27[%c0_122, %c0_123, %c0_124] : memref<1x1x256xf32, #tpu.memory_space<vmem>>, vector<1x1x256xf32>
    %267 = vector.shape_cast %266 : vector<1x1x256xf32> to vector<1x256xf32>
    %c0_125 = arith.constant 0 : index
    %c0_126 = arith.constant 0 : index
    %c0_127 = arith.constant 0 : index
    %268 = vector.load %arg28[%c0_125, %c0_126, %c0_127] : memref<1x256x128xbf16, #tpu.memory_space<vmem>>, vector<1x256x128xbf16>
    %269 = vector.shape_cast %268 : vector<1x256x128xbf16> to vector<256x128xbf16>
    %c0_128 = arith.constant 0 : index
    %c0_129 = arith.constant 0 : index
    %c0_130 = arith.constant 0 : index
    %270 = vector.load %arg29[%c0_128, %c0_129, %c0_130] : memref<1x1x128xf32, #tpu.memory_space<vmem>>, vector<1x1x128xf32>
    %271 = vector.shape_cast %270 : vector<1x1x128xf32> to vector<1x128xf32>
    %c0_131 = arith.constant 0 : index
    %c0_132 = arith.constant 0 : index
    %c0_133 = arith.constant 0 : index
    %272 = vector.load %arg19[%c0_131, %c0_132, %c0_133] : memref<1x128x128xbf16, #tpu.memory_space<vmem>>, vector<1x128x128xbf16>
    %273 = vector.shape_cast %272 : vector<1x128x128xbf16> to vector<128x128xbf16>
    %c0_134 = arith.constant 0 : index
    %c0_135 = arith.constant 0 : index
    %c0_136 = arith.constant 0 : index
    %274 = vector.load %arg20[%c0_134, %c0_135, %c0_136] : memref<1x1x128xf32, #tpu.memory_space<vmem>>, vector<1x1x128xf32>
    %275 = vector.shape_cast %274 : vector<1x1x128xf32> to vector<1x128xf32>
    %c0_137 = arith.constant 0 : index
    %c0_138 = arith.constant 0 : index
    %c0_139 = arith.constant 0 : index
    %276 = vector.load %arg21[%c0_137, %c0_138, %c0_139] : memref<1x128x128xbf16, #tpu.memory_space<vmem>>, vector<1x128x128xbf16>
    %277 = vector.shape_cast %276 : vector<1x128x128xbf16> to vector<128x128xbf16>
    %c0_140 = arith.constant 0 : index
    %c0_141 = arith.constant 0 : index
    %c0_142 = arith.constant 0 : index
    %278 = vector.load %arg22[%c0_140, %c0_141, %c0_142] : memref<1x1x128xf32, #tpu.memory_space<vmem>>, vector<1x1x128xf32>
    %279 = vector.shape_cast %278 : vector<1x1x128xf32> to vector<1x128xf32>
    %280 = arith.truncf %145 : vector<8x128xf32> to vector<8x128xbf16>
    %281 = arith.truncf %257 : vector<8x128xf32> to vector<8x128xbf16>
    %cst_143 = arith.constant dense<0.000000e+00> : vector<8x128xf32>
    %282 = tpu.matmul %280, %273, %cst_143 {dimension_numbers = #tpu.dot_dimension_numbers<[1], [0], [0], [1], [0, 0, 1, 1], [], []>} : vector<8x128xbf16>, vector<128x128xbf16>, vector<8x128xf32> -> vector<8x128xf32>
    %283 = vector.broadcast %275 : vector<1x128xf32> to vector<8x128xf32>
    %284 = arith.addf %282, %283 : vector<8x128xf32>
    %285 = arith.truncf %284 : vector<8x128xf32> to vector<8x128xbf16>
    %cst_144 = arith.constant dense<0.000000e+00> : vector<8x128xf32>
    %286 = tpu.matmul %281, %273, %cst_144 {dimension_numbers = #tpu.dot_dimension_numbers<[1], [0], [0], [1], [0, 0, 1, 1], [], []>} : vector<8x128xbf16>, vector<128x128xbf16>, vector<8x128xf32> -> vector<8x128xf32>
    %287 = vector.broadcast %275 : vector<1x128xf32> to vector<8x128xf32>
    %288 = arith.addf %286, %287 : vector<8x128xf32>
    %289 = arith.truncf %288 : vector<8x128xf32> to vector<8x128xbf16>
    %cst_145 = arith.constant dense<0.000000e+00> : vector<8x128xf32>
    %290 = tpu.matmul %280, %277, %cst_145 {dimension_numbers = #tpu.dot_dimension_numbers<[1], [0], [0], [1], [0, 0, 1, 1], [], []>} : vector<8x128xbf16>, vector<128x128xbf16>, vector<8x128xf32> -> vector<8x128xf32>
    %291 = vector.broadcast %279 : vector<1x128xf32> to vector<8x128xf32>
    %292 = arith.addf %290, %291 : vector<8x128xf32>
    %293 = arith.truncf %292 : vector<8x128xf32> to vector<8x128xbf16>
    %cst_146 = arith.constant dense<0.000000e+00> : vector<8x128xf32>
    %294 = tpu.matmul %281, %277, %cst_146 {dimension_numbers = #tpu.dot_dimension_numbers<[1], [0], [0], [1], [0, 0, 1, 1], [], []>} : vector<8x128xbf16>, vector<128x128xbf16>, vector<8x128xf32> -> vector<8x128xf32>
    %295 = vector.broadcast %279 : vector<1x128xf32> to vector<8x128xf32>
    %296 = arith.addf %294, %295 : vector<8x128xf32>
    %297 = arith.truncf %296 : vector<8x128xf32> to vector<8x128xbf16>
    %cst_147 = arith.constant dense<0.000000e+00> : vector<8x8xf32>
    %298 = tpu.matmul %285, %289, %cst_147 {dimension_numbers = #tpu.dot_dimension_numbers<[1], [1], [0], [0], [0, 0, 1, 0], [], []>} : vector<8x128xbf16>, vector<8x128xbf16>, vector<8x8xf32> -> vector<8x8xf32>
    %cst_148 = arith.constant 0.102062076 : f32
    %299 = vector.broadcast %cst_148 : f32 to vector<8x8xf32>
    %300 = arith.mulf %298, %299 : vector<8x8xf32>
    %cst_149 = arith.constant dense<0xFF800000> : vector<8xf32>
    %301 = vector.multi_reduction <maximumf>, %300, %cst_149 [1] : vector<8x8xf32> to vector<8xf32>
    %302 = vector.shape_cast %301 : vector<8xf32> to vector<8x1xf32>
    %303 = vector.broadcast %302 : vector<8x1xf32> to vector<8x8xf32>
    %304 = arith.subf %300, %303 : vector<8x8xf32>
    %305 = math.exp %304 : vector<8x8xf32>
    %cst_150 = arith.constant dense<0.000000e+00> : vector<8xf32>
    %306 = vector.multi_reduction <add>, %305, %cst_150 [1] : vector<8x8xf32> to vector<8xf32>
    %307 = vector.shape_cast %306 : vector<8xf32> to vector<8x1xf32>
    %308 = tpu.reciprocal %307 {approx = true} : vector<8x1xf32> -> vector<8x1xf32>
    %309 = vector.broadcast %308 : vector<8x1xf32> to vector<8x8xf32>
    %310 = arith.mulf %305, %309 : vector<8x8xf32>
    %311 = arith.truncf %310 : vector<8x8xf32> to vector<8x8xbf16>
    %cst_151 = arith.constant dense<0.000000e+00> : vector<8x128xf32>
    %312 = tpu.matmul %311, %297, %cst_151 {dimension_numbers = #tpu.dot_dimension_numbers<[1], [0], [0], [1], [0, 0, 1, 1], [], []>} : vector<8x8xbf16>, vector<8x128xbf16>, vector<8x128xf32> -> vector<8x128xf32>
    %313 = arith.truncf %145 : vector<8x128xf32> to vector<8x128xbf16>
    %cst_152 = arith.constant dense<0.000000e+00> : vector<8x256xf32>
    %314 = tpu.matmul %313, %259, %cst_152 {dimension_numbers = #tpu.dot_dimension_numbers<[1], [0], [0], [1], [0, 0, 1, 1], [], []>} : vector<8x128xbf16>, vector<128x256xbf16>, vector<8x256xf32> -> vector<8x256xf32>
    %315 = arith.truncf %312 : vector<8x128xf32> to vector<8x128xbf16>
    %cst_153 = arith.constant dense<0.000000e+00> : vector<8x256xf32>
    %316 = tpu.matmul %315, %261, %cst_153 {dimension_numbers = #tpu.dot_dimension_numbers<[1], [0], [0], [1], [0, 0, 1, 1], [], []>} : vector<8x128xbf16>, vector<128x256xbf16>, vector<8x256xf32> -> vector<8x256xf32>
    %317 = arith.addf %314, %316 : vector<8x256xf32>
    %318 = vector.broadcast %263 : vector<1x256xf32> to vector<8x256xf32>
    %319 = arith.addf %317, %318 : vector<8x256xf32>
    %cst_154 = arith.constant dense<0.000000e+00> : vector<8xf32>
    %320 = vector.multi_reduction <add>, %319, %cst_154 [1] : vector<8x256xf32> to vector<8xf32>
    %321 = vector.shape_cast %320 : vector<8xf32> to vector<8x1xf32>
    %cst_155 = arith.constant 0.00520833349 : f32
    %322 = vector.broadcast %cst_155 : f32 to vector<8x1xf32>
    %323 = arith.mulf %321, %322 : vector<8x1xf32>
    %324 = vector.broadcast %323 : vector<8x1xf32> to vector<8x256xf32>
    %325 = arith.subf %319, %324 : vector<8x256xf32>
    %326 = vector.broadcast %7 : vector<1x256xf32> to vector<8x256xf32>
    %327 = arith.mulf %325, %326 : vector<8x256xf32>
    %328 = arith.mulf %327, %327 : vector<8x256xf32>
    %cst_156 = arith.constant dense<0.000000e+00> : vector<8xf32>
    %329 = vector.multi_reduction <add>, %328, %cst_156 [1] : vector<8x256xf32> to vector<8xf32>
    %330 = vector.shape_cast %329 : vector<8xf32> to vector<8x1xf32>
    %cst_157 = arith.constant 0.00520833349 : f32
    %331 = vector.broadcast %cst_157 : f32 to vector<8x1xf32>
    %332 = arith.mulf %330, %331 : vector<8x1xf32>
    %cst_158 = arith.constant 9.99999974E-6 : f32
    %333 = vector.broadcast %cst_158 : f32 to vector<8x1xf32>
    %334 = arith.addf %332, %333 : vector<8x1xf32>
    %335 = math.rsqrt %334 : vector<8x1xf32>
    %336 = vector.broadcast %335 : vector<8x1xf32> to vector<8x256xf32>
    %337 = arith.mulf %327, %336 : vector<8x256xf32>
    %338 = vector.broadcast %265 : vector<1x256xf32> to vector<8x256xf32>
    %339 = arith.mulf %337, %338 : vector<8x256xf32>
    %340 = vector.broadcast %267 : vector<1x256xf32> to vector<8x256xf32>
    %341 = arith.addf %339, %340 : vector<8x256xf32>
    %cst_159 = arith.constant 5.000000e-01 : f32
    %342 = vector.broadcast %cst_159 : f32 to vector<8x256xf32>
    %343 = arith.mulf %342, %341 : vector<8x256xf32>
    %cst_160 = arith.constant 0.707106769 : f32
    %344 = vector.broadcast %cst_160 : f32 to vector<8x256xf32>
    %345 = arith.mulf %341, %344 : vector<8x256xf32>
    %cst_161 = arith.constant 0.000000e+00 : f32
    %346 = vector.broadcast %cst_161 : f32 to vector<8x256xf32>
    %347 = arith.cmpf oge, %345, %346 : vector<8x256xf32>
    %cst_162 = arith.constant 1.000000e+00 : f32
    %cst_163 = arith.constant -1.000000e+00 : f32
    %348 = vector.broadcast %cst_162 : f32 to vector<8x256xf32>
    %349 = vector.broadcast %cst_163 : f32 to vector<8x256xf32>
    %350 = arith.select %347, %348, %349 : vector<8x256xi1>, vector<8x256xf32>
    %351 = math.absf %345 : vector<8x256xf32>
    %cst_164 = arith.constant 0.327591091 : f32
    %352 = vector.broadcast %cst_164 : f32 to vector<8x256xf32>
    %353 = arith.mulf %352, %351 : vector<8x256xf32>
    %cst_165 = arith.constant 1.000000e+00 : f32
    %354 = vector.broadcast %cst_165 : f32 to vector<8x256xf32>
    %355 = arith.addf %354, %353 : vector<8x256xf32>
    %cst_166 = arith.constant 1.000000e+00 : f32
    %356 = vector.broadcast %cst_166 : f32 to vector<8x256xf32>
    %357 = arith.divf %356, %355 : vector<8x256xf32>
    %cst_167 = arith.constant 1.06140542 : f32
    %358 = vector.broadcast %cst_167 : f32 to vector<8x256xf32>
    %359 = arith.mulf %358, %357 : vector<8x256xf32>
    %cst_168 = arith.constant -1.45315206 : f32
    %360 = vector.broadcast %cst_168 : f32 to vector<8x256xf32>
    %361 = arith.addf %359, %360 : vector<8x256xf32>
    %362 = arith.mulf %361, %357 : vector<8x256xf32>
    %cst_169 = arith.constant 1.42141378 : f32
    %363 = vector.broadcast %cst_169 : f32 to vector<8x256xf32>
    %364 = arith.addf %362, %363 : vector<8x256xf32>
    %365 = arith.mulf %364, %357 : vector<8x256xf32>
    %cst_170 = arith.constant -0.284496725 : f32
    %366 = vector.broadcast %cst_170 : f32 to vector<8x256xf32>
    %367 = arith.addf %365, %366 : vector<8x256xf32>
    %368 = arith.mulf %367, %357 : vector<8x256xf32>
    %cst_171 = arith.constant 0.254829586 : f32
    %369 = vector.broadcast %cst_171 : f32 to vector<8x256xf32>
    %370 = arith.addf %368, %369 : vector<8x256xf32>
    %371 = arith.mulf %370, %357 : vector<8x256xf32>
    %cst_172 = arith.constant 0.000000e+00 : f32
    %372 = vector.broadcast %cst_172 : f32 to vector<8x256xf32>
    %373 = arith.subf %372, %351 : vector<8x256xf32>
    %374 = arith.mulf %373, %351 : vector<8x256xf32>
    %375 = math.exp %374 : vector<8x256xf32>
    %376 = arith.mulf %371, %375 : vector<8x256xf32>
    %cst_173 = arith.constant 1.000000e+00 : f32
    %377 = vector.broadcast %cst_173 : f32 to vector<8x256xf32>
    %378 = arith.subf %377, %376 : vector<8x256xf32>
    %379 = arith.mulf %350, %378 : vector<8x256xf32>
    %cst_174 = arith.constant 1.000000e+00 : f32
    %380 = vector.broadcast %cst_174 : f32 to vector<8x256xf32>
    %381 = arith.addf %380, %379 : vector<8x256xf32>
    %382 = arith.mulf %343, %381 : vector<8x256xf32>
    %383 = arith.truncf %382 : vector<8x256xf32> to vector<8x256xbf16>
    %cst_175 = arith.constant dense<0.000000e+00> : vector<8x128xf32>
    %384 = tpu.matmul %383, %269, %cst_175 {dimension_numbers = #tpu.dot_dimension_numbers<[1], [0], [0], [1], [0, 0, 1, 1], [], []>} : vector<8x256xbf16>, vector<256x128xbf16>, vector<8x128xf32> -> vector<8x128xf32>
    %385 = vector.broadcast %271 : vector<1x128xf32> to vector<8x128xf32>
    %386 = arith.addf %384, %385 : vector<8x128xf32>
    %387 = arith.addf %145, %386 : vector<8x128xf32>
    %cst_176 = arith.constant dense<0.000000e+00> : vector<8x8xf32>
    %388 = tpu.matmul %289, %285, %cst_176 {dimension_numbers = #tpu.dot_dimension_numbers<[1], [1], [0], [0], [0, 0, 1, 0], [], []>} : vector<8x128xbf16>, vector<8x128xbf16>, vector<8x8xf32> -> vector<8x8xf32>
    %cst_177 = arith.constant 0.102062076 : f32
    %389 = vector.broadcast %cst_177 : f32 to vector<8x8xf32>
    %390 = arith.mulf %388, %389 : vector<8x8xf32>
    %cst_178 = arith.constant dense<0xFF800000> : vector<8xf32>
    %391 = vector.multi_reduction <maximumf>, %390, %cst_178 [1] : vector<8x8xf32> to vector<8xf32>
    %392 = vector.shape_cast %391 : vector<8xf32> to vector<8x1xf32>
    %393 = vector.broadcast %392 : vector<8x1xf32> to vector<8x8xf32>
    %394 = arith.subf %390, %393 : vector<8x8xf32>
    %395 = math.exp %394 : vector<8x8xf32>
    %cst_179 = arith.constant dense<0.000000e+00> : vector<8xf32>
    %396 = vector.multi_reduction <add>, %395, %cst_179 [1] : vector<8x8xf32> to vector<8xf32>
    %397 = vector.shape_cast %396 : vector<8xf32> to vector<8x1xf32>
    %398 = tpu.reciprocal %397 {approx = true} : vector<8x1xf32> -> vector<8x1xf32>
    %399 = vector.broadcast %398 : vector<8x1xf32> to vector<8x8xf32>
    %400 = arith.mulf %395, %399 : vector<8x8xf32>
    %401 = arith.truncf %400 : vector<8x8xf32> to vector<8x8xbf16>
    %cst_180 = arith.constant dense<0.000000e+00> : vector<8x128xf32>
    %402 = tpu.matmul %401, %293, %cst_180 {dimension_numbers = #tpu.dot_dimension_numbers<[1], [0], [0], [1], [0, 0, 1, 1], [], []>} : vector<8x8xbf16>, vector<8x128xbf16>, vector<8x128xf32> -> vector<8x128xf32>
    %403 = arith.truncf %257 : vector<8x128xf32> to vector<8x128xbf16>
    %cst_181 = arith.constant dense<0.000000e+00> : vector<8x256xf32>
    %404 = tpu.matmul %403, %259, %cst_181 {dimension_numbers = #tpu.dot_dimension_numbers<[1], [0], [0], [1], [0, 0, 1, 1], [], []>} : vector<8x128xbf16>, vector<128x256xbf16>, vector<8x256xf32> -> vector<8x256xf32>
    %405 = arith.truncf %402 : vector<8x128xf32> to vector<8x128xbf16>
    %cst_182 = arith.constant dense<0.000000e+00> : vector<8x256xf32>
    %406 = tpu.matmul %405, %261, %cst_182 {dimension_numbers = #tpu.dot_dimension_numbers<[1], [0], [0], [1], [0, 0, 1, 1], [], []>} : vector<8x128xbf16>, vector<128x256xbf16>, vector<8x256xf32> -> vector<8x256xf32>
    %407 = arith.addf %404, %406 : vector<8x256xf32>
    %408 = vector.broadcast %263 : vector<1x256xf32> to vector<8x256xf32>
    %409 = arith.addf %407, %408 : vector<8x256xf32>
    %cst_183 = arith.constant dense<0.000000e+00> : vector<8xf32>
    %410 = vector.multi_reduction <add>, %409, %cst_183 [1] : vector<8x256xf32> to vector<8xf32>
    %411 = vector.shape_cast %410 : vector<8xf32> to vector<8x1xf32>
    %cst_184 = arith.constant 0.00520833349 : f32
    %412 = vector.broadcast %cst_184 : f32 to vector<8x1xf32>
    %413 = arith.mulf %411, %412 : vector<8x1xf32>
    %414 = vector.broadcast %413 : vector<8x1xf32> to vector<8x256xf32>
    %415 = arith.subf %409, %414 : vector<8x256xf32>
    %416 = vector.broadcast %7 : vector<1x256xf32> to vector<8x256xf32>
    %417 = arith.mulf %415, %416 : vector<8x256xf32>
    %418 = arith.mulf %417, %417 : vector<8x256xf32>
    %cst_185 = arith.constant dense<0.000000e+00> : vector<8xf32>
    %419 = vector.multi_reduction <add>, %418, %cst_185 [1] : vector<8x256xf32> to vector<8xf32>
    %420 = vector.shape_cast %419 : vector<8xf32> to vector<8x1xf32>
    %cst_186 = arith.constant 0.00520833349 : f32
    %421 = vector.broadcast %cst_186 : f32 to vector<8x1xf32>
    %422 = arith.mulf %420, %421 : vector<8x1xf32>
    %cst_187 = arith.constant 9.99999974E-6 : f32
    %423 = vector.broadcast %cst_187 : f32 to vector<8x1xf32>
    %424 = arith.addf %422, %423 : vector<8x1xf32>
    %425 = math.rsqrt %424 : vector<8x1xf32>
    %426 = vector.broadcast %425 : vector<8x1xf32> to vector<8x256xf32>
    %427 = arith.mulf %417, %426 : vector<8x256xf32>
    %428 = vector.broadcast %265 : vector<1x256xf32> to vector<8x256xf32>
    %429 = arith.mulf %427, %428 : vector<8x256xf32>
    %430 = vector.broadcast %267 : vector<1x256xf32> to vector<8x256xf32>
    %431 = arith.addf %429, %430 : vector<8x256xf32>
    %cst_188 = arith.constant 5.000000e-01 : f32
    %432 = vector.broadcast %cst_188 : f32 to vector<8x256xf32>
    %433 = arith.mulf %432, %431 : vector<8x256xf32>
    %cst_189 = arith.constant 0.707106769 : f32
    %434 = vector.broadcast %cst_189 : f32 to vector<8x256xf32>
    %435 = arith.mulf %431, %434 : vector<8x256xf32>
    %cst_190 = arith.constant 0.000000e+00 : f32
    %436 = vector.broadcast %cst_190 : f32 to vector<8x256xf32>
    %437 = arith.cmpf oge, %435, %436 : vector<8x256xf32>
    %cst_191 = arith.constant 1.000000e+00 : f32
    %cst_192 = arith.constant -1.000000e+00 : f32
    %438 = vector.broadcast %cst_191 : f32 to vector<8x256xf32>
    %439 = vector.broadcast %cst_192 : f32 to vector<8x256xf32>
    %440 = arith.select %437, %438, %439 : vector<8x256xi1>, vector<8x256xf32>
    %441 = math.absf %435 : vector<8x256xf32>
    %cst_193 = arith.constant 0.327591091 : f32
    %442 = vector.broadcast %cst_193 : f32 to vector<8x256xf32>
    %443 = arith.mulf %442, %441 : vector<8x256xf32>
    %cst_194 = arith.constant 1.000000e+00 : f32
    %444 = vector.broadcast %cst_194 : f32 to vector<8x256xf32>
    %445 = arith.addf %444, %443 : vector<8x256xf32>
    %cst_195 = arith.constant 1.000000e+00 : f32
    %446 = vector.broadcast %cst_195 : f32 to vector<8x256xf32>
    %447 = arith.divf %446, %445 : vector<8x256xf32>
    %cst_196 = arith.constant 1.06140542 : f32
    %448 = vector.broadcast %cst_196 : f32 to vector<8x256xf32>
    %449 = arith.mulf %448, %447 : vector<8x256xf32>
    %cst_197 = arith.constant -1.45315206 : f32
    %450 = vector.broadcast %cst_197 : f32 to vector<8x256xf32>
    %451 = arith.addf %449, %450 : vector<8x256xf32>
    %452 = arith.mulf %451, %447 : vector<8x256xf32>
    %cst_198 = arith.constant 1.42141378 : f32
    %453 = vector.broadcast %cst_198 : f32 to vector<8x256xf32>
    %454 = arith.addf %452, %453 : vector<8x256xf32>
    %455 = arith.mulf %454, %447 : vector<8x256xf32>
    %cst_199 = arith.constant -0.284496725 : f32
    %456 = vector.broadcast %cst_199 : f32 to vector<8x256xf32>
    %457 = arith.addf %455, %456 : vector<8x256xf32>
    %458 = arith.mulf %457, %447 : vector<8x256xf32>
    %cst_200 = arith.constant 0.254829586 : f32
    %459 = vector.broadcast %cst_200 : f32 to vector<8x256xf32>
    %460 = arith.addf %458, %459 : vector<8x256xf32>
    %461 = arith.mulf %460, %447 : vector<8x256xf32>
    %cst_201 = arith.constant 0.000000e+00 : f32
    %462 = vector.broadcast %cst_201 : f32 to vector<8x256xf32>
    %463 = arith.subf %462, %441 : vector<8x256xf32>
    %464 = arith.mulf %463, %441 : vector<8x256xf32>
    %465 = math.exp %464 : vector<8x256xf32>
    %466 = arith.mulf %461, %465 : vector<8x256xf32>
    %cst_202 = arith.constant 1.000000e+00 : f32
    %467 = vector.broadcast %cst_202 : f32 to vector<8x256xf32>
    %468 = arith.subf %467, %466 : vector<8x256xf32>
    %469 = arith.mulf %440, %468 : vector<8x256xf32>
    %cst_203 = arith.constant 1.000000e+00 : f32
    %470 = vector.broadcast %cst_203 : f32 to vector<8x256xf32>
    %471 = arith.addf %470, %469 : vector<8x256xf32>
    %472 = arith.mulf %433, %471 : vector<8x256xf32>
    %473 = arith.truncf %472 : vector<8x256xf32> to vector<8x256xbf16>
    %cst_204 = arith.constant dense<0.000000e+00> : vector<8x128xf32>
    %474 = tpu.matmul %473, %269, %cst_204 {dimension_numbers = #tpu.dot_dimension_numbers<[1], [0], [0], [1], [0, 0, 1, 1], [], []>} : vector<8x256xbf16>, vector<256x128xbf16>, vector<8x128xf32> -> vector<8x128xf32>
    %475 = vector.broadcast %271 : vector<1x128xf32> to vector<8x128xf32>
    %476 = arith.addf %474, %475 : vector<8x128xf32>
    %477 = arith.addf %257, %476 : vector<8x128xf32>
    %c0_205 = arith.constant 0 : index
    %c0_206 = arith.constant 0 : index
    %c0_207 = arith.constant 0 : index
    %478 = vector.load %arg30[%c0_205, %c0_206, %c0_207] : memref<1x8x128xf32, #tpu.memory_space<vmem>>, vector<1x8x128xf32>
    %479 = vector.shape_cast %478 : vector<1x8x128xf32> to vector<8x128xf32>
    %480 = vector.shape_cast %387 : vector<8x128xf32> to vector<1x8x128xf32>
    tpu.vector_store %arg30[%c0_205, %c0_206, %c0_207], %480 {strides = array<i32>} : memref<1x8x128xf32, #tpu.memory_space<vmem>>, vector<1x8x128xf32>,
    %c0_208 = arith.constant 0 : index
    %c0_209 = arith.constant 0 : index
    %c0_210 = arith.constant 0 : index
    %481 = vector.load %arg31[%c0_208, %c0_209, %c0_210] : memref<1x8x128xf32, #tpu.memory_space<vmem>>, vector<1x8x128xf32>
    %482 = vector.shape_cast %481 : vector<1x8x128xf32> to vector<8x128xf32>
    %483 = vector.shape_cast %477 : vector<8x128xf32> to vector<1x8x128xf32>
    tpu.vector_store %arg31[%c0_208, %c0_209, %c0_210], %483 {strides = array<i32>} : memref<1x8x128xf32, #tpu.memory_space<vmem>>, vector<1x8x128xf32>,
    return
  }
  func.func @transform_0(%arg0: i32, %arg1: i32) -> (i32, i32, i32) {
    %c0_i32 = arith.constant 0 : i32
    %c0_i32_0 = arith.constant 0 : i32
    %c0_i32_1 = arith.constant 0 : i32
    return %arg0, %c0_i32, %c0_i32_0 : i32, i32, i32
  }
  func.func @transform_1(%arg0: i32, %arg1: i32) -> (i32, i32, i32) {
    %c0_i32 = arith.constant 0 : i32
    %c0_i32_0 = arith.constant 0 : i32
    %c0_i32_1 = arith.constant 0 : i32
    return %arg0, %c0_i32, %c0_i32_0 : i32, i32, i32
  }
  func.func @transform_2(%arg0: i32, %arg1: i32) -> (i32, i32, i32) {
    %c0_i32 = arith.constant 0 : i32
    %c0_i32_0 = arith.constant 0 : i32
    %c0_i32_1 = arith.constant 0 : i32
    return %arg0, %c0_i32, %c0_i32_0 : i32, i32, i32
  }
  func.func @transform_3(%arg0: i32, %arg1: i32) -> (i32, i32, i32) {
    %c0_i32 = arith.constant 0 : i32
    %c0_i32_0 = arith.constant 0 : i32
    %c0_i32_1 = arith.constant 0 : i32
    return %arg0, %c0_i32, %c0_i32_0 : i32, i32, i32
  }
  func.func @transform_4(%arg0: i32, %arg1: i32) -> (i32, i32, i32) {
    %c0_i32 = arith.constant 0 : i32
    %c0_i32_0 = arith.constant 0 : i32
    %c0_i32_1 = arith.constant 0 : i32
    return %arg0, %c0_i32, %c0_i32_0 : i32, i32, i32
  }
  func.func @transform_5(%arg0: i32, %arg1: i32) -> (i32, i32, i32) {
    %c0_i32 = arith.constant 0 : i32
    %c0_i32_0 = arith.constant 0 : i32
    %c0_i32_1 = arith.constant 0 : i32
    return %arg0, %c0_i32, %c0_i32_0 : i32, i32, i32
  }
  func.func @transform_6(%arg0: i32, %arg1: i32) -> (i32, i32) {
    %c0_i32 = arith.constant 0 : i32
    %c0_i32_0 = arith.constant 0 : i32
    %c0_i32_1 = arith.constant 0 : i32
    return %c0_i32, %c0_i32_0 : i32, i32
  }
  func.func @transform_7(%arg0: i32, %arg1: i32) -> (i32, i32) {
    %c0_i32 = arith.constant 0 : i32
    %c0_i32_0 = arith.constant 0 : i32
    %c0_i32_1 = arith.constant 0 : i32
    return %c0_i32, %c0_i32_0 : i32, i32
  }
  func.func @transform_8(%arg0: i32, %arg1: i32) -> (i32, i32, i32) {
    %c0_i32 = arith.constant 0 : i32
    %c0_i32_0 = arith.constant 0 : i32
    %c0_i32_1 = arith.constant 0 : i32
    return %arg1, %c0_i32, %c0_i32_0 : i32, i32, i32
  }
  func.func @transform_9(%arg0: i32, %arg1: i32) -> (i32, i32, i32) {
    %c0_i32 = arith.constant 0 : i32
    %c0_i32_0 = arith.constant 0 : i32
    %c0_i32_1 = arith.constant 0 : i32
    return %arg1, %c0_i32, %c0_i32_0 : i32, i32, i32
  }
  func.func @transform_10(%arg0: i32, %arg1: i32) -> (i32, i32, i32) {
    %c0_i32 = arith.constant 0 : i32
    %c0_i32_0 = arith.constant 0 : i32
    %c0_i32_1 = arith.constant 0 : i32
    return %arg1, %c0_i32, %c0_i32_0 : i32, i32, i32
  }
  func.func @transform_11(%arg0: i32, %arg1: i32) -> (i32, i32, i32) {
    %c0_i32 = arith.constant 0 : i32
    %c0_i32_0 = arith.constant 0 : i32
    %c0_i32_1 = arith.constant 0 : i32
    return %arg1, %c0_i32, %c0_i32_0 : i32, i32, i32
  }
  func.func @transform_12(%arg0: i32, %arg1: i32) -> (i32, i32, i32) {
    %c0_i32 = arith.constant 0 : i32
    %c0_i32_0 = arith.constant 0 : i32
    %c0_i32_1 = arith.constant 0 : i32
    return %arg1, %c0_i32, %c0_i32_0 : i32, i32, i32
  }
  func.func @transform_13(%arg0: i32, %arg1: i32) -> (i32, i32, i32) {
    %c0_i32 = arith.constant 0 : i32
    %c0_i32_0 = arith.constant 0 : i32
    %c0_i32_1 = arith.constant 0 : i32
    return %arg1, %c0_i32, %c0_i32_0 : i32, i32, i32
  }
  func.func @transform_14(%arg0: i32, %arg1: i32) -> (i32, i32, i32) {
    %c0_i32 = arith.constant 0 : i32
    %c0_i32_0 = arith.constant 0 : i32
    %c0_i32_1 = arith.constant 0 : i32
    return %arg1, %c0_i32, %c0_i32_0 : i32, i32, i32
  }
  func.func @transform_15(%arg0: i32, %arg1: i32) -> (i32, i32, i32) {
    %c0_i32 = arith.constant 0 : i32
    %c0_i32_0 = arith.constant 0 : i32
    %c0_i32_1 = arith.constant 0 : i32
    return %arg1, %c0_i32, %c0_i32_0 : i32, i32, i32
  }
  func.func @transform_16(%arg0: i32, %arg1: i32) -> (i32, i32, i32) {
    %c0_i32 = arith.constant 0 : i32
    %c0_i32_0 = arith.constant 0 : i32
    %c0_i32_1 = arith.constant 0 : i32
    return %arg1, %c0_i32, %c0_i32_0 : i32, i32, i32
  }
  func.func @transform_17(%arg0: i32, %arg1: i32) -> (i32, i32, i32) {
    %c0_i32 = arith.constant 0 : i32
    %c0_i32_0 = arith.constant 0 : i32
    %c0_i32_1 = arith.constant 0 : i32
    return %arg1, %c0_i32, %c0_i32_0 : i32, i32, i32
  }
  func.func @transform_18(%arg0: i32, %arg1: i32) -> (i32, i32, i32) {
    %c0_i32 = arith.constant 0 : i32
    %c0_i32_0 = arith.constant 0 : i32
    %c0_i32_1 = arith.constant 0 : i32
    return %arg1, %c0_i32, %c0_i32_0 : i32, i32, i32
  }
  func.func @transform_19(%arg0: i32, %arg1: i32) -> (i32, i32, i32) {
    %c0_i32 = arith.constant 0 : i32
    %c0_i32_0 = arith.constant 0 : i32
    %c0_i32_1 = arith.constant 0 : i32
    return %arg1, %c0_i32, %c0_i32_0 : i32, i32, i32
  }
  func.func @transform_20(%arg0: i32, %arg1: i32) -> (i32, i32, i32) {
    %c0_i32 = arith.constant 0 : i32
    %c0_i32_0 = arith.constant 0 : i32
    %c0_i32_1 = arith.constant 0 : i32
    return %arg1, %c0_i32, %c0_i32_0 : i32, i32, i32
  }
  func.func @transform_21(%arg0: i32, %arg1: i32) -> (i32, i32, i32) {
    %c0_i32 = arith.constant 0 : i32
    %c0_i32_0 = arith.constant 0 : i32
    %c0_i32_1 = arith.constant 0 : i32
    return %arg1, %c0_i32, %c0_i32_0 : i32, i32, i32
  }
  func.func @transform_22(%arg0: i32, %arg1: i32) -> (i32, i32, i32) {
    %c0_i32 = arith.constant 0 : i32
    %c0_i32_0 = arith.constant 0 : i32
    %c0_i32_1 = arith.constant 0 : i32
    return %arg1, %c0_i32, %c0_i32_0 : i32, i32, i32
  }
  func.func @transform_23(%arg0: i32, %arg1: i32) -> (i32, i32, i32) {
    %c0_i32 = arith.constant 0 : i32
    %c0_i32_0 = arith.constant 0 : i32
    %c0_i32_1 = arith.constant 0 : i32
    return %arg1, %c0_i32, %c0_i32_0 : i32, i32, i32
  }
  func.func @transform_24(%arg0: i32, %arg1: i32) -> (i32, i32, i32) {
    %c0_i32 = arith.constant 0 : i32
    %c0_i32_0 = arith.constant 0 : i32
    %c0_i32_1 = arith.constant 0 : i32
    return %arg1, %c0_i32, %c0_i32_0 : i32, i32, i32
  }
  func.func @transform_25(%arg0: i32, %arg1: i32) -> (i32, i32, i32) {
    %c0_i32 = arith.constant 0 : i32
    %c0_i32_0 = arith.constant 0 : i32
    %c0_i32_1 = arith.constant 0 : i32
    return %arg1, %c0_i32, %c0_i32_0 : i32, i32, i32
  }
  func.func @transform_26(%arg0: i32, %arg1: i32) -> (i32, i32, i32) {
    %c0_i32 = arith.constant 0 : i32
    %c0_i32_0 = arith.constant 0 : i32
    %c0_i32_1 = arith.constant 0 : i32
    return %arg1, %c0_i32, %c0_i32_0 : i32, i32, i32
  }
  func.func @transform_27(%arg0: i32, %arg1: i32) -> (i32, i32, i32) {
    %c0_i32 = arith.constant 0 : i32
    %c0_i32_0 = arith.constant 0 : i32
    %c0_i32_1 = arith.constant 0 : i32
    return %arg1, %c0_i32, %c0_i32_0 : i32, i32, i32
  }
  func.func @transform_28(%arg0: i32, %arg1: i32) -> (i32, i32, i32) {
    %c0_i32 = arith.constant 0 : i32
    %c0_i32_0 = arith.constant 0 : i32
    %c0_i32_1 = arith.constant 0 : i32
    return %arg0, %c0_i32, %c0_i32_0 : i32, i32, i32
  }
  func.func @transform_29(%arg0: i32, %arg1: i32) -> (i32, i32, i32) {
    %c0_i32 = arith.constant 0 : i32
    %c0_i32_0 = arith.constant 0 : i32
    %c0_i32_1 = arith.constant 0 : i32
    return %arg0, %c0_i32, %c0_i32_0 : i32, i32, i32
  }
}

</mosaic_0001>

<bundles_post_ra>
// kernel: lighterglue_forward.3
= control target key start
LH: loop header
LB: loop body
LE: loop exit
PB: predicated region body
PF: predicated region fallthrough
CT: control target
= control target key end

     0   :  { %s790_s21 = smov 0   ;;  %s864_s0 = inlined_call_operand.vmem [shape: f32[2,8,128], index: 0, kind: input, shape index: {}]   ;;  %s865_s1 = inlined_call_operand.vmem [shape: f32[2,8,128], index: 1, kind: input, shape index: {}]   ;;  %s866_s2 = inlined_call_operand.vmem [shape: f32[2,8,1], index: 2, kind: input, shape index: {}]   ;;  %s867_s3 = inlined_call_operand.vmem [shape: f32[2,1,8], index: 3, kind: input, shape index: {}]   ;;  %s868_s4 = inlined_call_operand.vmem [shape: bf16[128,128], index: 4, kind: input, shape index: {}]   ;;  %s869_s5 = inlined_call_operand.vmem [shape: f32[1,128], index: 5, kind: input, shape index: {}]   ;;  %s870_s6 = inlined_call_operand.vmem [shape: f32[2,8,8], index: 6, kind: output, shape index: {}]  }
   0x1 LB: > { %s628_s22 = sadd.s32 4294967295, %s750_s21   ;;  %p632_p0 = scmp.ge.s32.totalorder %s750_s21, 1  ;;  %s750_s21 = sphi %s790_s21, %s16_s21  }
   0x2   : > { %p237_p1 = scmp.lt.s32.totalorder %s750_s21, 3 }
   0x4   : > { %p238_p2 = pnand %p632_p0, %p237_p1 }
   0x5   : > { %v728_v0 = vld [vmem:[%s868_s4] sm:$0xff] (!%p238_p2)   ;;  %v752_v1 = vmov (!%p238_p2), 0.0   ;;  %v729_v2 = vld [vmem:[%s868_s4 + $0x8] sm:$0xff] (!%p238_p2)   ;;  %vm753_vm0 = vmmov (!%p238_p2), 0   ;;  %v730_v3 = vld [vmem:[%s868_s4 + $0x10] sm:$0xff] (!%p238_p2)   ;;  %p276_p3 = scmp.lt.s32.totalorder (!%p238_p2), %s628_s22, 1 }
   0x6   : > { %241 = sbr.rel (%p238_p2) target bundleno = 796 (0x31c), region = 44  ;;  %689 = vmatprep.subr.bf16.mxu1 (!%p238_p2), %v752_v1  ;;  %669 = vmatprep.subr.bf16.mxu0 (!%p238_p2), %v752_v1  ;;  %v731_v4 = vld [vmem:[%s868_s4 + $0x18] sm:$0xff] (!%p238_p2)   ;;  %v732_v5 = vld [vmem:[%s868_s4 + $0x20] sm:$0xff] (!%p238_p2)   ;;  %v733_v6 = vld [vmem:[%s868_s4 + $0x28] sm:$0xff] (!%p238_p2)   ;;  %vm493_vm1 = vcmask (!%p238_p2), 64512   ;;  %v754_v38 = vmov (!%p238_p2), 0  }
   0x7   : > { %690 = vmatpush3.bf16.msra.mxu1 (!%p238_p2), %v728_v0  ;;  %670 = vmatpush3.bf16.msra.mxu0 (!%p238_p2), %v728_v0  ;;  %v734_v7 = vld [vmem:[%s868_s4 + $0x30] sm:$0xff] (!%p238_p2)   ;;  %v735_v8 = vld [vmem:[%s868_s4 + $0x38] sm:$0xff] (!%p238_p2)   ;;  %v637_v13 = vld [vmem:[%s869_s5] ss:$0 sm:$0xff] (!%p238_p2) }
   0x8   : > { %691 = vmatprep.subr.bf16.mxu1 (!%p238_p2), %v752_v1  ;;  %671 = vmatprep.subr.bf16.mxu0 (!%p238_p2), %v752_v1 }
   0x9   : > { %705 = vmatprep.mubr.msk.bf16.mxu1 (!%p238_p2), %vm753_vm0, %v752_v1  ;;  %685 = vmatprep.mubr.msk.bf16.mxu0 (!%p238_p2), %vm753_vm0, %v752_v1 }
   0xa   : > { %726 = vset.pattern.permute.xlu1 (!%p238_p2), %v754_v38  ;;  %727 = vset.pattern.permute.xlu0 (!%p238_p2), %v754_v38 }
   0xb   : > { %692 = vmatpush3.bf16.msra.mxu1 (!%p238_p2), %v729_v2  ;;  %672 = vmatpush3.bf16.msra.mxu0 (!%p238_p2), %v729_v2 }
   0xc   : > { %693 = vmatprep.subr.bf16.mxu1 (!%p238_p2), %v752_v1  ;;  %673 = vmatprep.subr.bf16.mxu0 (!%p238_p2), %v752_v1 }
   0xd   : > { %s872_s22 = smov (!%p276_p3, %s628_s22), 1 }
   0xe   : > { %s825_s11 = sshll.u32 %s872_s22, 3  ;;  %s290_s7 = scalar_lea.vmem %s867_s3, %s872_s22 }
   0xf   : > { %694 = vmatpush3.bf16.msra.mxu1 %v730_v3  ;;  %674 = vmatpush3.bf16.msra.mxu0 %v730_v3  ;;  %s283_s16 = scalar_lea.vmem %s865_s1, %s825_s11  ;;  %s279_s19 = scalar_lea.vmem %s864_s0, %s825_s11  ;;  %v646_v63 = vld [vmem:[%s290_s7] ss:$0 sm:$0xff] }
  0x10   : > { %695 = vmatprep.subr.bf16.mxu1 %v752_v1  ;;  %675 = vmatprep.subr.bf16.mxu0 %v752_v1  ;;  %v410_v9 = vld [vmem:[%s283_s16] sm:$0xff]  ;;  %s287_s28 = scalar_lea.vmem %s866_s2, %s825_s11  ;;  %s294_s10 = scalar_lea.vmem %s870_s6, %s825_s11 }
  0x11   : > { %v313_v10 = vld [vmem:[%s279_s19] sm:$0xff]  ;;  %v411_v11 = vpack.c.bf16 %v410_v9, %v410_v9 }
  0x12   : > { %v314_v12 = vpack.c.bf16 %v313_v10, %v313_v10  ;;  %v526_v39 = vld [vmem:[%s287_s28] sm:$0xff] }
  0x13   : > { %696 = vmatpush3.bf16.msra.mxu1 %v731_v4  ;;  %676 = vmatpush3.bf16.msra.mxu0 %v731_v4 }
  0x14   : > { %697 = vmatprep.subr.bf16.mxu1 %v752_v1  ;;  %677 = vmatprep.subr.bf16.mxu0 %v752_v1 }
  0x15   : > { %529 = vperm.xlu1 %726, %v526_v39  }
  0x17   : > { %698 = vmatpush3.bf16.msra.mxu1 %v732_v5  ;;  %678 = vmatpush3.bf16.msra.mxu0 %v732_v5 }
  0x18   : > { %699 = vmatprep.subr.bf16.mxu1 %v752_v1  ;;  %679 = vmatprep.subr.bf16.mxu0 %v752_v1 }
  0x1b   : > { %700 = vmatpush3.bf16.msra.mxu1 %v733_v6  ;;  %680 = vmatpush3.bf16.msra.mxu0 %v733_v6 }
  0x1c   : > { %701 = vmatprep.subr.bf16.mxu1 %v752_v1  ;;  %681 = vmatprep.subr.bf16.mxu0 %v752_v1 }
  0x1f   : > { %702 = vmatpush3.bf16.msra.mxu1 %v734_v7  ;;  %682 = vmatpush3.bf16.msra.mxu0 %v734_v7 }
  0x20   : > { %703 = vmatprep.subr.bf16.mxu1 %v752_v1  ;;  %683 = vmatprep.subr.bf16.mxu0 %v752_v1 }
  0x23   : > { %704 = vmatpush3.bf16.msra.mxu1 %v735_v8  ;;  %684 = vmatpush3.bf16.msra.mxu0 %v735_v8 }
  0x24   : > { %709 = vmatprep.subr.bf16.mxu0 %v752_v1 }
  0x26   : > { %706 = vmatmul.mubr.bf16.vlgmr.msra.gmra.mrb[0].mxu1 %v411_v11  ;;  %686 = vmatmul.mubr.bf16.vlgmr.msra.gmra.mrb[0].mxu0 %v314_v12 }
  0x27   : > { %711 = vmatprep.mubr.msk.bf16.mxu0 %vm753_vm0, %v752_v1 }
  0x94   : > { %v530_v61 = vpop.permute.xlu1 %529 }
  0xf9   : > { %v446_v14 = vpop.f32.mrb[0].mxu1  ;;  %v403_v15 = vpop.f32.mrb[0].mxu0 }
  0xfa   : > { %v447_v16 = vadd.f32 %v637_v13, %v446_v14  ;;  %v707_v17 = vpop.f32.mrb[1].mxu1  ;;  %v687_v18 = vpop.f32.mrb[1].mxu0  ;;  %v404_v24 = vadd.f32 %v637_v13, %v403_v15 }
  0xfb   : > { %v449_v19 = vpop.f32.mrb[2].mxu1  ;;  %v406_v20 = vpop.f32.mrb[2].mxu0 }
  0xfc   : > { %v452_v21 = vpack.c.bf16 %v447_v16, %v447_v16  ;;  %v708_v22 = vpop.f32.mrb[3].mxu1  ;;  %v688_v23 = vpop.f32.mrb[3].mxu0  ;;  %v409_v25 = vpack.c.bf16 %v404_v24, %v404_v24 }
  0xfe   : > { %710 = vmatpush3.bf16.xpose.msra.mxu0 %v452_v21 }
 0x105   : > { %712 = vmatmul.mubr.bf16.vlgmr.msra.gmra.mrb[4].mxu0 %v409_v25 }
 0x1d8   : > { %v487_v26 = vpop.f32.mrb[4].mxu0 }
 0x1d9   : > { %v713_v27 = vpop.f32.mrb[5].mxu0  ;;  %v494_v28 = vsel %vm493_vm1, %v487_v26, -inf }
 0x1da   : > { %495 = vmax.xlane.f32.xlu0 %v494_v28  ;;  %v506_v29 = vrot.slane %v494_v28, 4  ;;  %v490_v30 = vpop.f32.mrb[6].mxu0 }
 0x1db   : > { %v714_v31 = vpop.f32.mrb[7].mxu0 }
 0x1dc   : > { %v507_v32 = vmax.f32 %v494_v28, %v506_v29 }
 0x1de   : > { %v508_v33 = vrot.slane %v507_v32, 2 }
 0x1e0   : > { %v509_v34 = vmax.f32 %v507_v32, %v508_v33 }
 0x1e2   : > { %v510_v35 = vrot.slane %v509_v34, 1 }
 0x1e4   : > { %v511_v36 = vmax.f32 %v509_v34, %v510_v35 }
 0x1e6   : > { %v512_v37 = vsub.f32 %v487_v26, %v511_v36 }
 0x1e8   : > { %v513_v45 = vmul.f32 1.442695, %v512_v37 }
 0x267   : > { %v496_v40 = vpop.xlane.xlu0 %495 }
 0x268   : > { %v497_v41 = vsub.f32 %v487_v26, %v496_v40 }
 0x26a   : > { %v498_v42 = vmul.f32 1.442695, %v497_v41 }
 0x26c   : > { %736 = vpow2.f32 %v498_v42 }
 0x26d   : > { %738 = vpow2.f32 %v513_v45 }
 0x276   : > { %v737_v43 = vpop.eup %736 }
 0x277   : > { %v500_v44 = vsel %vm493_vm1, %v737_v43, 0.0  ;;  %v739_v46 = vpop.eup %738 }
 0x278   : > { %501 = vadd.xlane.f32.xlu0 %v500_v44  ;;  %v515_v47 = vsel %vm493_vm1, %v739_v46, 0.0 }
 0x279   : > { %v516_v48 = vrot.slane %v515_v47, 4 }
 0x27b   : > { %v517_v49 = vadd.f32 %v516_v48, %v515_v47 }
 0x27d   : > { %v518_v50 = vrot.slane %v517_v49, 2 }
 0x27f   : > { %v519_v51 = vadd.f32 %v518_v50, %v517_v49 }
 0x281   : > { %v520_v52 = vrot.slane %v519_v51, 1 }
 0x283   : > { %v521_v53 = vadd.f32 %v520_v52, %v519_v51 }
 0x285   : > { %740 = vlog2.f32 %v521_v53 }
 0x28f   : > { %v741_v55 = vpop.eup %740 }
 0x290   : > { %v523_v56 = vmul.f32 0.6931472, %v741_v55 }
 0x292   : > { %v524_v60 = vsub.f32 %v512_v37, %v523_v56 }
 0x305   : > { %v502_v54 = vpop.xlane.xlu0 %501 }
 0x306   : > { %742 = vlog2.f32 %v502_v54 }
 0x310   : > { %v743_v57 = vpop.eup %742 }
 0x311   : > { %v504_v58 = vmul.f32 0.6931472, %v743_v57 }
 0x313   : > { %v505_v59 = vsub.f32 %v497_v41, %v504_v58 }
 0x315   : > { %v525_v62 = vadd.f32 %v524_v60, %v505_v59 }
 0x317   : > { %v532_v0 = vadd.f32 %v530_v61, %v525_v62 }
 0x319   : > { %v540_v1 = vadd.f32 %v646_v63, %v532_v0 }
 0x31b   : > { %541 = vst.msk [vmem:[%s294_s10] sm:$0xff] %vm493_vm1, %v540_v1 }
 0x31c PF: > { %s16_s21 = sadd.s32 1, %s750_s21  }
 0x31d   : > { %p13_p4 = scmp.ge.s32.totalorder %s16_s21, 4  }
 0x31f   :  { %15 = sbr.rel (!%p13_p4) target bundleno = 1 (0x1), region = 83 }

// kernel: lighterglue_forward.2
= control target key start
LH: loop header
LB: loop body
LE: loop exit
PB: predicated region body
PF: predicated region fallthrough
CT: control target
= control target key end

     0   :  { %s6768_s6 = smov 1   ;;  %s6769_s10 = smov 2   ;;  %s8625_s0 = inlined_call_operand.smem [shape: u32[30], index: -1, kind: input, shape index: {}] }
   0x1   :  { %s6833_s5 = sld [smem:[%s8625_s0]]   ;;  %s6770_s14 = smov 3  }
   0x2   :  { %s6838_s9 = sld [smem:[%s8625_s0 + %s6768_s6]]   ;;  %s6771_s18 = smov 4  }
   0x3   :  { %s6843_s13 = sld [smem:[%s8625_s0 + %s6769_s10]]   ;;  %s6772_s22 = smov 5  }
   0x4   :  { %s6848_s17 = sld [smem:[%s8625_s0 + %s6770_s14]]   ;;  %s6773_s26 = smov 6  }
   0x5   :  { %s6853_s21 = sld [smem:[%s8625_s0 + %s6771_s18]]   ;;  %s6774_s30 = smov 7  }
   0x6   :  { %s6858_s25 = sld [smem:[%s8625_s0 + %s6772_s22]]   ;;  %s6775_s4 = smov 8  }
   0x7   :  { %8720 = sst [smem:[#allocation36_spill]] %s6833_s5  ;;  %s6776_s10 = smov 9  }
   0x8   :  { %8721 = sst [smem:[#allocation37_spill]] %s6838_s9  ;;  %s6777_s15 = smov 10  }
   0x9   :  { %8722 = sst [smem:[#allocation38_spill]] %s6843_s13  ;;  %s6778_s20 = smov 11  }
   0xa   :  { %8723 = sst [smem:[#allocation39_spill]] %s6848_s17  ;;  %s6780_s1 = smov 13  }
   0xb   :  { %8724 = sst [smem:[#allocation40_spill]] %s6853_s21  ;;  %s6781_s7 = smov 14  }
   0xc   :  { %8725 = sst [smem:[#allocation41_spill]] %s6858_s25  ;;  %s6783_s22 = smov 16  }
   0xd   :  { %s6863_s29 = sld [smem:[%s8625_s0 + %s6773_s26]]   ;;  %s6779_s26 = smov 12  }
   0xe   :  { %s6868_s3 = sld [smem:[%s8625_s0 + %s6774_s30]]   ;;  %s6784_s28 = smov 17  }
   0xf   :  { %s6873_s8 = sld [smem:[%s8625_s0 + %s6775_s4]]  }
  0x10   :  { %s6878_s14 = sld [smem:[%s8625_s0 + %s6776_s10]]  }
  0x11   :  { %s6883_s19 = sld [smem:[%s8625_s0 + %s6777_s15]]   ;;  %s6782_s15 = smov 15  }
  0x12   :  { %s6888_s24 = sld [smem:[%s8625_s0 + %s6778_s20]]  }
  0x13   :  { %8726 = sst [smem:[#allocation42_spill]] %s6863_s29 }
  0x14   :  { %8727 = sst [smem:[#allocation43_spill]] %s6868_s3 }
  0x15   :  { %8728 = sst [smem:[#allocation44_spill]] %s6873_s8 }
  0x16   :  { %8729 = sst [smem:[#allocation45_spill]] %s6878_s14 }
  0x17   :  { %8730 = sst [smem:[#allocation46_spill]] %s6883_s19 }
  0x18   :  { %8731 = sst [smem:[#allocation47_spill]] %s6888_s24 }
  0x19   :  { %s6893_s30 = sld [smem:[%s8625_s0 + %s6779_s26]]  }
  0x1a   :  { %s6898_s6 = sld [smem:[%s8625_s0 + %s6780_s1]]  }
  0x1b   :  { %s6903_s12 = sld [smem:[%s8625_s0 + %s6781_s7]]   ;;  %s6785_s7 = smov 18  }
  0x1c   :  { %s6908_s20 = sld [smem:[%s8625_s0 + %s6782_s15]]   ;;  %s6786_s15 = smov 19  }
  0x1d   :  { %s6913_s27 = sld [smem:[%s8625_s0 + %s6783_s22]]   ;;  %s6787_s22 = smov 20  }
  0x1e   :  { %s6918_s4 = sld [smem:[%s8625_s0 + %s6784_s28]]   ;;  %s6788_s28 = smov 21  }
  0x1f   :  { %8732 = sst [smem:[#allocation48_spill]] %s6893_s30 }
  0x20   :  { %8733 = sst [smem:[#allocation49_spill]] %s6898_s6 }
  0x21   :  { %8734 = sst [smem:[#allocation50_spill]] %s6903_s12 }
  0x22   :  { %8735 = sst [smem:[#allocation51_spill]] %s6908_s20 }
  0x23   :  { %8736 = sst [smem:[#allocation52_spill]] %s6913_s27 }
  0x24   :  { %8737 = sst [smem:[#allocation53_spill]] %s6918_s4 }
  0x25   :  { %s6923_s3 = sld [smem:[%s8625_s0 + %s6785_s7]]   ;;  %s6789_s7 = smov 22  }
  0x26   :  { %s6928_s8 = sld [smem:[%s8625_s0 + %s6786_s15]]   ;;  %s6790_s15 = smov 23  }
  0x27   :  { %s6933_s25 = sld [smem:[%s8625_s0 + %s6787_s22]]   ;;  %s6791_s22 = smov 24  }
  0x28   :  { %s6938_s21 = sld [smem:[%s8625_s0 + %s6788_s28]]   ;;  %s6792_s28 = smov 25  }
  0x29   :  { %s6948_s17 = sld [smem:[%s8625_s0 + %s6790_s15]]   ;;  %s6794_s15 = smov 27  }
  0x2a   :  { %s6953_s13 = sld [smem:[%s8625_s0 + %s6791_s22]]   ;;  %s6795_s22 = smov 28  }
  0x2b   :  { %8738 = sst [smem:[#allocation54_spill]] %s6923_s3 }
  0x2c   :  { %8739 = sst [smem:[#allocation55_spill]] %s6928_s8 }
  0x2d   :  { %8740 = sst [smem:[#allocation56_spill]] %s6933_s25 }
  0x2e   :  { %8741 = sst [smem:[#allocation57_spill]] %s6938_s21 }
  0x2f   :  { %s6943_s3 = sld [smem:[%s8625_s0 + %s6789_s7]]   ;;  %s6793_s7 = smov 26  }
  0x30   :  { %8743 = sst [smem:[#allocation59_spill]] %s6948_s17 }
  0x31   :  { %8744 = sst [smem:[#allocation60_spill]] %s6953_s13 }
  0x32   :  { %s6958_s21 = sld [smem:[%s8625_s0 + %s6792_s28]]   ;;  %s6796_s28 = smov 29  }
  0x33   :  { %s6963_s9 = sld [smem:[%s8625_s0 + %s6793_s7]]  }
  0x34   :  { %s6968_s17 = sld [smem:[%s8625_s0 + %s6794_s15]]  }
  0x35   :  { %8742 = sst [smem:[#allocation58_spill]] %s6943_s3 }
  0x36   :  { %s6973_s5 = sld [smem:[%s8625_s0 + %s6795_s22]]  }
  0x38   :  { %8745 = sst [smem:[#allocation61_spill]] %s6958_s21 }
  0x39   :  { %8746 = sst [smem:[#allocation62_spill]] %s6963_s9 }
  0x3a   :  { %8747 = sst [smem:[#allocation63_spill]] %s6968_s17 }
  0x3b   :  { %s6978_s21 = sld [smem:[%s8625_s0 + %s6796_s28]]  }
  0x3c   :  { %8748 = sst [smem:[#allocation64_spill]] %s6973_s5 }
  0x41   :  { %8749 = sst [smem:[#allocation65_spill]] %s6978_s21 }
  0x42   :  { %65 = vsyncpa [#allocation3], 0 }
  0x43   :  { %66 = vsyncpa [#allocation5], 0 }
  0x44   :  { %68 = vsyncpa [#allocation5 + $0x1], 0 }
  0x45   :  { %69 = vsyncpa [#allocation8], 0 }
  0x46   :  { %71 = vsyncpa [#allocation8 + $0x1], 0 }
  0x47   :  { %72 = vsyncpa [#allocation11], 0 }
  0x48   :  { %74 = vsyncpa [#allocation11 + $0x1], 0 }
  0x49   :  { %75 = vsyncpa [#allocation14], 0 }
  0x4a   :  { %77 = vsyncpa [#allocation14 + $0x1], 0 }
  0x4b   :  { %78 = vsyncpa [#allocation17], 0 }
  0x4c   :  { %80 = vsyncpa [#allocation17 + $0x1], 0 }
  0x4d   :  { %81 = vsyncpa [#allocation20], 0 }
  0x4e   :  { %83 = vsyncpa [#allocation20 + $0x1], 0 }
  0x4f   :  { %84 = vsyncpa [#allocation23], 0 }
  0x50   :  { %86 = vsyncpa [#allocation23 + $0x1], 0 }
  0x51   :  { %87 = vsyncpa [#allocation26], 0 }
  0x52   :  { %89 = vsyncpa [#allocation26 + $0x1], 0  ;;  %s6980_s7 = smov 0   ;;  %s6982_s0 = smov 0  }
  0x53   :  { %s6984_s10 = smov 0   ;;  %s6986_s11 = smov 0  }
  0x54   :  { %s6988_s15 = smov 0   ;;  %s6990_s16 = smov 0  }
  0x55   :  { %s6992_s18 = smov 0   ;;  %s6994_s22 = smov 0  }
  0x56 LB: > { %s8750_s30 = sld [smem:[#allocation48_spill]]  ;;  %s8751_s27 = sld [smem:[#allocation52_spill]]  ;;  %s6762_s18 = sphi %s6992_s18, %s8918_s18   ;;  %s6758_s16 = sphi %s6990_s16, %s8917_s16   ;;  %s6754_s15 = sphi %s6988_s15, %s8916_s15   ;;  %s6750_s11 = sphi %s6986_s11, %s8915_s11   ;;  %s6746_s10 = sphi %s6984_s10, %s8914_s10   ;;  %s6742_s0 = sphi %s6982_s0, %s8913_s0   ;;  %s6738_s7 = sphi %s6980_s7, %s8912_s7   ;;  %s6766_s22 = sphi %s6994_s22, %s95_s22  }
  0x57   : > { %s8752_s25 = sld [smem:[#allocation56_spill]]  ;;  %s8753_s19 = sld [smem:[#allocation46_spill]] }
  0x58   : > { %s8754_s13 = sld [smem:[#allocation60_spill]]  ;;  %s8755_s12 = sld [smem:[#allocation50_spill]] }
  0x59   : > { %s8756_s9 = sld [smem:[#allocation62_spill]]  ;;  %s8757_s8 = sld [smem:[#allocation55_spill]] }
  0x5a   : > { %s8758_s3 = sld [smem:[#allocation58_spill]]  ;;  %s8759_s20 = sld [smem:[#allocation51_spill]] }
  0x5b   : > { %s8760_s4 = sld [smem:[#allocation53_spill]]  ;;  %s8761_s6 = sld [smem:[#allocation49_spill]] }
  0x5c   : > { %s8762_s24 = sld [smem:[#allocation47_spill]]  ;;  %s8763_s14 = sld [smem:[#allocation45_spill]] }
  0x5d   : > { %s8764_s29 = sld [smem:[#allocation42_spill]]  ;;  %8766 = sst [smem:[#allocation67_spill]] %s6746_s10 }
  0x5e   : > { %8765 = sst [smem:[#allocation66_spill]] %s6742_s0  ;;  %s104_s26 = sadd.s32 1, %s6758_s16 }
  0x5f   : > { %8767 = sst [smem:[#allocation68_spill]] %s6750_s11  ;;  %p105_p0 = scmp.ge.s32.totalorder %s104_s26, 6 }
  0x60   : > { %8768 = sst [smem:[#allocation69_spill]] %s6754_s15  ;;  %s107_s28 = sadd.s32 1, %s6762_s18 }
  0x61   : > { %8769 = sst [smem:[#allocation70_spill]] %s6758_s16  ;;  %s338_s1 = sadd.s32 1, %s6746_s10 }
  0x62   : > { %8770 = sst [smem:[#allocation71_spill]] %s6762_s18  ;;  %p345_p1 = scmp.ne.s32.totalorder %s6746_s10, %s6742_s0 }
  0x63   : > { %8771 = sst [smem:[#allocation72_spill]] %s6766_s22  ;;  %s8920_s26 = smov (%p105_p0, %s104_s26), 0 }
  0x64   : > { %8772 = sst [smem:[#allocation73_spill]] %s8920_s26  ;;  %s8922_s28 = smov (!%p105_p0, %s107_s28), %s6762_s18 }
  0x65   : > { %s335_s2 = ssub.s32 %s6758_s16, %s8920_s26  ;;  %p346_p2 = scmp.eq.s32.totalorder %s6766_s22, 0 }
  0x66   : > { %p109_p3 = scmp.ge.s32.totalorder %s8922_s28, 2  ;;  %p336_p4 = scmp.eq.s32.totalorder %s335_s2, 0 }
  0x67   : > { %p7030_p5 = por %p346_p2, %p345_p1  ;;  %p351_p6 = scmp.ne.s32.totalorder %s6742_s0, %s6738_s7 }
  0x68   : > { %s8924_s28 = smov (%p109_p3, %s8922_s28), 0  ;;  %s8776_s5 = sadd.s32 4294967295, %s6766_s22  }
  0x69   : > { %s8773_s23 = scalar_select %p7030_p5, 1, 0 }
  0x6a   : > { %8774 = sst [smem:[#allocation74_spill]] %s8924_s28  ;;  %p7042_p7 = scmp.eq.s32.totalorder %s8776_s5, 0 }
  0x6b   : > { %s7038_s21 = scalar_select %p336_p4, %s6746_s10, %s338_s1  }
  0x6c   : > { %s8777_s17 = scalar_select %p7042_p7, 1, 0 }
  0x6d   : > { %8775 = sst [smem:[#allocation75_spill]] %s7038_s21  ;;  %p5181_p8 = scmp.ge.s32.totalorder %s6766_s22, 1 }
  0x6e   : > { %8778 = sst [smem:[#allocation76_spill]] %s8777_s17  ;;  %p882_p9 = scmp.lt.s32.totalorder %s6766_s22, 13 }
  0x6f   : > { %p7050_p10 = por %p7042_p7, %p351_p6  ;;  %s6797_s1 = smov [#allocation2]  }
  0x70   : > { %p7054_p11 = pnand %p5181_p8, %p882_p9  ;;  %s894_s28 = sshll.u32 %s6797_s1, 4  ;;  %s895_s28 = int_to_ptr.vmem [resolvable:$true] %s894_s28 }
  0x71   : > { %s8779_s2 = scalar_select %p7050_p10, 1, 0 }
  0x72   : > { %s8781_s7 = scalar_select %p7054_p11, 1, 0 }
  0x73   : > { %8780 = sst [smem:[#allocation77_spill]] %s8779_s2  ;;  %p5831_p12 = pneg %p7054_p11 }
  0x74   : > { %8782 = sst [smem:[#allocation78_spill]] %s8781_s7  ;;  %s6220_s26 = scalar_lea.hbm %s8764_s29, 512 }
  0x75   : > { %p7062_p13 = pnand %p5831_p12, %p7042_p7  ;;  %p6221_p0 = scmp.ne.s32.totalorder %s8764_s29, %s6220_s26 }
  0x76   : > { %p6227_p4 = scmp.lt.u32.totalorder %s6220_s26, %s8764_s29 }
  0x77   : > { %p6222_p1 = pneg %p7062_p13 }
  0x79   : > { %p6223_p2 = pnand %p6222_p1, %p6221_p0 }
  0x7b   : > { %p6224_p3 = pneg %p6223_p2 }
  0x7d   : > { %p6229_p6 = pnand %p6227_p4, %p6224_p3 }
  0x7f   : > { %6232 = shalt.err (!%p6229_p6)
}
  0x80   : > { %s6233_s18 = scalar_lea.vmem %s895_s28, 512  ;;  %p6241_p11 = scmp.lt.s32.totalorder %s895_s28, %s895_s28 }
  0x81   : > { %p6234_p8 = scmp.ne.s32.totalorder %s895_s28, %s6233_s18  ;;  %p6242_p5 = scmp.lt.s32.totalorder %s6233_s18, %s6233_s18 }
  0x83   : > { %p6236_p9 = pnand %p6234_p8, %p6222_p1  ;;  %p6243_p12 = por %p6242_p5, %p6241_p11 }
  0x85   : > { %p6237_p10 = pneg %p6236_p9 }
  0x87   : > { %p6244_p7 = pnand %p6243_p12, %p6237_p10 }
  0x89   : > { %6247 = shalt.err (!%p6244_p7)
}
  0x8a   : > { %s6798_s1 = smov 64   ;;  %s6799_s21 = smov 4  }
  0x8b   : > { %5834 = dma.hbm_to_vmem [thread:$0]  (!%p7062_p13), %s8764_s29, 512, %s895_s28, [#allocation3], %s6798_s1, %s6798_s1, %s6799_s21  }
  0x8c   : > { %p5183_p0 = scmp.ge.s32.totalorder %s6766_s22, 12 }
  0x8d   : > { %s7076_s18 = sand.u32 (!%p5183_p0), 1, %s6766_s22   ;;  %s7079_s26 = sand.u32 (!%p5183_p0), 1, %s6746_s10  }
  0x8e   : > { %907 = sbr.rel (%p5183_p0) target bundleno = 508 (0x1fc), region = 24  ;;  %s7084_s28 = sshll.u32 (!%p5183_p0), %s7079_s26, 7 }
  0x8f   : > { %s5793_s5 = smul.u32 (!%p5183_p0), 5, %s7079_s26  ;;  %s7087_s1 = sshll.u32 (!%p5183_p0), %s6758_s16, 11 }
  0x90   : > { %s5794_s21 = smul.u32 (!%p5183_p0), 80, %s6758_s16  ;;  %p8784_p7 = scmp.ne.s32.totalorder (!%p5183_p0), %s8773_s23, 0 }
  0x91   : > { %s965_s11 = scalar_lea.vmem (!%p5183_p0), [#allocation4], %s5793_s5  ;;  %s6252_s0 = scalar_lea.hbm (!%p5183_p0), %s8763_s14, 480 }
  0x92   : > { %s7090_s29 = scalar_lea.hbm (!%p5183_p0), %s8763_s14, %s5794_s21  ;;  %s973_s15 = sshll.u32 (!%p5183_p0), %s965_s11, 4  ;;  %s974_s15 = int_to_ptr.vmem [resolvable:$true] %s973_s15 }
  0x93   : > { %s6248_s10 = scalar_lea.hbm (!%p5183_p0), %s7090_s29, 80  ;;  %p6253_p13 = scmp.lt.u32.totalorder (!%p5183_p0), %s7090_s29, %s8763_s14 }
  0x94   : > { %p6249_p5 = scmp.ne.s32.totalorder (!%p5183_p0), %s7090_s29, %s6248_s10  ;;  %p6254_p1 = scmp.lt.u32.totalorder (!%p5183_p0), %s6252_s0, %s6248_s10 }
  0x95   : > { %p6256_p3 = scmp.lt.u32.totalorder %s6248_s10, %s7090_s29 }
  0x96   : > { %p6250_p10 = pnand %p6249_p5, %p8784_p7  ;;  %p6255_p2 = por %p6254_p1, %p6253_p13 }
  0x98   : > { %p6251_p11 = pneg %p6250_p10  ;;  %p6257_p4 = por %p6256_p3, %p6255_p2 }
  0x9a   : > { %p6258_p6 = pnand %p6257_p4, %p6251_p11 }
  0x9c   : > { %6261 = shalt.err (!%p6258_p6)
}
  0x9d   : > { %s6262_s21 = scalar_lea.vmem %s974_s15, 80  ;;  %s6800_s11 = smov [#allocation4]  }
  0x9e   : > { %p6263_p8 = scmp.ne.s32.totalorder %s974_s15, %s6262_s21  ;;  %s6266_s5 = sshll.u32 %s6800_s11, 4  ;;  %s6267_s5 = int_to_ptr.vmem [resolvable:$false] %s6266_s5 }
  0x9f   : > { %s6268_s2 = scalar_lea.vmem %s6267_s5, 160  ;;  %p6269_p0 = scmp.lt.s32.totalorder %s974_s15, %s6267_s5 }
  0xa0   : > { %p6264_p9 = pnand %p6263_p8, %p8784_p7  ;;  %p6270_p5 = scmp.lt.s32.totalorder %s6268_s2, %s6262_s21 }
  0xa2   : > { %p6265_p12 = pneg %p6264_p9  ;;  %p6271_p10 = por %p6270_p5, %p6269_p0 }
  0xa4   : > { %p6272_p1 = pnand %p6271_p10, %p6265_p12 }
  0xa6   : > { %6275 = shalt.err (!%p6272_p1)
}
  0xa7   : > { %s8785_s0 = scalar_lea.sflag [#allocation5], %s7076_s18  ;;  %s7110_s10 = scalar_lea.hbm %s8762_s24, %s7087_s1 }
  0xa8   : > { %5799 = dma.hbm_to_vmem [thread:$0]  (%p8784_p7), %s7090_s29, 80, %s974_s15, %s8785_s0  }
  0xa9   : > { %s1005_s2 = scalar_lea.vmem [#allocation7], %s7084_s28  ;;  %s7114_s11 = sshll.u32 %s7079_s26, 1 }
  0xaa   : > { %s1012_s21 = sshll.u32 %s1005_s2, 4  ;;  %s7119_s5 = sshll.u32 %s6758_s16, 5  ;;  %s7116_s21 = int_to_ptr.vmem [resolvable:$true] %s1012_s21 }
  0xab   : > { %s6276_s22 = scalar_lea.hbm %s7110_s10, 2048  ;;  %s6280_s29 = scalar_lea.hbm %s8762_s24, 12288 }
  0xac   : > { %p6277_p11 = scmp.ne.s32.totalorder %s7110_s10, %s6276_s22  ;;  %p6281_p3 = scmp.lt.u32.totalorder %s7110_s10, %s8762_s24 }
  0xad   : > { %p6282_p4 = scmp.lt.u32.totalorder %s6280_s29, %s6276_s22  ;;  %p6284_p8 = scmp.lt.u32.totalorder %s6276_s22, %s7110_s10 }
  0xae   : > { %p6278_p13 = pnand %p6277_p11, %p8784_p7 }
  0xaf   : > { %p6283_p6 = por %p6282_p4, %p6281_p3 }
  0xb0   : > { %p6279_p2 = pneg %p6278_p13 }
  0xb1   : > { %p6285_p9 = por %p6284_p8, %p6283_p6 }
  0xb3   : > { %p6286_p12 = pnand %p6285_p9, %p6279_p2 }
  0xb5   : > { %6289 = shalt.err (!%p6286_p12)
}
  0xb6   : > { %s6290_s15 = scalar_lea.vmem %s7116_s21, 2048  ;;  %s6801_s0 = smov [#allocation7]  }
  0xb7   : > { %p6291_p0 = scmp.ne.s32.totalorder %s7116_s21, %s6290_s15  ;;  %s6294_s2 = sshll.u32 %s6801_s0, 4  ;;  %s6295_s2 = int_to_ptr.vmem [resolvable:$false] %s6294_s2 }
  0xb8   : > { %s6296_s14 = scalar_lea.vmem %s6295_s2, 4096  ;;  %p6297_p1 = scmp.lt.s32.totalorder %s7116_s21, %s6295_s2 }
  0xb9   : > { %p6292_p5 = pnand %p6291_p0, %p8784_p7  ;;  %p6298_p11 = scmp.lt.s32.totalorder %s6296_s14, %s6290_s15 }
  0xbb   : > { %p6293_p10 = pneg %p6292_p5  ;;  %p6299_p13 = por %p6298_p11, %p6297_p1 }
  0xbd   : > { %p6300_p3 = pnand %p6299_p13, %p6293_p10 }
  0xbf   : > { %6303 = shalt.err (!%p6300_p3)
}
  0xc0   : > { %s8648_s22 = smov 128   ;;  %s8650_s29 = smov 8  }
  0xc1   : > { %s8786_s14 = scalar_lea.sflag [#allocation8], %s7076_s18  ;;  %s7146_s15 = scalar_lea.hbm %s8761_s6, %s7119_s5 }
  0xc2   : > { %5801 = dma.hbm_to_vmem [thread:$0]  (%p8784_p7), %s7110_s10, 2048, %s7116_s21, %s8786_s14, %s8648_s22, %s8648_s22, %s8650_s29  }
  0xc3   : > { %s1045_s0 = scalar_lea.vmem [#allocation10], %s7114_s11  ;;  %s8647_s24 = scalar_lea.sflag [#allocation11], %s7076_s18 }
  0xc4   : > { %s1053_s2 = sshll.u32 %s1045_s0, 4  ;;  %s6304_s17 = scalar_lea.hbm %s7146_s15, 32  ;;  %s1054_s2 = int_to_ptr.vmem [resolvable:$true] %s1053_s2 }
  0xc5   : > { %p6305_p2 = scmp.ne.s32.totalorder %s7146_s15, %s6304_s17  ;;  %s6308_s7 = scalar_lea.hbm %s8761_s6, 192 }
  0xc6   : > { %p6309_p8 = scmp.lt.u32.totalorder %s7146_s15, %s8761_s6  ;;  %p6310_p9 = scmp.lt.u32.totalorder %s6308_s7, %s6304_s17 }
  0xc7   : > { %p6306_p4 = pnand %p6305_p2, %p8784_p7  ;;  %p6312_p0 = scmp.lt.u32.totalorder %s6304_s17, %s7146_s15 }
  0xc8   : > { %p6311_p12 = por %p6310_p9, %p6309_p8 }
  0xc9   : > { %p6307_p6 = pneg %p6306_p4 }
  0xca   : > { %p6313_p5 = por %p6312_p0, %p6311_p12 }
  0xcc   : > { %p6314_p10 = pnand %p6313_p5, %p6307_p6 }
  0xce   : > { %6317 = shalt.err (!%p6314_p10)
}
  0xcf   : > { %s6318_s10 = scalar_lea.vmem %s1054_s2, 32  ;;  %s6804_s21 = smov [#allocation10]  }
  0xd0   : > { %p6319_p1 = scmp.ne.s32.totalorder %s1054_s2, %s6318_s10  ;;  %s6322_s14 = sshll.u32 %s6804_s21, 4  ;;  %s6323_s14 = int_to_ptr.vmem [resolvable:$false] %s6322_s14 }
  0xd1   : > { %s6324_s0 = scalar_lea.vmem %s6323_s14, 64  ;;  %p6325_p3 = scmp.lt.s32.totalorder %s1054_s2, %s6323_s14 }
  0xd2   : > { %p6320_p11 = pnand %p6319_p1, %p8784_p7  ;;  %p6326_p2 = scmp.lt.s32.totalorder %s6324_s0, %s6318_s10 }
  0xd4   : > { %p6321_p13 = pneg %p6320_p11  ;;  %p6327_p4 = por %p6326_p2, %p6325_p3 }
  0xd6   : > { %p6328_p8 = pnand %p6327_p4, %p6321_p13 }
  0xd8   : > { %6331 = shalt.err (!%p6328_p8)
}
  0xd9   : > { %5803 = dma.hbm_to_vmem [thread:$0]  (%p8784_p7), %s7146_s15, 32, %s1054_s2, %s8647_s24  }
  0xda   : > { %s7167_s17 = scalar_lea.hbm %s8759_s20, %s7087_s1  ;;  %s1083_s7 = scalar_lea.vmem [#allocation13], %s7084_s28 }
  0xdb   : > { %s1090_s10 = sshll.u32 %s1083_s7, 4  ;;  %s8653_s21 = scalar_lea.sflag [#allocation14], %s7076_s18  ;;  %s7170_s10 = int_to_ptr.vmem [resolvable:$true] %s1090_s10 }
  0xdc   : > { %s6332_s14 = scalar_lea.hbm %s7167_s17, 2048  ;;  %s6336_s0 = scalar_lea.hbm %s8759_s20, 12288 }
  0xdd   : > { %p6333_p6 = scmp.ne.s32.totalorder %s7167_s17, %s6332_s14  ;;  %p6337_p0 = scmp.lt.u32.totalorder %s7167_s17, %s8759_s20 }
  0xde   : > { %p6338_p5 = scmp.lt.u32.totalorder %s6336_s0, %s6332_s14  ;;  %p6340_p1 = scmp.lt.u32.totalorder %s6332_s14, %s7167_s17 }
  0xdf   : > { %p6334_p9 = pnand %p6333_p6, %p8784_p7 }
  0xe0   : > { %p6339_p10 = por %p6338_p5, %p6337_p0 }
  0xe1   : > { %p6335_p12 = pneg %p6334_p9 }
  0xe2   : > { %p6341_p11 = por %p6340_p1, %p6339_p10 }
  0xe4   : > { %p6342_p13 = pnand %p6341_p11, %p6335_p12 }
  0xe6   : > { %6345 = shalt.err (!%p6342_p13)
}
  0xe7   : > { %s6346_s15 = scalar_lea.vmem %s7170_s10, 2048  ;;  %s6805_s2 = smov [#allocation13]  }
  0xe8   : > { %p6347_p3 = scmp.ne.s32.totalorder %s7170_s10, %s6346_s15  ;;  %s6350_s7 = sshll.u32 %s6805_s2, 4  ;;  %s6351_s7 = int_to_ptr.vmem [resolvable:$false] %s6350_s7 }
  0xe9   : > { %s6352_s24 = scalar_lea.vmem %s6351_s7, 4096  ;;  %p6353_p8 = scmp.lt.s32.totalorder %s7170_s10, %s6351_s7 }
  0xea   : > { %p6348_p2 = pnand %p6347_p3, %p8784_p7  ;;  %p6354_p6 = scmp.lt.s32.totalorder %s6352_s24, %s6346_s15 }
  0xec   : > { %p6349_p4 = pneg %p6348_p2  ;;  %p6355_p9 = por %p6354_p6, %p6353_p8 }
  0xee   : > { %p6356_p0 = pnand %p6355_p9, %p6349_p4 }
  0xf0   : > { %6359 = shalt.err (!%p6356_p0)
}
  0xf1   : > { %s8658_s14 = smov 64   ;;  %s8662_s0 = smov 4  }
  0xf2   : > { %5805 = dma.hbm_to_vmem [thread:$0]  (%p8784_p7), %s7167_s17, 2048, %s7170_s10, %s8653_s21, %s8658_s14, %s8658_s14, %s8662_s0  }
  0xf3   : > { %s8654_s24 = sshll.u32 %s7079_s26, 6  ;;  %s5426_s15 = sshll.u32 %s6758_s16, 10 }
  0xf4   : > { %s7200_s2 = scalar_lea.hbm %s8760_s4, %s5426_s15  ;;  %s1121_s7 = scalar_lea.vmem [#allocation16], %s8654_s24 }
  0xf5   : > { %s1128_s22 = sshll.u32 %s1121_s7, 4  ;;  %s8657_s29 = scalar_lea.sflag [#allocation17], %s7076_s18  ;;  %s7204_s22 = int_to_ptr.vmem [resolvable:$true] %s1128_s22 }
  0xf6   : > { %s6360_s6 = scalar_lea.hbm %s7200_s2, 1024  ;;  %s6364_s17 = scalar_lea.hbm %s8760_s4, 6144 }
  0xf7   : > { %p6361_p12 = scmp.ne.s32.totalorder %s7200_s2, %s6360_s6  ;;  %p6365_p1 = scmp.lt.u32.totalorder %s7200_s2, %s8760_s4 }
  0xf8   : > { %p6366_p11 = scmp.lt.u32.totalorder %s6364_s17, %s6360_s6  ;;  %p6368_p3 = scmp.lt.u32.totalorder %s6360_s6, %s7200_s2 }
  0xf9   : > { %p6362_p5 = pnand %p6361_p12, %p8784_p7 }
  0xfa   : > { %p6367_p13 = por %p6366_p11, %p6365_p1 }
  0xfb   : > { %p6363_p10 = pneg %p6362_p5 }
  0xfc   : > { %p6369_p2 = por %p6368_p3, %p6367_p13 }
  0xfe   : > { %p6370_p4 = pnand %p6369_p2, %p6363_p10 }
 0x100   : > { %6373 = shalt.err (!%p6370_p4)
}
 0x101   : > { %s6374_s10 = scalar_lea.vmem %s7204_s22, 1024  ;;  %s6808_s7 = smov [#allocation16]  }
 0x102   : > { %p6375_p8 = scmp.ne.s32.totalorder %s7204_s22, %s6374_s10  ;;  %s6378_s21 = sshll.u32 %s6808_s7, 4  ;;  %s6379_s21 = int_to_ptr.vmem [resolvable:$false] %s6378_s21 }
 0x103   : > { %s6380_s24 = scalar_lea.vmem %s6379_s21, 2048  ;;  %p6381_p0 = scmp.lt.s32.totalorder %s7204_s22, %s6379_s21 }
 0x104   : > { %p6376_p6 = pnand %p6375_p8, %p8784_p7  ;;  %p6382_p12 = scmp.lt.s32.totalorder %s6380_s24, %s6374_s10 }
 0x106   : > { %p6377_p9 = pneg %p6376_p6  ;;  %p6383_p5 = por %p6382_p12, %p6381_p0 }
 0x108   : > { %p6384_p1 = pnand %p6383_p5, %p6377_p9 }
 0x10a   : > { %6387 = shalt.err (!%p6384_p1)
}
 0x10b   : > { %5807 = dma.hbm_to_vmem [thread:$0]  (%p8784_p7), %s7200_s2, 1024, %s7204_s22, %s8657_s29, %s8658_s14, %s8658_s14, %s8662_s0  }
 0x10c   : > { %s7232_s6 = scalar_lea.hbm %s8757_s8, %s5426_s15  ;;  %s8787_s21 = sshll.u32 %s7079_s26, 6 }
 0x10d   : > { %s7236_s24 = scalar_lea.vmem [#allocation18], %s8787_s21  ;;  %s5203_s10 = sshll.u32 %s6758_s16, 4 }
 0x10e   : > { %s1155_s17 = sshll.u32 %s7236_s24, 4  ;;  %s7243_s7 = scalar_lea.hbm %s8752_s25, %s5203_s10  ;;  %s7360_s17 = int_to_ptr.vmem [resolvable:$true] %s1155_s17 }
 0x10f   : > { %s1168_s4 = scalar_lea.vmem [#allocation19], %s7079_s26  ;;  %s8660_s22 = scalar_lea.sflag [#allocation20], %s7076_s18 }
 0x110   : > { %s1175_s20 = sshll.u32 %s1168_s4, 4  ;;  %s6388_s2 = scalar_lea.hbm %s7243_s7, 16  ;;  %s1176_s20 = int_to_ptr.vmem [resolvable:$true] %s1175_s20 }
 0x111   : > { %p6389_p10 = scmp.ne.s32.totalorder %s7243_s7, %s6388_s2  ;;  %s6392_s15 = scalar_lea.hbm %s8752_s25, 96 }
 0x112   : > { %p6393_p3 = scmp.lt.u32.totalorder %s7243_s7, %s8752_s25  ;;  %p6394_p2 = scmp.lt.u32.totalorder %s6392_s15, %s6388_s2 }
 0x113   : > { %p6390_p11 = pnand %p6389_p10, %p8784_p7  ;;  %p6396_p8 = scmp.lt.u32.totalorder %s6388_s2, %s7243_s7 }
 0x114   : > { %p6395_p4 = por %p6394_p2, %p6393_p3 }
 0x115   : > { %p6391_p13 = pneg %p6390_p11 }
 0x116   : > { %p6397_p6 = por %p6396_p8, %p6395_p4 }
 0x118   : > { %p6398_p9 = pnand %p6397_p6, %p6391_p13 }
 0x11a   : > { %6401 = shalt.err (!%p6398_p9)
}
 0x11b   : > { %s6402_s21 = scalar_lea.vmem %s1176_s20, 16  ;;  %s6809_s4 = smov [#allocation19]  }
 0x11c   : > { %p6403_p0 = scmp.ne.s32.totalorder %s1176_s20, %s6402_s21  ;;  %s6406_s29 = sshll.u32 %s6809_s4, 4  ;;  %s6407_s29 = int_to_ptr.vmem [resolvable:$false] %s6406_s29 }
 0x11d   : > { %s6408_s14 = scalar_lea.vmem %s6407_s29, 32  ;;  %p6409_p1 = scmp.lt.s32.totalorder %s1176_s20, %s6407_s29 }
 0x11e   : > { %p6404_p12 = pnand %p6403_p0, %p8784_p7  ;;  %p6410_p10 = scmp.lt.s32.totalorder %s6408_s14, %s6402_s21 }
 0x120   : > { %p6405_p5 = pneg %p6404_p12  ;;  %p6411_p11 = por %p6410_p10, %p6409_p1 }
 0x122   : > { %p6412_p2 = pnand %p6411_p11, %p6405_p5 }
 0x124   : > { %6415 = shalt.err (!%p6412_p2)
}
 0x125   : > { %5809 = dma.hbm_to_vmem [thread:$0]  (%p8784_p7), %s7243_s7, 16, %s1176_s20, %s8660_s22  }
 0x126   : > { %s7264_s2 = scalar_lea.hbm %s8754_s13, %s7119_s5  ;;  %s1222_s29 = scalar_lea.vmem [#allocation22], %s7114_s11 }
 0x127   : > { %s1230_s14 = sshll.u32 %s1222_s29, 4  ;;  %s8661_s15 = scalar_lea.sflag [#allocation23], %s7076_s18  ;;  %s1231_s14 = int_to_ptr.vmem [resolvable:$true] %s1230_s14 }
 0x128   : > { %s6416_s21 = scalar_lea.hbm %s7264_s2, 32  ;;  %s6420_s4 = scalar_lea.hbm %s8754_s13, 192 }
 0x129   : > { %p6417_p13 = scmp.ne.s32.totalorder %s7264_s2, %s6416_s21  ;;  %p6421_p8 = scmp.lt.u32.totalorder %s7264_s2, %s8754_s13 }
 0x12a   : > { %p6422_p6 = scmp.lt.u32.totalorder %s6420_s4, %s6416_s21  ;;  %p6424_p0 = scmp.lt.u32.totalorder %s6416_s21, %s7264_s2 }
 0x12b   : > { %p6418_p3 = pnand %p6417_p13, %p8784_p7 }
 0x12c   : > { %p6423_p9 = por %p6422_p6, %p6421_p8 }
 0x12d   : > { %p6419_p4 = pneg %p6418_p3 }
 0x12e   : > { %p6425_p12 = por %p6424_p0, %p6423_p9 }
 0x130   : > { %p6426_p5 = pnand %p6425_p12, %p6419_p4 }
 0x132   : > { %6429 = shalt.err (!%p6426_p5)
}
 0x133   : > { %s6430_s20 = scalar_lea.vmem %s1231_s14, 32  ;;  %s6810_s7 = smov [#allocation22]  }
 0x134   : > { %p6431_p1 = scmp.ne.s32.totalorder %s1231_s14, %s6430_s20  ;;  %s6434_s29 = sshll.u32 %s6810_s7, 4  ;;  %s6435_s29 = int_to_ptr.vmem [resolvable:$false] %s6434_s29 }
 0x135   : > { %s6436_s22 = scalar_lea.vmem %s6435_s29, 64  ;;  %p6437_p2 = scmp.lt.s32.totalorder %s1231_s14, %s6435_s29 }
 0x136   : > { %p6432_p10 = pnand %p6431_p1, %p8784_p7  ;;  %p6438_p13 = scmp.lt.s32.totalorder %s6436_s22, %s6430_s20 }
 0x138   : > { %p6433_p11 = pneg %p6432_p10  ;;  %p6439_p3 = por %p6438_p13, %p6437_p2 }
 0x13a   : > { %p6440_p6 = pnand %p6439_p3, %p6433_p11 }
 0x13c   : > { %6443 = shalt.err (!%p6440_p6)
}
 0x13d   : > { %5811 = dma.hbm_to_vmem [thread:$0]  (%p8784_p7), %s7264_s2, 32, %s1231_s14, %s8661_s15  }
 0x13e   : > { %s7285_s21 = scalar_lea.hbm %s8753_s19, %s7087_s1  ;;  %s984_s22 = scalar_lea.vmem [#allocation6], %s7084_s28 }
 0x13f   : > { %s991_s4 = sshll.u32 %s984_s22, 4  ;;  %s6444_s20 = scalar_lea.hbm %s7285_s21, 2048  ;;  %s7288_s4 = int_to_ptr.vmem [resolvable:$true] %s991_s4 }
 0x140   : > { %p6445_p4 = scmp.ne.s32.totalorder %s7285_s21, %s6444_s20  ;;  %s6448_s7 = scalar_lea.hbm %s8753_s19, 12288 }
 0x141   : > { %p6449_p0 = scmp.lt.u32.totalorder %s7285_s21, %s8753_s19  ;;  %p6450_p12 = scmp.lt.u32.totalorder %s6448_s7, %s6444_s20 }
 0x142   : > { %p6446_p8 = pnand %p6445_p4, %p8784_p7  ;;  %p6452_p1 = scmp.lt.u32.totalorder %s6444_s20, %s7285_s21 }
 0x143   : > { %p6451_p5 = por %p6450_p12, %p6449_p0 }
 0x144   : > { %p6447_p9 = pneg %p6446_p8 }
 0x145   : > { %p6453_p10 = por %p6452_p1, %p6451_p5 }
 0x147   : > { %p6454_p11 = pnand %p6453_p10, %p6447_p9 }
 0x149   : > { %6457 = shalt.err (!%p6454_p11)
}
 0x14a   : > { %s6458_s2 = scalar_lea.vmem %s7288_s4, 2048  ;;  %s6811_s14 = smov [#allocation6]  }
 0x14b   : > { %p6459_p2 = scmp.ne.s32.totalorder %s7288_s4, %s6458_s2  ;;  %s6462_s29 = sshll.u32 %s6811_s14, 4  ;;  %s6463_s29 = int_to_ptr.vmem [resolvable:$false] %s6462_s29 }
 0x14c   : > { %s6464_s22 = scalar_lea.vmem %s6463_s29, 4096  ;;  %p6465_p6 = scmp.lt.s32.totalorder %s7288_s4, %s6463_s29 }
 0x14d   : > { %p6460_p13 = pnand %p6459_p2, %p8784_p7  ;;  %p6466_p4 = scmp.lt.s32.totalorder %s6464_s22, %s6458_s2 }
 0x14f   : > { %p6461_p3 = pneg %p6460_p13  ;;  %p6467_p8 = por %p6466_p4, %p6465_p6 }
 0x151   : > { %p6468_p0 = pnand %p6467_p8, %p6461_p3 }
 0x153   : > { %6471 = shalt.err (!%p6468_p0)
}
 0x154   : > { %s8788_s20 = smov 8   ;;  %s8789_s7 = smov 128  }
 0x155   : > { %s8790_s15 = scalar_lea.sflag [#allocation5], %s7076_s18  ;;  %s7314_s2 = scalar_lea.hbm %s8750_s30, %s7119_s5 }
 0x156   : > { %5800 = dma.hbm_to_vmem [thread:$0]  (%p8784_p7), %s7285_s21, 2048, %s7288_s4, %s8790_s15, %s8789_s7, %s8789_s7, %s8788_s20  }
 0x157   : > { %s1026_s14 = scalar_lea.vmem [#allocation9], %s7114_s11  ;;  %s6472_s22 = scalar_lea.hbm %s7314_s2, 32 }
 0x158   : > { %s1034_s29 = sshll.u32 %s1026_s14, 4  ;;  %p6473_p9 = scmp.ne.s32.totalorder %s7314_s2, %s6472_s22  ;;  %s1035_s29 = int_to_ptr.vmem [resolvable:$true] %s1034_s29 }
 0x159   : > { %s6476_s0 = scalar_lea.hbm %s8750_s30, 192  ;;  %p6477_p1 = scmp.lt.u32.totalorder %s7314_s2, %s8750_s30 }
 0x15a   : > { %p6474_p12 = pnand %p6473_p9, %p8784_p7  ;;  %p6478_p10 = scmp.lt.u32.totalorder %s6476_s0, %s6472_s22 }
 0x15b   : > { %p6480_p2 = scmp.lt.u32.totalorder %s6472_s22, %s7314_s2 }
 0x15c   : > { %p6475_p5 = pneg %p6474_p12  ;;  %p6479_p11 = por %p6478_p10, %p6477_p1 }
 0x15e   : > { %p6481_p13 = por %p6480_p2, %p6479_p11 }
 0x160   : > { %p6482_p3 = pnand %p6481_p13, %p6475_p5 }
 0x162   : > { %6485 = shalt.err (!%p6482_p3)
}
 0x163   : > { %s6486_s15 = scalar_lea.vmem %s1035_s29, 32  ;;  %s6812_s21 = smov [#allocation9]  }
 0x164   : > { %p6487_p6 = scmp.ne.s32.totalorder %s1035_s29, %s6486_s15  ;;  %s6490_s4 = sshll.u32 %s6812_s21, 4  ;;  %s6491_s4 = int_to_ptr.vmem [resolvable:$false] %s6490_s4 }
 0x165   : > { %s6492_s14 = scalar_lea.vmem %s6491_s4, 64  ;;  %p6493_p0 = scmp.lt.s32.totalorder %s1035_s29, %s6491_s4 }
 0x166   : > { %p6488_p4 = pnand %p6487_p6, %p8784_p7  ;;  %p6494_p9 = scmp.lt.s32.totalorder %s6492_s14, %s6486_s15 }
 0x168   : > { %p6489_p8 = pneg %p6488_p4  ;;  %p6495_p12 = por %p6494_p9, %p6493_p0 }
 0x16a   : > { %p6496_p1 = pnand %p6495_p12, %p6489_p8 }
 0x16c   : > { %6499 = shalt.err (!%p6496_p1)
}
 0x16d   : > { %s8791_s0 = scalar_lea.sflag [#allocation8], %s7076_s18  ;;  %s7334_s22 = scalar_lea.hbm %s8755_s12, %s7119_s5 }
 0x16e   : > { %5802 = dma.hbm_to_vmem [thread:$0]  (%p8784_p7), %s7314_s2, 32, %s1035_s29, %s8791_s0  }
 0x16f   : > { %s1064_s15 = scalar_lea.vmem [#allocation12], %s7114_s11  ;;  %s6500_s4 = scalar_lea.hbm %s7334_s22, 32 }
 0x170   : > { %s1072_s21 = sshll.u32 %s1064_s15, 4  ;;  %p6501_p5 = scmp.ne.s32.totalorder %s7334_s22, %s6500_s4  ;;  %s1073_s21 = int_to_ptr.vmem [resolvable:$true] %s1072_s21 }
 0x171   : > { %s6504_s14 = scalar_lea.hbm %s8755_s12, 192  ;;  %p6505_p2 = scmp.lt.u32.totalorder %s7334_s22, %s8755_s12 }
 0x172   : > { %p6502_p10 = pnand %p6501_p5, %p8784_p7  ;;  %p6506_p13 = scmp.lt.u32.totalorder %s6504_s14, %s6500_s4 }
 0x173   : > { %p6508_p6 = scmp.lt.u32.totalorder %s6500_s4, %s7334_s22 }
 0x174   : > { %p6503_p11 = pneg %p6502_p10  ;;  %p6507_p3 = por %p6506_p13, %p6505_p2 }
 0x176   : > { %p6509_p4 = por %p6508_p6, %p6507_p3 }
 0x178   : > { %p6510_p8 = pnand %p6509_p4, %p6503_p11 }
 0x17a   : > { %6513 = shalt.err (!%p6510_p8)
}
 0x17b   : > { %s6514_s2 = scalar_lea.vmem %s1073_s21, 32  ;;  %s6813_s29 = smov [#allocation12]  }
 0x17c   : > { %p6515_p0 = scmp.ne.s32.totalorder %s1073_s21, %s6514_s2  ;;  %s6518_s0 = sshll.u32 %s6813_s29, 4  ;;  %s6519_s0 = int_to_ptr.vmem [resolvable:$false] %s6518_s0 }
 0x17d   : > { %s6520_s15 = scalar_lea.vmem %s6519_s0, 64  ;;  %p6521_p1 = scmp.lt.s32.totalorder %s1073_s21, %s6519_s0 }
 0x17e   : > { %p6516_p9 = pnand %p6515_p0, %p8784_p7  ;;  %p6522_p5 = scmp.lt.s32.totalorder %s6520_s15, %s6514_s2 }
 0x180   : > { %p6517_p12 = pneg %p6516_p9  ;;  %p6523_p10 = por %p6522_p5, %p6521_p1 }
 0x182   : > { %p6524_p2 = pnand %p6523_p10, %p6517_p12 }
 0x184   : > { %6527 = shalt.err (!%p6524_p2)
}
 0x185   : > { %s8792_s4 = scalar_lea.sflag [#allocation11], %s7076_s18  ;;  %s7355_s14 = scalar_lea.hbm %s8751_s27, %s5203_s10 }
 0x186   : > { %5804 = dma.hbm_to_vmem [thread:$0]  (%p8784_p7), %s7334_s22, 32, %s1073_s21, %s8792_s4  }
 0x187   : > { %s1103_s2 = scalar_lea.vmem [#allocation15], %s7079_s26  ;;  %s6528_s0 = scalar_lea.hbm %s7355_s14, 16 }
 0x188   : > { %s1110_s29 = sshll.u32 %s1103_s2, 4  ;;  %p6529_p11 = scmp.ne.s32.totalorder %s7355_s14, %s6528_s0  ;;  %s1111_s29 = int_to_ptr.vmem [resolvable:$true] %s1110_s29 }
 0x189   : > { %s6532_s15 = scalar_lea.hbm %s8751_s27, 96  ;;  %p6533_p6 = scmp.lt.u32.totalorder %s7355_s14, %s8751_s27 }
 0x18a   : > { %p6530_p13 = pnand %p6529_p11, %p8784_p7  ;;  %p6534_p4 = scmp.lt.u32.totalorder %s6532_s15, %s6528_s0 }
 0x18b   : > { %p6536_p0 = scmp.lt.u32.totalorder %s6528_s0, %s7355_s14 }
 0x18c   : > { %p6531_p3 = pneg %p6530_p13  ;;  %p6535_p8 = por %p6534_p4, %p6533_p6 }
 0x18e   : > { %p6537_p9 = por %p6536_p0, %p6535_p8 }
 0x190   : > { %p6538_p12 = pnand %p6537_p9, %p6531_p3 }
 0x192   : > { %6541 = shalt.err (!%p6538_p12)
}
 0x193   : > { %s6542_s10 = scalar_lea.vmem %s1111_s29, 16  ;;  %s6814_s24 = smov [#allocation15]  }
 0x194   : > { %p6543_p1 = scmp.ne.s32.totalorder %s1111_s29, %s6542_s10  ;;  %s6546_s22 = sshll.u32 %s6814_s24, 4  ;;  %s6547_s22 = int_to_ptr.vmem [resolvable:$false] %s6546_s22 }
 0x195   : > { %s6548_s21 = scalar_lea.vmem %s6547_s22, 32  ;;  %p6549_p2 = scmp.lt.s32.totalorder %s1111_s29, %s6547_s22 }
 0x196   : > { %p6544_p5 = pnand %p6543_p1, %p8784_p7  ;;  %p6550_p11 = scmp.lt.s32.totalorder %s6548_s21, %s6542_s10 }
 0x198   : > { %p6545_p10 = pneg %p6544_p5  ;;  %p6551_p13 = por %p6550_p11, %p6549_p2 }
 0x19a   : > { %p6552_p4 = pnand %p6551_p13, %p6545_p10 }
 0x19c   : > { %6555 = shalt.err (!%p6552_p4)
}
 0x19d   : > { %s8793_s4 = scalar_lea.sflag [#allocation14], %s7076_s18  ;;  %s6556_s2 = scalar_lea.hbm %s7232_s6, 1024 }
 0x19e   : > { %5806 = dma.hbm_to_vmem [thread:$0]  (%p8784_p7), %s7355_s14, 16, %s1111_s29, %s8793_s4  }
 0x19f   : > { %p6557_p3 = scmp.ne.s32.totalorder %s7232_s6, %s6556_s2  ;;  %s6560_s0 = scalar_lea.hbm %s8757_s8, 6144 }
 0x1a0   : > { %p6561_p0 = scmp.lt.u32.totalorder %s7232_s6, %s8757_s8  ;;  %p6562_p9 = scmp.lt.u32.totalorder %s6560_s0, %s6556_s2 }
 0x1a1   : > { %p6558_p6 = pnand %p6557_p3, %p8784_p7  ;;  %p6564_p1 = scmp.lt.u32.totalorder %s6556_s2, %s7232_s6 }
 0x1a2   : > { %p6563_p12 = por %p6562_p9, %p6561_p0 }
 0x1a3   : > { %p6559_p8 = pneg %p6558_p6 }
 0x1a4   : > { %p6565_p5 = por %p6564_p1, %p6563_p12 }
 0x1a6   : > { %p6566_p10 = pnand %p6565_p5, %p6559_p8 }
 0x1a8   : > { %6569 = shalt.err (!%p6566_p10)
}
 0x1a9   : > { %s6570_s15 = scalar_lea.vmem %s7360_s17, 1024  ;;  %s6815_s14 = smov [#allocation18]  }
 0x1aa   : > { %p6571_p2 = scmp.ne.s32.totalorder %s7360_s17, %s6570_s15  ;;  %s6574_s29 = sshll.u32 %s6815_s14, 4  ;;  %s6575_s29 = int_to_ptr.vmem [resolvable:$false] %s6574_s29 }
 0x1ab   : > { %s6576_s10 = scalar_lea.vmem %s6575_s29, 2048  ;;  %p6577_p4 = scmp.lt.s32.totalorder %s7360_s17, %s6575_s29 }
 0x1ac   : > { %p6572_p11 = pnand %p6571_p2, %p8784_p7  ;;  %p6578_p3 = scmp.lt.s32.totalorder %s6576_s10, %s6570_s15 }
 0x1ae   : > { %p6573_p13 = pneg %p6572_p11  ;;  %p6579_p6 = por %p6578_p3, %p6577_p4 }
 0x1b0   : > { %p6580_p0 = pnand %p6579_p6, %p6573_p13 }
 0x1b2   : > { %6583 = shalt.err (!%p6580_p0)
}
 0x1b3   : > { %s8794_s24 = smov 4   ;;  %s8795_s22 = smov 64  }
 0x1b4   : > { %s8796_s21 = scalar_lea.sflag [#allocation17], %s7076_s18  ;;  %s8797_s4 = sld [smem:[#allocation61_spill]] }
 0x1b5   : > { %5808 = dma.hbm_to_vmem [thread:$0]  (%p8784_p7), %s7232_s6, 1024, %s7360_s17, %s8796_s21, %s8795_s22, %s8795_s22, %s8794_s24  }
 0x1b6   : > { %s7401_s2 = scalar_lea.hbm %s8758_s3, %s7087_s1  ;;  %s1194_s0 = scalar_lea.vmem [#allocation21], %s7084_s28 }
 0x1b7   : > { %s1201_s15 = sshll.u32 %s1194_s0, 4  ;;  %s6584_s29 = scalar_lea.hbm %s7401_s2, 2048  ;;  %s7404_s15 = int_to_ptr.vmem [resolvable:$true] %s1201_s15 }
 0x1b8   : > { %p6585_p8 = scmp.ne.s32.totalorder %s7401_s2, %s6584_s29  ;;  %s6588_s10 = scalar_lea.hbm %s8758_s3, 12288 }
 0x1b9   : > { %p6589_p1 = scmp.lt.u32.totalorder %s7401_s2, %s8758_s3  ;;  %p6590_p5 = scmp.lt.u32.totalorder %s6588_s10, %s6584_s29 }
 0x1ba   : > { %s7408_s14 = scalar_lea.hbm %s8797_s4, %s7119_s5  ;;  %p6586_p9 = pnand %p6585_p8, %p8784_p7 }
 0x1bb   : > { %p6591_p10 = por %p6590_p5, %p6589_p1  ;;  %p6592_p2 = scmp.lt.u32.totalorder %s6584_s29, %s7401_s2 }
 0x1bc   : > { %p6587_p12 = pneg %p6586_p9 }
 0x1bd   : > { %p6593_p11 = por %p6592_p2, %p6591_p10 }
 0x1bf   : > { %p6594_p13 = pnand %p6593_p11, %p6587_p12 }
 0x1c1   : > { %6597 = shalt.err (!%p6594_p13)
}
 0x1c2   : > { %s6598_s6 = scalar_lea.vmem %s7404_s15, 2048  ;;  %s6816_s5 = smov [#allocation21]  }
 0x1c3   : > { %p6599_p4 = scmp.ne.s32.totalorder %s7404_s15, %s6598_s6  ;;  %s6602_s17 = sshll.u32 %s6816_s5, 4  ;;  %s6603_s17 = int_to_ptr.vmem [resolvable:$false] %s6602_s17 }
 0x1c4   : > { %s6604_s21 = scalar_lea.vmem %s6603_s17, 4096  ;;  %p6605_p0 = scmp.lt.s32.totalorder %s7404_s15, %s6603_s17 }
 0x1c5   : > { %p6600_p3 = pnand %p6599_p4, %p8784_p7  ;;  %p6606_p8 = scmp.lt.s32.totalorder %s6604_s21, %s6598_s6 }
 0x1c7   : > { %p6601_p6 = pneg %p6600_p3  ;;  %p6607_p9 = por %p6606_p8, %p6605_p0 }
 0x1c9   : > { %p6608_p1 = pnand %p6607_p9, %p6601_p6 }
 0x1cb   : > { %6611 = shalt.err (!%p6608_p1)
}
 0x1cc   : > { %s8798_s0 = scalar_lea.sflag [#allocation20], %s7076_s18  ;;  %s1241_s29 = scalar_lea.vmem [#allocation24], %s7114_s11 }
 0x1cd   : > { %5810 = dma.hbm_to_vmem [thread:$0]  (%p8784_p7), %s7401_s2, 2048, %s7404_s15, %s8798_s0, %s8789_s7, %s8789_s7, %s8788_s20  }
 0x1ce   : > { %s1249_s10 = sshll.u32 %s1241_s29, 4  ;;  %s6612_s6 = scalar_lea.hbm %s7408_s14, 32  ;;  %s1250_s10 = int_to_ptr.vmem [resolvable:$true] %s1249_s10 }
 0x1cf   : > { %p6613_p12 = scmp.ne.s32.totalorder %s7408_s14, %s6612_s6  ;;  %s6616_s5 = scalar_lea.hbm %s8797_s4, 192 }
 0x1d0   : > { %p6617_p2 = scmp.lt.u32.totalorder %s7408_s14, %s8797_s4  ;;  %p6618_p11 = scmp.lt.u32.totalorder %s6616_s5, %s6612_s6 }
 0x1d1   : > { %p6614_p5 = pnand %p6613_p12, %p8784_p7  ;;  %p6620_p4 = scmp.lt.u32.totalorder %s6612_s6, %s7408_s14 }
 0x1d2   : > { %p6619_p13 = por %p6618_p11, %p6617_p2 }
 0x1d3   : > { %p6615_p10 = pneg %p6614_p5 }
 0x1d4   : > { %p6621_p3 = por %p6620_p4, %p6619_p13 }
 0x1d6   : > { %p6622_p6 = pnand %p6621_p3, %p6615_p10 }
 0x1d8   : > { %6625 = shalt.err (!%p6622_p6)
}
 0x1d9   : > { %s6626_s17 = scalar_lea.vmem %s1250_s10, 32  ;;  %s6817_s11 = smov [#allocation24]  }
 0x1da   : > { %p6627_p0 = scmp.ne.s32.totalorder %s1250_s10, %s6626_s17  ;;  %s6630_s20 = sshll.u32 %s6817_s11, 4  ;;  %s6631_s20 = int_to_ptr.vmem [resolvable:$false] %s6630_s20 }
 0x1db   : > { %s6632_s7 = scalar_lea.vmem %s6631_s20, 64  ;;  %p6633_p1 = scmp.lt.s32.totalorder %s1250_s10, %s6631_s20 }
 0x1dc   : > { %p6628_p8 = pnand %p6627_p0, %p8784_p7  ;;  %p6634_p12 = scmp.lt.s32.totalorder %s6632_s7, %s6626_s17 }
 0x1de   : > { %p6629_p9 = pneg %p6628_p8  ;;  %p6635_p5 = por %p6634_p12, %p6633_p1 }
 0x1e0   : > { %p6636_p2 = pnand %p6635_p5, %p6629_p9 }
 0x1e2   : > { %6639 = shalt.err (!%p6636_p2)
}
 0x1e3   : > { %s8799_s2 = scalar_lea.sflag [#allocation23], %s7076_s18  ;;  %s7450_s15 = scalar_lea.hbm %s8756_s9, %s7087_s1 }
 0x1e4   : > { %5812 = dma.hbm_to_vmem [thread:$0]  (%p8784_p7), %s7408_s14, 32, %s1250_s10, %s8799_s2  }
 0x1e5   : > { %s1260_s21 = scalar_lea.vmem [#allocation25], %s7084_s28  ;;  %s1257_s18 = scalar_lea.sflag [#allocation26], %s7079_s26 }
 0x1e6   : > { %s1267_s0 = sshll.u32 %s1260_s21, 4  ;;  %s6640_s29 = scalar_lea.hbm %s7450_s15, 2048  ;;  %s7453_s0 = int_to_ptr.vmem [resolvable:$true] %s1267_s0 }
 0x1e7   : > { %p6641_p10 = scmp.ne.s32.totalorder %s7450_s15, %s6640_s29  ;;  %s6644_s6 = scalar_lea.hbm %s8756_s9, 12288 }
 0x1e8   : > { %p6645_p4 = scmp.lt.u32.totalorder %s7450_s15, %s8756_s9  ;;  %p6646_p3 = scmp.lt.u32.totalorder %s6644_s6, %s6640_s29 }
 0x1e9   : > { %p6642_p11 = pnand %p6641_p10, %p8784_p7  ;;  %p6648_p0 = scmp.lt.u32.totalorder %s6640_s29, %s7450_s15 }
 0x1ea   : > { %p6647_p6 = por %p6646_p3, %p6645_p4 }
 0x1eb   : > { %p6643_p13 = pneg %p6642_p11 }
 0x1ec   : > { %p6649_p8 = por %p6648_p0, %p6647_p6 }
 0x1ee   : > { %p6650_p9 = pnand %p6649_p8, %p6643_p13 }
 0x1f0   : > { %6653 = shalt.err (!%p6650_p9)
}
 0x1f1   : > { %s6654_s28 = scalar_lea.vmem %s7453_s0, 2048  ;;  %s6818_s1 = smov [#allocation25]  }
 0x1f2   : > { %p6655_p1 = scmp.ne.s32.totalorder %s7453_s0, %s6654_s28  ;;  %s6658_s14 = sshll.u32 %s6818_s1, 4  ;;  %s6659_s14 = int_to_ptr.vmem [resolvable:$false] %s6658_s14 }
 0x1f3   : > { %s6660_s10 = scalar_lea.vmem %s6659_s14, 4096  ;;  %p6661_p2 = scmp.lt.s32.totalorder %s7453_s0, %s6659_s14 }
 0x1f4   : > { %p6656_p12 = pnand %p6655_p1, %p8784_p7  ;;  %p6662_p10 = scmp.lt.s32.totalorder %s6660_s10, %s6654_s28 }
 0x1f6   : > { %p6657_p5 = pneg %p6656_p12  ;;  %p6663_p11 = por %p6662_p10, %p6661_p2 }
 0x1f8   : > { %p6664_p4 = pnand %p6663_p11, %p6657_p5 }
 0x1fa   : > { %6667 = shalt.err (!%p6664_p4)
}
 0x1fb   : > { %5813 = dma.hbm_to_vmem [thread:$0]  (%p8784_p7), %s7450_s15, 2048, %s7453_s0, %s1257_s18, %s8795_s22, %s8795_s22, %s8794_s24  }
 0x1fc PF: > { %s8800_s5 = sld [smem:[#allocation78_spill]] }
 0x202   : > { %p8801_p13 = scmp.ne.s32.totalorder %s8800_s5, 0 }
 0x204   : > { %1285 = sbr.rel (%p8801_p13) target bundleno = 7357 (0x1cbd), region = 132 }
 0x20b   : > { %s8802_s17 = sld [smem:[#allocation76_spill]] }
 0x211   : > { %p8803_p3 = scmp.ne.s32.totalorder %s8802_s17, 0 }
 0x213   : > { %6701 = dma.done.wait (%p8803_p3), [#allocation3], 512  }
 0x214   : > { %6703 = vsyncadd (%p8803_p3), [#allocation3], 4294966784  ;;  %s8804_s11 = sld [smem:[#allocation72_spill]]  ;;  %s8806_s20 = sld [smem:[#allocation66_spill]] }
 0x215   : > { %s8807_s7 = sld [smem:[#allocation77_spill]] }
 0x21a   : > { %s8805_s23 = sadd.s32 4294967295, %s8804_s11   ;;  %s7489_s26 = sand.u32 1, %s8806_s20  }
 0x21b   : > { %s7486_s2 = sand.u32 1, %s8805_s23   ;;  %8808 = sst [smem:[#allocation79_spill]] %s7489_s26 }
 0x21c   : > { %s5795_s24 = smul.u32 5, %s7489_s26  ;;  %s1292_s22 = scalar_lea.sflag [#allocation5], %s7486_s2 }
 0x21d   : > { %p8810_p7 = scmp.ne.s32.totalorder %s8807_s7, 0 }
 0x21e   : > { %s7493_s15 = scalar_lea.vmem [#allocation4], %s5795_s24 }
 0x21f   : > { %8809 = sst [smem:[#allocation80_spill]] %s7493_s15 }
 0x220   : > { %6705 = dma.done.wait (%p8810_p7), %s1292_s22, 2128  }
 0x221   : > { %6707 = vsyncadd (%p8810_p7), %s1292_s22, 4294965168  ;;  %s7500_s21 = sshll.u32 %s7489_s26, 7  ;;  %s1310_s18 = scalar_lea.sflag [#allocation8], %s7486_s2 }
 0x222   : > { %s7503_s0 = scalar_lea.vmem [#allocation6], %s7500_s21  ;;  %s7507_s29 = scalar_lea.vmem [#allocation7], %s7500_s21 }
 0x223   : > { %8811 = sst [smem:[#allocation81_spill]] %s7503_s0 }
 0x224   : > { %8812 = sst [smem:[#allocation82_spill]] %s7507_s29 }
 0x225   : > { %6709 = dma.done.wait (%p8810_p7), %s1310_s18, 2080  }
 0x226   : > { %6711 = vsyncadd (%p8810_p7), %s1310_s18, 4294965216  ;;  %s7514_s6 = sshll.u32 %s7489_s26, 1  ;;  %s1328_s1 = scalar_lea.sflag [#allocation11], %s7486_s2 }
 0x227   : > { %8813 = sst [smem:[#allocation83_spill]] %s7514_s6 }
 0x228   : > { %6713 = dma.done.wait (%p8810_p7), %s1328_s1, 64  }
 0x229   : > { %6715 = vsyncadd (%p8810_p7), %s1328_s1, 4294967232  ;;  %s1346_s5 = scalar_lea.sflag [#allocation14], %s7486_s2  ;;  %s7526_s17 = scalar_lea.vmem [#allocation13], %s7500_s21 }
 0x22a   : > { %8814 = sst [smem:[#allocation84_spill]] %s7526_s17 }
 0x22b   : > { %6717 = dma.done.wait (%p8810_p7), %s1346_s5, 2064  }
 0x22c   : > { %6719 = vsyncadd (%p8810_p7), %s1346_s5, 4294965232  ;;  %s5231_s11 = sshll.u32 %s7489_s26, 6  ;;  %s1363_s20 = scalar_lea.sflag [#allocation17], %s7486_s2 }
 0x22d   : > { %s7535_s24 = scalar_lea.vmem [#allocation16], %s5231_s11 }
 0x22e   : > { %8815 = sst [smem:[#allocation85_spill]] %s7535_s24 }
 0x22f   : > { %6721 = dma.done.wait (%p8810_p7), %s1363_s20, 2048  }
 0x230   : > { %6723 = vsyncadd (%p8810_p7), %s1363_s20, 4294965248  ;;  %s7541_s22 = scalar_lea.vmem [#allocation18], %s5231_s11  ;;  %s1381_s18 = scalar_lea.sflag [#allocation20], %s7486_s2 }
 0x231   : > { %8816 = sst [smem:[#allocation86_spill]] %s7541_s22 }
 0x232   : > { %6725 = dma.done.wait (%p8810_p7), %s1381_s18, 2064  }
 0x233   : > { %6727 = vsyncadd (%p8810_p7), %s1381_s18, 4294965232  ;;  %s7550_s5 = scalar_lea.vmem [#allocation21], %s7500_s21  ;;  %s1398_s23 = scalar_lea.sflag [#allocation23], %s7486_s2 }
 0x234   : > { %8817 = sst [smem:[#allocation87_spill]] %s7550_s5 }
 0x235   : > { %6729 = dma.done.wait (%p8810_p7), %s1398_s23, 64  }
 0x236   : > { %6731 = vsyncadd (%p8810_p7), %s1398_s23, 4294967232  ;;  %s1416_s1 = scalar_lea.sflag [#allocation26], %s7489_s26  ;;  %s7561_s18 = scalar_lea.vmem [#allocation25], %s7500_s21 }
 0x237   : > { %8818 = sst [smem:[#allocation88_spill]] %s7561_s18 }
 0x238   : > { %6733 = dma.done.wait (%p8810_p7), %s1416_s1, 2048  }
 0x239   : > { %6735 = vsyncadd (%p8810_p7), %s1416_s1, 4294965248  ;;  %s8819_s2 = sld [smem:[#allocation69_spill]]  ;;  %s8820_s20 = sld [smem:[#allocation68_spill]] }
 0x23a   : > { %s8821_s10 = sld [smem:[#allocation36_spill]]  ;;  %s8822_s14 = sld [smem:[#allocation37_spill]] }
 0x23b   : > { %s8823_s23 = sld [smem:[#allocation38_spill]]  ;;  %s8824_s28 = sld [smem:[#allocation39_spill]] }
 0x23c   : > { %s8825_s3 = sld [smem:[#allocation40_spill]]  ;;  %s8826_s4 = sld [smem:[#allocation41_spill]] }
 0x23d   : > { %s8827_s8 = sld [smem:[#allocation54_spill]]  ;;  %s8828_s11 = sld [smem:[#allocation44_spill]] }
 0x23e   : > { %s8829_s21 = sld [smem:[#allocation57_spill]]  ;;  %s8830_s9 = sld [smem:[#allocation59_spill]] }
 0x23f   : > { %p1609_p6 = scmp.lt.s32.totalorder %s8819_s2, 1  ;;  %p1633_p0 = scmp.lt.s32.totalorder %s8820_s20, 5 }
 0x240   : > { %s8831_s12 = sld [smem:[#allocation63_spill]]  ;;  %s8832_s1 = sld [smem:[#allocation64_spill]] }
 0x241   : > { %s8926_s2 = smov (!%p1609_p6, %s8819_s2), 1  ;;  %s8833_s19 = sld [smem:[#allocation65_spill]] }
 0x242   : > { %s7571_s7 = scalar_select %p1633_p0, %s8820_s20, 5 }
 0x243   : > { %s7573_s13 = sshll.u32 %s8926_s2, 3 }
 0x244   : > { %s1612_s25 = scalar_lea.vmem %s8821_s10, %s7573_s13  ;;  %s1616_s27 = scalar_lea.vmem %s8822_s14, %s7573_s13 }
 0x245   : > { %s1620_s30 = scalar_lea.vmem %s8823_s23, %s7573_s13  ;;  %s1624_s16 = scalar_lea.vmem %s8824_s28, %s7573_s13 }
 0x246   : > { %s1628_s18 = scalar_lea.vmem %s8825_s3, %s7573_s13  ;;  %s1632_s5 = scalar_lea.vmem %s8826_s4, %s7573_s13 }
 0x247   : > { %s5796_s22 = smul.u32 320, %s7571_s7  ;;  %s1640_s26 = scalar_lea.vmem %s8827_s8, %s7571_s7 }
 0x248   : > { %s5432_s24 = sshll.u32 %s7571_s7, 7  ;;  %s5246_s2 = sshll.u32 %s7571_s7, 1 }
 0x249   : > { %s7593_s17 = scalar_lea.vmem %s8828_s11, %s5796_s22  ;;  %s7596_s6 = scalar_lea.vmem %s8829_s21, %s5432_s24 }
 0x24a   : > { %s7599_s29 = scalar_lea.vmem %s8830_s9, %s5246_s2  ;;  %s1652_s0 = scalar_lea.vmem %s8831_s12, %s7571_s7 }
 0x24b   : > { %s7605_s15 = scalar_lea.vmem %s8832_s1, %s7573_s13  ;;  %s7609_s20 = scalar_lea.vmem %s8833_s19, %s7573_s13 }
 0x24c   : > { %s8834_s14 = sld [smem:[#allocation68_spill]] }
 0x252   : > { %p5249_p8 = scmp.ne.s32.totalorder %s8834_s14, 0 }
 0x253   : > { %v5943_v0 = vld [vmem:[#allocation2] sm:$0xff] (!%p5249_p8)   ;;  %v6819_v1 = vmov (!%p5249_p8), 0.0   ;;  %v5944_v2 = vld [vmem:[#allocation2 + $0x8] sm:$0xff] (!%p5249_p8)   ;;  %vm6820_vm0 = vmmov (!%p5249_p8), 0   ;;  %v5945_v3 = vld [vmem:[#allocation2 + $0x10] sm:$0xff] (!%p5249_p8)   ;;  %s8837_s9 = sld [smem:[#allocation43_spill]] (!%p5249_p8) }
 0x254   : > { %1665 = sbr.rel (%p5249_p8) target bundleno = 827 (0x33b), region = 200  ;;  %5601 = vmatprep.subr.bf16.mxu0 (!%p5249_p8), %v6819_v1  ;;  %5613 = vmatprep.subr.bf16.mxu1 (!%p5249_p8), %v6819_v1  ;;  %v5946_v4 = vld [vmem:[#allocation2 + $0x18] sm:$0xff] (!%p5249_p8)   ;;  %v1675_v5 = vld [vmem:[%s1612_s25] sm:$0xff] (!%p5249_p8)  ;;  %vm1707_vm1 = vcmask (!%p5249_p8), 523264  }
 0x255   : > { %5602 = vmatpush3.bf16.msra.mxu0 (!%p5249_p8), %v5943_v0  ;;  %5614 = vmatpush3.bf16.msra.mxu1 (!%p5249_p8), %v5943_v0  ;;  %v1752_v6 = vld [vmem:[%s1616_s27] sm:$0xff] (!%p5249_p8)  ;;  %v1676_v7 = vpack.c.bf16 (!%p5249_p8), %v1675_v5, %v1675_v5 }
 0x256   : > { %5603 = vmatprep.subr.bf16.mxu0 (!%p5249_p8), %v6819_v1  ;;  %5615 = vmatprep.subr.bf16.mxu1 (!%p5249_p8), %v6819_v1  ;;  %v1753_v8 = vpack.c.bf16 (!%p5249_p8), %v1752_v6, %v1752_v6 }
 0x257   : > { %5609 = vmatprep.mubr.msk.bf16.mxu0 (!%p5249_p8), %vm6820_vm0, %v6819_v1  ;;  %5621 = vmatprep.mubr.msk.bf16.mxu1 (!%p5249_p8), %vm6820_vm0, %v6819_v1 }
 0x259   : > { %5604 = vmatpush3.bf16.msra.mxu0 (!%p5249_p8), %v5944_v2  ;;  %5616 = vmatpush3.bf16.msra.mxu1 (!%p5249_p8), %v5944_v2  ;;  %v5250_v9 = vld [vmem:[%s8837_s9] ss:$0 sm:$0xff] (!%p5249_p8) }
 0x25a   : > { %5605 = vmatprep.subr.bf16.mxu0 (!%p5249_p8), %v6819_v1  ;;  %5617 = vmatprep.subr.bf16.mxu1 (!%p5249_p8), %v6819_v1 }
 0x25d   : > { %5606 = vmatpush3.bf16.msra.mxu0 %v5945_v3  ;;  %5618 = vmatpush3.bf16.msra.mxu1 %v5945_v3 }
 0x25e   : > { %5607 = vmatprep.subr.bf16.mxu0 %v6819_v1  ;;  %5619 = vmatprep.subr.bf16.mxu1 %v6819_v1 }
 0x261   : > { %5608 = vmatpush3.bf16.msra.mxu0 %v5946_v4  ;;  %5620 = vmatpush3.bf16.msra.mxu1 %v5946_v4 }
 0x264   : > { %5610 = vmatmul.mubr.msk.bf16.vlgmr.msra.gmra.mrb[0].mxu0 %vm1707_vm1, %v1676_v7  ;;  %5622 = vmatmul.mubr.msk.bf16.vlgmr.msra.gmra.mrb[0].mxu1 %vm1707_vm1, %v1753_v8 }
 0x337   : > { %v1745_v10 = vpop.f32.mrb[0].mxu0  ;;  %v1791_v11 = vpop.f32.mrb[0].mxu1 }
 0x338   : > { %v1746_v12 = vadd.f32 %v5250_v9, %v1745_v10  ;;  %v1792_v13 = vadd.f32 %v5250_v9, %v1791_v11  ;;  %v5611_v14 = vpop.f32.mrb[1].mxu0  ;;  %v5623_v15 = vpop.f32.mrb[1].mxu1 }
 0x339   : > { %v1748_v16 = vpop.f32.mrb[2].mxu0  ;;  %v1794_v17 = vpop.f32.mrb[2].mxu1 }
 0x33a   : > { %1751 = vst [vmem:[%s7605_s15] sm:$0xff] %v1746_v12  ;;  %1797 = vst [vmem:[%s7609_s20] sm:$0xff] %v1792_v13  ;;  %v5612_v18 = vpop.f32.mrb[3].mxu0  ;;  %v5624_v19 = vpop.f32.mrb[3].mxu1 }
 0x33b PF: > { %v7622_v20 = vld [vmem:[%s7593_s17 + $0x4] ss:$20 sps:$4 sm:$0xff]   ;;  %v5949_v21 = vld [vmem:[%s7593_s17 + $0xc] ss:$20 sps:$4 sm:$0xff]   ;;  %v8687_v22 = vmov 0   ;;  %v8689_v56 = vmov 0.0   ;;  %v1798_v0 = vlaneseq }
 0x33c   : > { %2197 = vmatprep.mubr.bf16.mxu0 %v8687_v22  ;;  %2238 = vmatprep.mubr.bf16.mxu1 %v8687_v22  ;;  %v7629_v23 = vld [vmem:[%s7593_s17] ss:$20 sps:$4 sm:$0xff]   ;;  %v5952_v24 = vld [vmem:[%s7593_s17 + $0x8] ss:$20 sps:$4 sm:$0xff]   ;;  %v5958_v28 = vld [vmem:[%s7593_s17 + $0x30] ss:$20 sps:$4 sm:$0xff]  }
 0x33d   : > { %2165 = vmatprep.subr.bf16.mxu0 %v7622_v20  ;;  %2206 = vmatprep.subr.bf16.mxu1 %v5949_v21  ;;  %v7633_v25 = vld [vmem:[%s7593_s17 + $0x2c] ss:$20 sps:$4 sm:$0xff]   ;;  %v5955_v26 = vld [vmem:[%s7593_s17 + $0x34] ss:$20 sps:$4 sm:$0xff]   ;;  %v5961_v30 = vld [vmem:[%s7593_s17 + $0x5c] ss:$20 sps:$4 sm:$0xff]  }
 0x33e   : > { %2166 = vmatpush1.bf16.msra.mxu0 %v7629_v23  ;;  %2207 = vmatpush1.bf16.msra.mxu1 %v5952_v24  ;;  %v7638_v27 = vld [vmem:[%s7593_s17 + $0x28] ss:$20 sps:$4 sm:$0xff]   ;;  %v7647_v31 = vld [vmem:[%s7593_s17 + $0x50] ss:$20 sps:$4 sm:$0xff]   ;;  %v5964_v32 = vld [vmem:[%s7593_s17 + $0x58] ss:$20 sps:$4 sm:$0xff]  }
 0x33f   : > { %2167 = vmatprep.subr.bf16.mxu0 %v7633_v25  ;;  %2208 = vmatprep.subr.bf16.mxu1 %v5955_v26  ;;  %v7643_v29 = vld [vmem:[%s7593_s17 + $0x54] ss:$20 sps:$4 sm:$0xff]   ;;  %v7652_v33 = vld [vmem:[%s7593_s17 + $0x7c] ss:$20 sps:$4 sm:$0xff]   ;;  %v5967_v34 = vld [vmem:[%s7593_s17 + $0x84] ss:$20 sps:$4 sm:$0xff]  }
 0x340   : > { %v7657_v35 = vld [vmem:[%s7593_s17 + $0x78] ss:$20 sps:$4 sm:$0xff]   ;;  %v5970_v36 = vld [vmem:[%s7593_s17 + $0x80] ss:$20 sps:$4 sm:$0xff]   ;;  %v5976_v40 = vld [vmem:[%s7593_s17 + $0xa8] ss:$20 sps:$4 sm:$0xff]  }
 0x341   : > { %v7662_v37 = vld [vmem:[%s7593_s17 + $0xa4] ss:$20 sps:$4 sm:$0xff]   ;;  %v5973_v38 = vld [vmem:[%s7593_s17 + $0xac] ss:$20 sps:$4 sm:$0xff]   ;;  %v5979_v42 = vld [vmem:[%s7593_s17 + $0xd4] ss:$20 sps:$4 sm:$0xff]  }
 0x342   : > { %2168 = vmatpush1.bf16.msra.mxu0 %v7638_v27  ;;  %2209 = vmatpush1.bf16.msra.mxu1 %v5958_v28  ;;  %v7667_v39 = vld [vmem:[%s7593_s17 + $0xa0] ss:$20 sps:$4 sm:$0xff]   ;;  %v7678_v43 = vld [vmem:[%s7593_s17 + $0xc8] ss:$20 sps:$4 sm:$0xff]   ;;  %v5982_v44 = vld [vmem:[%s7593_s17 + $0xd0] ss:$20 sps:$4 sm:$0xff]  }
 0x343   : > { %2169 = vmatprep.subr.bf16.mxu0 %v7643_v29  ;;  %2210 = vmatprep.subr.bf16.mxu1 %v5961_v30  ;;  %v7672_v41 = vld [vmem:[%s7593_s17 + $0xcc] ss:$20 sps:$4 sm:$0xff]   ;;  %v7683_v45 = vld [vmem:[%s7593_s17 + $0xf4] ss:$20 sps:$4 sm:$0xff]   ;;  %v5985_v46 = vld [vmem:[%s7593_s17 + $0xfc] ss:$20 sps:$4 sm:$0xff]  }
 0x344   : > { %v7687_v47 = vld [vmem:[%s7593_s17 + $0xf0] ss:$20 sps:$4 sm:$0xff]   ;;  %v5988_v48 = vld [vmem:[%s7593_s17 + $0xf8] ss:$20 sps:$4 sm:$0xff]   ;;  %v5994_v52 = vld [vmem:[%s7593_s17 + $0x120] ss:$20 sps:$4 sm:$0xff]  }
 0x345   : > { %v7692_v49 = vld [vmem:[%s7593_s17 + $0x11c] ss:$20 sps:$4 sm:$0xff]   ;;  %v5991_v50 = vld [vmem:[%s7593_s17 + $0x124] ss:$20 sps:$4 sm:$0xff]   ;;  %vm6823_vm2 = vmmov 0   ;;  %s8838_s25 = sld [smem:[#allocation80_spill]] }
 0x346   : > { %2170 = vmatpush1.bf16.msra.mxu0 %v7647_v31  ;;  %2211 = vmatpush1.bf16.msra.mxu1 %v5964_v32  ;;  %v7697_v51 = vld [vmem:[%s7593_s17 + $0x118] ss:$20 sps:$4 sm:$0xff]   ;;  %v1807_v53 = vld [vmem:[%s7605_s15] sm:$0xff]  ;;  %v7728_v59 = vld [vmem:[%s7593_s17 + $0x88] ss:$20 sps:$4 sm:$0xff]   ;;  %v1933_v1 = vshrl.u32 %v1798_v0, 7 }
 0x347   : > { %2171 = vmatprep.subr.bf16.mxu0 %v7652_v33  ;;  %2212 = vmatprep.subr.bf16.mxu1 %v5967_v34  ;;  %v7704_v54 = vld [vmem:[%s7593_s17 + $0x10] ss:$20 sps:$4 sm:$0xff]   ;;  %v7706_v55 = vpack.c.bf16 %v1807_v53, %v1807_v53  ;;  %v7712_v57 = vld [vmem:[%s7593_s17 + $0x38] ss:$20 sps:$4 sm:$0xff]   ;;  %v7723_v58 = vld [vmem:[%s7593_s17 + $0x60] ss:$20 sps:$4 sm:$0xff]  }
 0x348   : > { %v7733_v60 = vld [vmem:[%s7593_s17 + $0xb0] ss:$20 sps:$4 sm:$0xff]   ;;  %v7738_v61 = vld [vmem:[%s7593_s17 + $0xd8] ss:$20 sps:$4 sm:$0xff]   ;;  %v7743_v62 = vld [vmem:[%s7593_s17 + $0x100] ss:$20 sps:$4 sm:$0xff]  }
 0x349   : > { %v7748_v63 = vld [vmem:[%s7593_s17 + $0x128] ss:$20 sps:$4 sm:$0xff]   ;;  %v7756_v2 = vsub.s32 0, %v1933_v1  ;;  %v1946_v4 = vsub.s32 3, %v1933_v1  ;;  %v1809_v7 = vld [vmem:[%s1620_s30] sm:$0xff]  ;;  %v7772_v26 = vsub.s32 1, %v1933_v1 }
 0x34a   : > { %2172 = vmatpush1.bf16.msra.mxu0 %v7657_v35  ;;  %2213 = vmatpush1.bf16.msra.mxu1 %v5970_v36  ;;  %v1810_v12 = vld [vmem:[%s1624_s16] sm:$0xff]  ;;  %v1950_v28 = vsub.s32 4, %v1933_v1  ;;  %v1942_v36 = vsub.s32 2, %v1933_v1  ;;  %vm2353_vm3 = vcmask 1043456   ;;  %s8843_s30 = sld [smem:[#allocation81_spill]]  ;;  %vm2336_vm4 = vcmask 64512  }
 0x34b   : > { %2173 = vmatprep.subr.bf16.mxu0 %v7662_v37  ;;  %2214 = vmatprep.subr.bf16.mxu1 %v5973_v38  ;;  %8841 = vst [vmem:[#allocation89_spill] sm:$0xff] %v7756_v2  ;;  %v1929_v3 = vld [vmem:[%s8838_s25] sm:$0x1f]  ;;  %8842 = vst [vmem:[#allocation90_spill] sm:$0xff] %v7772_v26  ;;  %s8844_s27 = sld [smem:[#allocation82_spill]]  ;;  %s8845_s16 = sld [smem:[#allocation83_spill]] }
 0x34c   : > { %v7760_v5 = vrot.slane %v1929_v3, %v7756_v2  ;;  %v7762_v6 = vrot.slane %v1929_v3, %v1946_v4  ;;  %v7775_v30 = vrot.slane %v1929_v3, %v7772_v26  ;;  %v7777_v32 = vrot.slane %v1929_v3, %v1950_v28  ;;  %s8849_s28 = sld [smem:[#allocation84_spill]]  ;;  %s8865_s13 = sld [smem:[#allocation85_spill]] }
 0x34d   : > { %s8888_s21 = sld [smem:[#allocation88_spill]] }
 0x34e   : > { %2174 = vmatpush1.bf16.msra.mxu0 %v7667_v39  ;;  %2215 = vmatpush1.bf16.msra.mxu1 %v5976_v40 }
 0x34f   : > { %2175 = vmatprep.subr.bf16.mxu0 %v7672_v41  ;;  %2216 = vmatprep.subr.bf16.mxu1 %v5979_v42 }
 0x351   : > { %v7797_v28 = vld [vmem:[%s8844_s27 + $0x4] ss:$8 sps:$4 sm:$0xff]   ;;  %s8846_s4 = scalar_lea.vmem [#allocation9], %s8845_s16  ;;  %s8857_s10 = scalar_lea.vmem [#allocation10], %s8845_s16 }
 0x352   : > { %2176 = vmatpush1.bf16.msra.mxu0 %v7678_v43  ;;  %2217 = vmatpush1.bf16.msra.mxu1 %v5982_v44  ;;  %s8858_s24 = scalar_lea.vmem [#allocation12], %s8845_s16  ;;  %s8893_s1 = scalar_lea.vmem [#allocation24], %s8845_s16 }
 0x353   : > { %2177 = vmatprep.subr.bf16.mxu0 %v7683_v45  ;;  %2218 = vmatprep.subr.bf16.mxu1 %v5985_v46 }
 0x356   : > { %2178 = vmatpush1.bf16.msra.mxu0 %v7687_v47  ;;  %2219 = vmatpush1.bf16.msra.mxu1 %v5988_v48 }
 0x357   : > { %2179 = vmatprep.subr.bf16.mxu0 %v7692_v49  ;;  %2220 = vmatprep.subr.bf16.mxu1 %v5991_v50 }
 0x35a   : > { %2180 = vmatpush1.bf16.msra.mxu0 %v7697_v51  ;;  %2221 = vmatpush1.bf16.msra.mxu1 %v5994_v52  ;;  %v7781_v52 = vrot.slane %v1929_v3, %v1942_v36  ;;  %v7806_v36 = vld [vmem:[%s8843_s30 + $0x10] ss:$8 sps:$4 sm:$0xff]  }
 0x35b   : > { %5625 = vmatprep.subr.bf16.mxu0 %v8689_v56  ;;  %5645 = vmatprep.subr.bf16.mxu1 %v8689_v56 }
 0x35d   : > { %2198 = vmatmul.mubr.bf16.vlgmr.msra.gmra.mrb[0].mxu0 %v7706_v55  ;;  %2239 = vmatmul.mubr.bf16.vlgmr.msra.gmra.mrb[0].mxu1 %v7706_v55 }
 0x35e   : > { %5626 = vmatpush3.bf16.msra.mxu0 %v7704_v54  ;;  %5641 = vmatprep.mubr.msk.bf16.mxu0 %vm6823_vm2, %v8689_v56 }
 0x35f   : > { %5627 = vmatprep.subr.bf16.mxu0 %v8689_v56  ;;  %5647 = vmatprep.mubr.msk.bf16.mxu1 %vm6823_vm2, %v8689_v56 }
 0x362   : > { %5628 = vmatpush3.bf16.msra.mxu0 %v7712_v57 }
 0x363   : > { %5629 = vmatprep.subr.bf16.mxu0 %v8689_v56 }
 0x366   : > { %5630 = vmatpush3.bf16.msra.mxu0 %v7723_v58 }
 0x367   : > { %5631 = vmatprep.subr.bf16.mxu0 %v8689_v56 }
 0x36a   : > { %5632 = vmatpush3.bf16.msra.mxu0 %v7728_v59 }
 0x36b   : > { %5633 = vmatprep.subr.bf16.mxu0 %v8689_v56 }
 0x36e   : > { %5634 = vmatpush3.bf16.msra.mxu0 %v7733_v60 }
 0x36f   : > { %5635 = vmatprep.subr.bf16.mxu0 %v8689_v56 }
 0x372   : > { %5636 = vmatpush3.bf16.msra.mxu0 %v7738_v61 }
 0x373   : > { %5637 = vmatprep.subr.bf16.mxu0 %v8689_v56 }
 0x376   : > { %5638 = vmatpush3.bf16.msra.mxu0 %v7743_v62 }
 0x377   : > { %5639 = vmatprep.subr.bf16.mxu0 %v8689_v56 }
 0x37a   : > { %5640 = vmatpush3.bf16.msra.mxu0 %v7748_v63 }
 0x37d   : > { %5642 = vmatmul.mubr.bf16.vlgmr.msra.gmra.mrb[4].mxu0 %v7706_v55 }
 0x37e   : > { %2631 = vmatprep.mubr.bf16.mxu0 %v8687_v22 }
 0x430   : > { %v2199_v8 = vpop.f32.mrb[0].mxu0  ;;  %v2240_v9 = vpop.f32.mrb[0].mxu1 }
 0x431   : > { %v2200_v10 = vadd.f32 %v2199_v8, %v7760_v5  ;;  %v2201_v11 = vpop.f32.mrb[1].mxu0  ;;  %v2242_v13 = vpop.f32.mrb[1].mxu1  ;;  %v2241_v8 = vadd.f32 %v2240_v9, %v7781_v52 }
 0x432   : > { %v2243_v14 = vadd.f32 %v2242_v13, %v7762_v6  ;;  %v2203_v15 = vpop.f32.mrb[2].mxu0  ;;  %v2244_v16 = vpop.f32.mrb[2].mxu1  ;;  %v2202_v34 = vadd.f32 %v2201_v11, %v7775_v30 }
 0x433   : > { %v2287_v17 = vmul.f32 %v2200_v10, %v1809_v7  ;;  %v2204_v18 = vpop.f32.mrb[3].mxu0  ;;  %v2245_v19 = vpop.f32.mrb[3].mxu1  ;;  %v2349_v10 = vpack.c.bf16 %v2241_v8, %v2241_v8  ;;  %v7846_v8 = vld [vmem:[%s8843_s30 + $0x60] ss:$8 sps:$4 sm:$0xff]  }
 0x434   : > { %v2288_v21 = vmul.f32 %v2243_v14, %v1810_v12  ;;  %v2290_v46 = vmul.f32 %v2202_v34, %v1809_v7  ;;  %v7800_v34 = vld [vmem:[%s8843_s30 + $0x14] ss:$8 sps:$4 sm:$0xff]  }
 0x435   : > { %v2355_v11 = vsel %vm2353_vm3, %v2349_v10, 0  ;;  %v7850_v10 = vld [vmem:[%s8843_s30 + $0x74] ss:$8 sps:$4 sm:$0xff]  }
 0x436   : > { %v2289_v24 = vadd.f32 %v2288_v21, %v2287_v17  ;;  %v7791_v21 = vld [vmem:[%s8843_s30] ss:$8 sps:$4 sm:$0xff]  }
 0x438   : > { %v2293_v1 = vpack.c.bf16 %v2289_v24, %v2289_v24  ;;  %v7794_v24 = vld [vmem:[%s8843_s30 + $0x4] ss:$8 sps:$4 sm:$0xff]  }
 0x439   : > { %2599 = vmatprep.subr.bf16.mxu0 %v7794_v24 }
 0x43a   : > { %2600 = vmatpush1.bf16.msra.mxu0 %v7791_v21 }
 0x43b   : > { %2601 = vmatprep.subr.bf16.mxu0 %v7800_v34 }
 0x43e   : > { %2602 = vmatpush1.bf16.msra.mxu0 %v7806_v36 }
 0x450   : > { %v2281_v38 = vpop.f32.mrb[4].mxu0 }
 0x451   : > { %v2282_v40 = vadd.f32 %v2281_v38, %v7777_v32  ;;  %v5643_v42 = vpop.f32.mrb[5].mxu0  ;;  %v7810_v38 = vld [vmem:[%s8843_s30 + $0x24] ss:$8 sps:$4 sm:$0xff]  }
 0x452   : > { %v2284_v44 = vpop.f32.mrb[6].mxu0  ;;  %2603 = vmatprep.subr.bf16.mxu0 %v7810_v38  ;;  %v7818_v42 = vld [vmem:[%s8843_s30 + $0x34] ss:$8 sps:$4 sm:$0xff]  }
 0x453   : > { %v2291_v48 = vmul.f32 %v2282_v40, %v1810_v12  ;;  %v5644_v50 = vpop.f32.mrb[7].mxu0  ;;  %v7814_v40 = vld [vmem:[%s8843_s30 + $0x20] ss:$8 sps:$4 sm:$0xff]   ;;  %v7822_v44 = vld [vmem:[%s8843_s30 + $0x30] ss:$8 sps:$4 sm:$0xff]  }
 0x454   : > { %2604 = vmatpush1.bf16.msra.mxu0 %v7814_v40  ;;  %v7834_v50 = vld [vmem:[%s8843_s30 + $0x54] ss:$8 sps:$4 sm:$0xff]  }
 0x455   : > { %v2292_v53 = vadd.f32 %v2291_v48, %v2290_v46  ;;  %2605 = vmatprep.subr.bf16.mxu0 %v7818_v42  ;;  %v7826_v46 = vld [vmem:[%s8843_s30 + $0x44] ss:$8 sps:$4 sm:$0xff]   ;;  %v7830_v48 = vld [vmem:[%s8843_s30 + $0x40] ss:$8 sps:$4 sm:$0xff]  }
 0x457   : > { %v2294_v4 = vpack.c.bf16 %v2292_v53, %v2292_v53  ;;  %v7838_v53 = vld [vmem:[%s8843_s30 + $0x50] ss:$8 sps:$4 sm:$0xff]  }
 0x458   : > { %2606 = vmatpush1.bf16.msra.mxu0 %v7822_v44 }
 0x459   : > { %5646 = vmatpush3.bf16.xpose.msra.mxu1 %v2294_v4  ;;  %2607 = vmatprep.subr.bf16.mxu0 %v7826_v46  ;;  %v7842_v4 = vld [vmem:[%s8843_s30 + $0x64] ss:$8 sps:$4 sm:$0xff]  }
 0x45a   : > { %5651 = vmatprep.subr.bf16.mxu1 %v8689_v56 }
 0x45c   : > { %2608 = vmatpush1.bf16.msra.mxu0 %v7830_v48 }
 0x45d   : > { %2609 = vmatprep.subr.bf16.mxu0 %v7834_v50 }
 0x460   : > { %5648 = vmatmul.mubr.bf16.vlgmr.msra.gmra.mrb[4].mxu1 %v2293_v1  ;;  %2610 = vmatpush1.bf16.msra.mxu0 %v7838_v53  ;;  %v7854_v1 = vld [vmem:[%s8843_s30 + $0x70] ss:$8 sps:$4 sm:$0xff]  }
 0x461   : > { %5652 = vmatpush3.bf16.msra.mxu1 %v2355_v11  ;;  %5653 = vmatprep.mubr.msk.bf16.mxu1 %vm6823_vm2, %v8689_v56  ;;  %v7931_v11 = vld [vmem:[%s8844_s27 + $0x74] ss:$8 sps:$4 sm:$0xff]  }
 0x462   : > { %2478 = vmatprep.subr.bf16.mxu1 %v7797_v28  ;;  %2611 = vmatprep.subr.bf16.mxu0 %v7842_v4 }
 0x464   : > { %2612 = vmatpush1.bf16.msra.mxu0 %v7846_v8 }
 0x465   : > { %2613 = vmatprep.subr.bf16.mxu0 %v7850_v10 }
 0x468   : > { %2614 = vmatpush1.bf16.msra.mxu0 %v7854_v1 }
 0x469   : > { %2897 = vmatprep.subr.bf16.mxu0 %v7622_v20 }
 0x46b   : > { %2632 = vmatmul.mubr.bf16.vlgmr.msra.gmra.mrb[8].mxu0 %v7706_v55  ;;  %v7927_v55 = vld [vmem:[%s8844_s27 + $0x60] ss:$8 sps:$4 sm:$0xff]  }
 0x46c   : > { %2898 = vmatpush1.bf16.msra.mxu0 %v7629_v23  ;;  %2929 = vmatprep.mubr.bf16.mxu0 %v8687_v22 }
 0x46d   : > { %2899 = vmatprep.subr.bf16.mxu0 %v7633_v25 }
 0x470   : > { %2900 = vmatpush1.bf16.msra.mxu0 %v7638_v27  ;;  %v7878_v27 = vld [vmem:[%s8844_s27] ss:$8 sps:$4 sm:$0xff]  }
 0x471   : > { %2901 = vmatprep.subr.bf16.mxu0 %v7643_v29 }
 0x474   : > { %2902 = vmatpush1.bf16.msra.mxu0 %v7647_v31  ;;  %v7881_v31 = vld [vmem:[%s8844_s27 + $0x14] ss:$8 sps:$4 sm:$0xff]  }
 0x475   : > { %2903 = vmatprep.subr.bf16.mxu0 %v7652_v33  ;;  %v7886_v33 = vld [vmem:[%s8844_s27 + $0x10] ss:$8 sps:$4 sm:$0xff]  }
 0x478   : > { %2904 = vmatpush1.bf16.msra.mxu0 %v7657_v35  ;;  %v7891_v35 = vld [vmem:[%s8844_s27 + $0x24] ss:$8 sps:$4 sm:$0xff]  }
 0x479   : > { %2905 = vmatprep.subr.bf16.mxu0 %v7662_v37  ;;  %v7895_v37 = vld [vmem:[%s8844_s27 + $0x20] ss:$8 sps:$4 sm:$0xff]  }
 0x47c   : > { %2906 = vmatpush1.bf16.msra.mxu0 %v7667_v39  ;;  %v7899_v39 = vld [vmem:[%s8844_s27 + $0x34] ss:$8 sps:$4 sm:$0xff]  }
 0x47d   : > { %2907 = vmatprep.subr.bf16.mxu0 %v7672_v41  ;;  %v7903_v41 = vld [vmem:[%s8844_s27 + $0x30] ss:$8 sps:$4 sm:$0xff]  }
 0x480   : > { %2908 = vmatpush1.bf16.msra.mxu0 %v7678_v43  ;;  %v7907_v43 = vld [vmem:[%s8844_s27 + $0x44] ss:$8 sps:$4 sm:$0xff]  }
 0x481   : > { %2909 = vmatprep.subr.bf16.mxu0 %v7683_v45  ;;  %v7911_v45 = vld [vmem:[%s8844_s27 + $0x40] ss:$8 sps:$4 sm:$0xff]  }
 0x484   : > { %2910 = vmatpush1.bf16.msra.mxu0 %v7687_v47  ;;  %v7915_v47 = vld [vmem:[%s8844_s27 + $0x54] ss:$8 sps:$4 sm:$0xff]  }
 0x485   : > { %2911 = vmatprep.subr.bf16.mxu0 %v7692_v49  ;;  %v7919_v49 = vld [vmem:[%s8844_s27 + $0x50] ss:$8 sps:$4 sm:$0xff]  }
 0x488   : > { %2912 = vmatpush1.bf16.msra.mxu0 %v7697_v51  ;;  %v7923_v51 = vld [vmem:[%s8844_s27 + $0x64] ss:$8 sps:$4 sm:$0xff]  }
 0x489   : > { %5657 = vmatprep.subr.bf16.mxu0 %v8689_v56 }
 0x533   : > { %v2329_v3 = vpop.f32.mrb[4].mxu1 }
 0x534   : > { %v2335_v7 = vmul.f32 0.10206208, %v2329_v3  ;;  %v5649_v9 = vpop.f32.mrb[5].mxu1  ;;  %v7935_v3 = vld [vmem:[%s8844_s27 + $0x70] ss:$8 sps:$4 sm:$0xff]  }
 0x535   : > { %v2332_v12 = vpop.f32.mrb[6].mxu1 }
 0x536   : > { %v5650_v13 = vpop.f32.mrb[7].mxu1  ;;  %v2337_v14 = vsel %vm2336_vm4, %v2335_v7, -inf }
 0x537   : > { %2338 = vmax.xlane.f32.xlu0 %v2337_v14 }
 0x5c4   : > { %v2339_v15 = vpop.xlane.xlu0 %2338 }
 0x5c5   : > { %v2340_v16 = vsub.f32 %v2335_v7, %v2339_v15  ;;  %v2633_v7 = vpop.f32.mrb[8].mxu0 }
 0x5c6   : > { %v2635_v9 = vpop.f32.mrb[9].mxu0 }
 0x5c7   : > { %v2341_v17 = vmul.f32 1.442695, %v2340_v16  ;;  %v2637_v12 = vpop.f32.mrb[10].mxu0 }
 0x5c8   : > { %v2638_v13 = vpop.f32.mrb[11].mxu0 }
 0x5c9   : > { %6147 = vpow2.f32 %v2341_v17 }
 0x5d3   : > { %v6148_v18 = vpop.eup %6147 }
 0x5d4   : > { %v2343_v19 = vsel %vm2336_vm4, %v6148_v18, 0.0 }
 0x5d5   : > { %2344 = vadd.xlane.f32.xlu0 %v2343_v19  ;;  %v1845_v19 = vld [vmem:[%s8846_s4] sm:$0x3] }
 0x662   : > { %v2345_v20 = vpop.xlane.xlu0 %2344 }
 0x663   : > { %6149 = vrcp.f32 %v2345_v20  ;;  %v7942_v20 = vrot.slane %v1845_v19, %v7756_v2 }
 0x665   : > { %8847 = vst [vmem:[#allocation91_spill] sm:$0xff] %v7942_v20 }
 0x66d   : > { %v6150_v23 = vpop.eup %6149 }
 0x66e   : > { %v2347_v25 = vmul.f32 %v6150_v23, %v6148_v18 }
 0x670   : > { %v2348_v29 = vpack.c.bf16 %v2347_v25, %v2347_v25  ;;  %v7945_v25 = vrot.slane %v1845_v19, %v7772_v26 }
 0x672   : > { %5654 = vmatmul.mubr.msk.bf16.vlgmr.msra.gmra.mrb[8].mxu1 %vm2336_vm4, %v2348_v29  ;;  %8848 = vst [vmem:[#allocation92_spill] sm:$0xff] %v7945_v25 }
 0x673   : > { %2479 = vmatpush1.bf16.msra.mxu1 %v7878_v27  ;;  %2510 = vmatprep.mubr.bf16.mxu1 %v8687_v22 }
 0x674   : > { %2480 = vmatprep.subr.bf16.mxu1 %v7881_v31 }
 0x677   : > { %2481 = vmatpush1.bf16.msra.mxu1 %v7886_v33 }
 0x678   : > { %2482 = vmatprep.subr.bf16.mxu1 %v7891_v35 }
 0x67b   : > { %2483 = vmatpush1.bf16.msra.mxu1 %v7895_v37 }
 0x67c   : > { %2484 = vmatprep.subr.bf16.mxu1 %v7899_v39 }
 0x67f   : > { %2485 = vmatpush1.bf16.msra.mxu1 %v7903_v41 }
 0x680   : > { %2486 = vmatprep.subr.bf16.mxu1 %v7907_v43 }
 0x683   : > { %2487 = vmatpush1.bf16.msra.mxu1 %v7911_v45 }
 0x684   : > { %2488 = vmatprep.subr.bf16.mxu1 %v7915_v47 }
 0x687   : > { %2489 = vmatpush1.bf16.msra.mxu1 %v7919_v49 }
 0x688   : > { %2490 = vmatprep.subr.bf16.mxu1 %v7923_v51 }
 0x68b   : > { %2491 = vmatpush1.bf16.msra.mxu1 %v7927_v55 }
 0x68c   : > { %2492 = vmatprep.subr.bf16.mxu1 %v7931_v11 }
 0x68f   : > { %2493 = vmatpush1.bf16.msra.mxu1 %v7935_v3 }
 0x745   : > { %v2391_v14 = vpop.f32.mrb[8].mxu1 }
 0x746   : > { %v2397_v15 = vpack.c.bf16 %v2391_v14, %v2391_v14  ;;  %v5655_v16 = vpop.f32.mrb[9].mxu1 }
 0x747   : > { %v2394_v17 = vpop.f32.mrb[10].mxu1 }
 0x748   : > { %v5656_v18 = vpop.f32.mrb[11].mxu1  ;;  %2511 = vmatmul.mubr.bf16.vlgmr.msra.gmra.mrb[12].mxu1 %v2397_v15  ;;  %v1799_v17 = vand.u32 127, %v1798_v0 }
 0x74a   : > { %v1800_v18 = vadd.s32 128, %v1799_v17  ;;  %v7966_v17 = vld [vmem:[%s8849_s28 + $0x40] sm:$0xff]  }
 0x74b   : > { %5456 = vmatprep.subr.bf16.mxu1 %v7966_v17 }
 0x74c   : > { %vm1802_vm5 = vcmp.lt.s32.totalorder %v1800_v18, 192  ;;  %v7976_v18 = vld [vmem:[%s8849_s28 + $0x48] sm:$0xff]  }
 0x81b   : > { %v2512_v23 = vpop.f32.mrb[12].mxu1 }
 0x81c   : > { %v2634_v29 = vadd.f32 %v2633_v7, %v2512_v23  ;;  %v2514_v22 = vpop.f32.mrb[13].mxu1  ;;  %v8850_v23 = vmov 0.0  }
 0x81d   : > { %v2636_v56 = vadd.f32 %v2635_v9, %v2514_v22  ;;  %v2516_v12 = vpop.f32.mrb[14].mxu1  ;;  %v7951_v22 = vsel %vm1802_vm5, 1.0, %v8850_v23 }
 0x81e   : > { %v2517_v13 = vpop.f32.mrb[15].mxu1  ;;  %v2651_v14 = vadd.f32 %v7942_v20, %v2634_v29  ;;  %8851 = vst [vmem:[#allocation93_spill] sm:$0xff] %v7951_v22 }
 0x81f   : > { %v2652_v16 = vadd.f32 %v7945_v25, %v2636_v56  ;;  %v8856_v25 = vmov 0  }
 0x821   : > { %v2653_v15 = vadd.f32 %v2652_v16, %v2651_v14 }
 0x823   : > { %2654 = vadd.xlane.f32.xlu1 %v2653_v15  ;;  %v7963_v15 = vld [vmem:[%s7609_s20] sm:$0xff] }
 0x824   : > { %8852 = vst [vmem:[#allocation94_spill] sm:$0xff] %v7963_v15 }
 0x8b0   : > { %v2655_v19 = vpop.xlane.xlu1 %2654 }
 0x8b1   : > { %v2656_v7 = vmul.f32 0.0052083335, %v2655_v19  ;;  %v7982_v19 = vld [vmem:[%s8849_s28 + $0x8] sm:$0xff]  }
 0x8b3   : > { %v7953_v9 = vsub.f32 %v2651_v14, %v2656_v7  ;;  %v2658_v29 = vsub.f32 %v2652_v16, %v2656_v7  ;;  %v7969_v14 = vld [vmem:[%s8849_s28] sm:$0xff]   ;;  %v7973_v16 = vpack.c.bf16 %v7963_v15, %v7963_v15  ;;  %v7987_v7 = vld [vmem:[%s8849_s28 + $0x50] sm:$0xff]  }
 0x8b4   : > { %5457 = vmatpush3.bf16.msra.mxu1 %v7969_v14  ;;  %v8029_v15 = vld [vmem:[%s8849_s28 + $0x70] sm:$0xff]  }
 0x8b5   : > { %v7956_v56 = vmul.f32 %v7951_v22, %v2658_v29  ;;  %v2661_v12 = vmul.f32 %v7953_v9, %v7953_v9  ;;  %2930 = vmatmul.mubr.bf16.vlgmr.msra.gmra.mrb[12].mxu0 %v7973_v16  ;;  %5458 = vmatprep.subr.bf16.mxu1 %v7976_v18  ;;  %v7994_v29 = vld [vmem:[%s8849_s28 + $0x10] sm:$0xff]   ;;  %v8039_v22 = vld [vmem:[%s8849_s28 + $0x78] sm:$0xff]  }
 0x8b6   : > { %5658 = vmatpush3.bf16.msra.mxu0 %v7704_v54  ;;  %5673 = vmatprep.mubr.msk.bf16.mxu0 %vm6823_vm2, %v8850_v23  ;;  %v7999_v54 = vld [vmem:[%s8849_s28 + $0x58] sm:$0xff]   ;;  %8854 = vst [vmem:[#allocation96_spill] sm:$0xff] %v8039_v22 }
 0x8b7   : > { %v2662_v0 = vmul.f32 %v7956_v56, %v7956_v56  ;;  %5659 = vmatprep.subr.bf16.mxu0 %v8850_v23 }
 0x8b8   : > { %5459 = vmatpush3.bf16.msra.mxu1 %v7982_v19 }
 0x8b9   : > { %v2663_v13 = vadd.f32 %v2662_v0, %v2661_v12  ;;  %5460 = vmatprep.subr.bf16.mxu1 %v7987_v7  ;;  %v8004_v12 = vld [vmem:[%s8849_s28 + $0x18] sm:$0xff]   ;;  %v8009_v0 = vld [vmem:[%s8849_s28 + $0x60] sm:$0xff]  }
 0x8ba   : > { %5660 = vmatpush3.bf16.msra.mxu0 %v7712_v57  ;;  %v8014_v57 = vld [vmem:[%s8849_s28 + $0x20] sm:$0xff]  }
 0x8bb   : > { %2664 = vadd.xlane.f32.xlu1 %v2663_v13  ;;  %5661 = vmatprep.subr.bf16.mxu0 %v8850_v23  ;;  %v8019_v13 = vld [vmem:[%s8849_s28 + $0x68] sm:$0xff]  }
 0x8bc   : > { %5461 = vmatpush3.bf16.msra.mxu1 %v7994_v29 }
 0x8bd   : > { %5462 = vmatprep.subr.bf16.mxu1 %v7999_v54 }
 0x8be   : > { %5662 = vmatpush3.bf16.msra.mxu0 %v7723_v58  ;;  %v8024_v58 = vld [vmem:[%s8849_s28 + $0x28] sm:$0xff]  }
 0x8bf   : > { %5663 = vmatprep.subr.bf16.mxu0 %v8850_v23 }
 0x8c0   : > { %5463 = vmatpush3.bf16.msra.mxu1 %v8004_v12 }
 0x8c1   : > { %5464 = vmatprep.subr.bf16.mxu1 %v8009_v0 }
 0x8c2   : > { %5664 = vmatpush3.bf16.msra.mxu0 %v7728_v59  ;;  %v8034_v59 = vld [vmem:[%s8849_s28 + $0x30] sm:$0xff]  }
 0x8c3   : > { %5665 = vmatprep.subr.bf16.mxu0 %v8850_v23  ;;  %8853 = vst [vmem:[#allocation95_spill] sm:$0xff] %v8034_v59 }
 0x8c4   : > { %5465 = vmatpush3.bf16.msra.mxu1 %v8014_v57 }
 0x8c5   : > { %5466 = vmatprep.subr.bf16.mxu1 %v8019_v13 }
 0x8c6   : > { %5666 = vmatpush3.bf16.msra.mxu0 %v7733_v60  ;;  %v8044_v60 = vld [vmem:[%s8849_s28 + $0x38] sm:$0xff]  }
 0x8c7   : > { %5667 = vmatprep.subr.bf16.mxu0 %v8850_v23  ;;  %8855 = vst [vmem:[#allocation97_spill] sm:$0xff] %v8044_v60 }
 0x8c8   : > { %5467 = vmatpush3.bf16.msra.mxu1 %v8024_v58 }
 0x8c9   : > { %5468 = vmatprep.subr.bf16.mxu1 %v8029_v15 }
 0x8ca   : > { %5668 = vmatpush3.bf16.msra.mxu0 %v7738_v61  ;;  %v6203_v61 = vld [vmem:[%s7593_s17 + $0xc] ss:$20 sps:$4 sm:$0xff]  }
 0x8cb   : > { %5669 = vmatprep.subr.bf16.mxu0 %v8850_v23 }
 0x8cc   : > { %5469 = vmatpush3.bf16.msra.mxu1 %v8034_v59 }
 0x8cd   : > { %5470 = vmatprep.subr.bf16.mxu1 %v8039_v22 }
 0x8ce   : > { %5670 = vmatpush3.bf16.msra.mxu0 %v7743_v62 }
 0x8cf   : > { %5671 = vmatprep.subr.bf16.mxu0 %v8850_v23 }
 0x8d0   : > { %5471 = vmatpush3.bf16.msra.mxu1 %v8044_v60 }
 0x8d1   : > { %2938 = vmatprep.subr.bf16.mxu1 %v6203_v61 }
 0x8d2   : > { %5672 = vmatpush3.bf16.msra.mxu0 %v7748_v63 }
 0x8d3   : > { %3128 = vmatprep.subr.bf16.mxu0 %v7797_v28 }
 0x8d5   : > { %5674 = vmatmul.mubr.bf16.vlgmr.msra.gmra.mrb[16].mxu0 %v7973_v16 }
 0x8d6   : > { %3129 = vmatpush1.bf16.msra.mxu0 %v7878_v27  ;;  %3160 = vmatprep.mubr.bf16.mxu0 %v8856_v25  ;;  %v1846_v27 = vld [vmem:[%s8857_s10] sm:$0x3] }
 0x8d7   : > { %3130 = vmatprep.subr.bf16.mxu0 %v7881_v31  ;;  %v1847_v31 = vld [vmem:[%s8858_s24] sm:$0x3] }
 0x8da   : > { %3131 = vmatpush1.bf16.msra.mxu0 %v7886_v33  ;;  %v8076_v33 = vrot.slane %v1846_v27, %v7756_v2 }
 0x8db   : > { %3132 = vmatprep.subr.bf16.mxu0 %v7891_v35  ;;  %v8079_v35 = vrot.slane %v1846_v27, %v7772_v26 }
 0x8dc   : > { %8859 = vst [vmem:[#allocation98_spill] sm:$0xff] %v8076_v33 }
 0x8dd   : > { %8860 = vst [vmem:[#allocation99_spill] sm:$0xff] %v8079_v35 }
 0x8de   : > { %3133 = vmatpush1.bf16.msra.mxu0 %v7895_v37 }
 0x8df   : > { %3134 = vmatprep.subr.bf16.mxu0 %v7899_v39 }
 0x8e2   : > { %3135 = vmatpush1.bf16.msra.mxu0 %v7903_v41 }
 0x8e3   : > { %3136 = vmatprep.subr.bf16.mxu0 %v7907_v43  ;;  %v8084_v43 = vrot.slane %v1847_v31, %v7756_v2 }
 0x8e5   : > { %8861 = vst [vmem:[#allocation100_spill] sm:$0xff] %v8084_v43 }
 0x8e6   : > { %3137 = vmatpush1.bf16.msra.mxu0 %v7911_v45  ;;  %v8087_v45 = vrot.slane %v1847_v31, %v7772_v26 }
 0x8e7   : > { %3138 = vmatprep.subr.bf16.mxu0 %v7915_v47 }
 0x8e8   : > { %8862 = vst [vmem:[#allocation101_spill] sm:$0xff] %v8087_v45 }
 0x8ea   : > { %3139 = vmatpush1.bf16.msra.mxu0 %v7919_v49 }
 0x8eb   : > { %3140 = vmatprep.subr.bf16.mxu0 %v7923_v51 }
 0x8ee   : > { %3141 = vmatpush1.bf16.msra.mxu0 %v7927_v55 }
 0x8ef   : > { %3142 = vmatprep.subr.bf16.mxu0 %v7931_v11 }
 0x8f2   : > { %3143 = vmatpush1.bf16.msra.mxu0 %v7935_v3 }
 0x8f3   : > { %5491 = vmatprep.subr.bf16.mxu0 %v7966_v17 }
 0x948   : > { %v2665_v62 = vpop.xlane.xlu1 %2664 }
 0x949   : > { %v2666_v63 = vmul.f32 0.0052083335, %v2665_v62 }
 0x94b   : > { %v2667_v28 = vadd.f32 1e-05, %v2666_v63 }
 0x94d   : > { %6151 = vrsqrt.f32 %v2667_v28 }
 0x957   : > { %v6152_v37 = vpop.eup %6151 }
 0x958   : > { %v2669_v39 = vmul.f32 %v6152_v37, %v7953_v9  ;;  %v2670_v41 = vmul.f32 %v6152_v37, %v7956_v56 }
 0x95a   : > { %v2683_v47 = vmul.f32 %v8079_v35, %v2670_v41  ;;  %v2682_v49 = vmul.f32 %v8076_v33, %v2669_v39 }
 0x95c   : > { %v2696_v51 = vadd.f32 %v8087_v45, %v2683_v47  ;;  %v2695_v55 = vadd.f32 %v8084_v43, %v2682_v49 }
 0x95e   : > { %v2700_v11 = vmul.f32 0.70710677, %v2696_v51  ;;  %v2699_v3 = vmul.f32 0.70710677, %v2695_v55 }
 0x960   : > { %v2706_v17 = vand.u32 2147483647, %v2700_v11  ;;  %v2705_v9 = vand.u32 2147483647, %v2699_v3  ;;  %vm2702_vm6 = vcmp.ge.f32.partialorder %v2700_v11, 0.0  ;;  %vm2701_vm7 = vcmp.ge.f32.partialorder %v2699_v3, 0.0 }
 0x962   : > { %v2708_v61 = vmul.f32 0.3275911, %v2706_v17  ;;  %v2707_v56 = vmul.f32 0.3275911, %v2705_v9  ;;  %v2734_v28 = vsub.f32 0.0, %v2706_v17  ;;  %v2733_v27 = vsub.f32 0.0, %v2705_v9 }
 0x964   : > { %v2710_v62 = vadd.f32 1.0, %v2708_v61  ;;  %v2709_v63 = vadd.f32 1.0, %v2707_v56  ;;  %v2736_v37 = vmul.f32 %v2734_v28, %v2706_v17  ;;  %v2735_v26 = vmul.f32 %v2733_v27, %v2705_v9 }
 0x966   : > { %6153 = vrcp.f32 %v2710_v62  ;;  %v2739_v49 = vmul.f32 1.442695, %v2736_v37  ;;  %v2737_v33 = vmul.f32 1.442695, %v2735_v26 }
 0x967   : > { %6155 = vrcp.f32 %v2709_v63 }
 0x968   : > { %6157 = vpow2.f32 %v2739_v49 }
 0x969   : > { %6159 = vpow2.f32 %v2737_v33 }
 0x970   : > { %v6154_v31 = vpop.eup %6153 }
 0x971   : > { %v6156_v41 = vpop.eup %6155  ;;  %v2716_v39 = vmul.f32 1.0614054, %v6154_v31 }
 0x972   : > { %v2715_v47 = vmul.f32 1.0614054, %v6156_v41  ;;  %v6158_v27 = vpop.eup %6157 }
 0x973   : > { %v2718_v2 = vadd.f32 -1.4531521, %v2716_v39  ;;  %v6160_v37 = vpop.eup %6159 }
 0x974   : > { %v2717_v43 = vadd.f32 -1.4531521, %v2715_v47 }
 0x975   : > { %v2720_v45 = vmul.f32 %v6154_v31, %v2718_v2 }
 0x976   : > { %v2719_v35 = vmul.f32 %v6156_v41, %v2717_v43 }
 0x977   : > { %v2722_v20 = vadd.f32 1.4214138, %v2720_v45  ;;  %v8707_v45 = vmov -1.0  }
 0x978   : > { %v2721_v61 = vadd.f32 1.4214138, %v2719_v35 }
 0x979   : > { %v2724_v56 = vmul.f32 %v6154_v31, %v2722_v20  ;;  %v2704_v20 = vsel %vm2702_vm6, 1.0, %v8707_v45 }
 0x97a   : > { %v2723_v62 = vmul.f32 %v6156_v41, %v2721_v61 }
 0x97b   : > { %v2726_v63 = vadd.f32 -0.28449672, %v2724_v56  ;;  %v6204_v56 = vld [vmem:[%s7593_s17 + $0x8] ss:$20 sps:$4 sm:$0xff]  }
 0x97c   : > { %v2725_v60 = vadd.f32 -0.28449672, %v2723_v62  ;;  %v6207_v62 = vld [vmem:[%s7593_s17 + $0x5c] ss:$20 sps:$4 sm:$0xff]  }
 0x97d   : > { %v2728_v22 = vmul.f32 %v6154_v31, %v2726_v63  ;;  %v6208_v63 = vld [vmem:[%s7593_s17 + $0x58] ss:$20 sps:$4 sm:$0xff]  }
 0x97e   : > { %v2727_v17 = vmul.f32 %v6156_v41, %v2725_v60  ;;  %v2703_v60 = vsel %vm2701_vm7, 1.0, %v8707_v45 }
 0x97f   : > { %v2730_v28 = vadd.f32 0.2548296, %v2728_v22 }
 0x980   : > { %v2729_v59 = vadd.f32 0.2548296, %v2727_v17  ;;  %v6209_v17 = vld [vmem:[%s7593_s17 + $0x84] ss:$20 sps:$4 sm:$0xff]  }
 0x981   : > { %v2732_v9 = vmul.f32 %v6154_v31, %v2730_v28  ;;  %v2698_v31 = vmul.f32 0.5, %v2696_v51  ;;  %v6205_v51 = vld [vmem:[%s7593_s17 + $0x34] ss:$20 sps:$4 sm:$0xff]  }
 0x982   : > { %v2731_v39 = vmul.f32 %v6156_v41, %v2729_v59  ;;  %v2697_v59 = vmul.f32 0.5, %v2695_v55  ;;  %v6206_v55 = vld [vmem:[%s7593_s17 + $0x30] ss:$20 sps:$4 sm:$0xff]   ;;  %v6210_v28 = vld [vmem:[%s7593_s17 + $0x80] ss:$20 sps:$4 sm:$0xff]  }
 0x983   : > { %v2742_v2 = vmul.f32 %v6158_v27, %v2732_v9  ;;  %v6211_v9 = vld [vmem:[%s7593_s17 + $0xac] ss:$20 sps:$4 sm:$0xff]   ;;  %v6212_v27 = vld [vmem:[%s7593_s17 + $0xa8] ss:$20 sps:$4 sm:$0xff]  }
 0x984   : > { %v2741_v26 = vmul.f32 %v6160_v37, %v2731_v39  ;;  %v6213_v39 = vld [vmem:[%s7593_s17 + $0xd4] ss:$20 sps:$4 sm:$0xff]   ;;  %v6214_v37 = vld [vmem:[%s7593_s17 + $0xd0] ss:$20 sps:$4 sm:$0xff]  }
 0x985   : > { %v2744_v43 = vsub.f32 1.0, %v2742_v2  ;;  %v6215_v2 = vld [vmem:[%s7593_s17 + $0xfc] ss:$20 sps:$4 sm:$0xff]  }
 0x986   : > { %v2743_v33 = vsub.f32 1.0, %v2741_v26  ;;  %v6216_v26 = vld [vmem:[%s7593_s17 + $0xf8] ss:$20 sps:$4 sm:$0xff]  }
 0x987   : > { %v2746_v35 = vmul.f32 %v2744_v43, %v2704_v20  ;;  %v6217_v43 = vld [vmem:[%s7593_s17 + $0x124] ss:$20 sps:$4 sm:$0xff]   ;;  %v6218_v20 = vld [vmem:[%s7593_s17 + $0x120] ss:$20 sps:$4 sm:$0xff]   ;;  %s8866_s17 = sld [smem:[#allocation79_spill]] }
 0x988   : > { %v2745_v22 = vmul.f32 %v2743_v33, %v2703_v60  ;;  %v1811_v33 = vld [vmem:[%s1628_s18] sm:$0xff] }
 0x989   : > { %v2748_v47 = vadd.f32 1.0, %v2746_v35  ;;  %v2931_v35 = vpop.f32.mrb[12].mxu0 }
 0x98a   : > { %v2747_v11 = vadd.f32 1.0, %v2745_v22  ;;  %v2932_v60 = vadd.f32 %v2931_v35, %v7760_v5  ;;  %v2933_v22 = vpop.f32.mrb[13].mxu0 }
 0x98b   : > { %v2750_v3 = vmul.f32 %v2748_v47, %v2698_v31  ;;  %v2935_v31 = vpop.f32.mrb[14].mxu0 }
 0x98c   : > { %v2749_v41 = vmul.f32 %v2747_v11, %v2697_v59  ;;  %v3019_v47 = vmul.f32 %v2932_v60, %v1811_v33  ;;  %v2936_v59 = vpop.f32.mrb[15].mxu0  ;;  %v2934_v11 = vadd.f32 %v2933_v22, %v7775_v30 }
 0x98d   : > { %v2752_v49 = vpack.c.bf16 %v2750_v3, %v2750_v3  ;;  %v1812_v3 = vld [vmem:[%s1632_s5] sm:$0xff]  ;;  %s8867_s5 = sld [smem:[#allocation86_spill]]  ;;  %s8868_s18 = scalar_lea.vmem [#allocation15], %s8866_s17 }
 0x98e   : > { %v2751_v61 = vpack.c.bf16 %v2749_v41, %v2749_v41 }
 0x98f   : > { %2887 = vmatprep.mubr.bf16.mxu1 %v2752_v49  ;;  %v3022_v49 = vmul.f32 %v2934_v11, %v1811_v33 }
 0x990   : > { %2888 = vmatmul.mubr.bf16.vlgmr.msra.gmra.mrb[16].mxu1 %v2751_v61 }
 0x991   : > { %2939 = vmatpush1.bf16.msra.mxu1 %v6204_v56  ;;  %2970 = vmatprep.mubr.bf16.mxu1 %v8856_v25 }
 0x992   : > { %2940 = vmatprep.subr.bf16.mxu1 %v6205_v51 }
 0x995   : > { %2941 = vmatpush1.bf16.msra.mxu1 %v6206_v55 }
 0x996   : > { %2942 = vmatprep.subr.bf16.mxu1 %v6207_v62 }
 0x999   : > { %2943 = vmatpush1.bf16.msra.mxu1 %v6208_v63 }
 0x99a   : > { %2944 = vmatprep.subr.bf16.mxu1 %v6209_v17 }
 0x99d   : > { %2945 = vmatpush1.bf16.msra.mxu1 %v6210_v28 }
 0x99e   : > { %2946 = vmatprep.subr.bf16.mxu1 %v6211_v9 }
 0x9a1   : > { %2947 = vmatpush1.bf16.msra.mxu1 %v6212_v27 }
 0x9a2   : > { %2948 = vmatprep.subr.bf16.mxu1 %v6213_v39 }
 0x9a5   : > { %2949 = vmatpush1.bf16.msra.mxu1 %v6214_v37 }
 0x9a6   : > { %2950 = vmatprep.subr.bf16.mxu1 %v6215_v2 }
 0x9a8   : > { %v3013_v41 = vpop.f32.mrb[16].mxu0 }
 0x9a9   : > { %2951 = vmatpush1.bf16.msra.mxu1 %v6216_v26  ;;  %v3014_v61 = vadd.f32 %v3013_v41, %v7777_v32  ;;  %v5675_v56 = vpop.f32.mrb[17].mxu0 }
 0x9aa   : > { %2952 = vmatprep.subr.bf16.mxu1 %v6217_v43  ;;  %v3016_v51 = vpop.f32.mrb[18].mxu0 }
 0x9ab   : > { %v3023_v5 = vmul.f32 %v3014_v61, %v1812_v3  ;;  %v5676_v55 = vpop.f32.mrb[19].mxu0 }
 0x9ad   : > { %2953 = vmatpush1.bf16.msra.mxu1 %v6218_v20  ;;  %v3024_v62 = vadd.f32 %v3023_v5, %v3022_v49 }
 0x9ae   : > { %5677 = vmatprep.subr.bf16.mxu1 %v8850_v23 }
 0x9af   : > { %v3026_v63 = vpack.c.bf16 %v3024_v62, %v3024_v62  ;;  %v8227_v62 = vld [vmem:[%s8867_s5 + $0x18] sm:$0xff]  }
 0x9b0   : > { %2971 = vmatmul.mubr.bf16.vlgmr.msra.gmra.mrb[20].mxu1 %v7973_v16 }
 0x9b1   : > { %5679 = vmatprep.mubr.msk.bf16.mxu1 %vm6823_vm2, %v8850_v23 }
 0x9b6   : > { %5678 = vmatpush3.bf16.xpose.msra.mxu1 %v3026_v63  ;;  %v8232_v63 = vld [vmem:[%s8867_s5 + $0x20] sm:$0xff]  }
 0x9b7   : > { %5683 = vmatprep.subr.bf16.mxu1 %v8850_v23 }
 0xa63   : > { %v5472_v17 = vpop.f32.mrb[16].mxu1 }
 0xa64   : > { %v5473_v28 = vpop.f32.mrb[17].mxu1 }
 0xa65   : > { %v8125_v9 = vadd.f32 %v5473_v28, %v5472_v17  ;;  %v5475_v30 = vpop.f32.mrb[18].mxu1  ;;  %v8237_v17 = vld [vmem:[%s8867_s5 + $0x28] sm:$0xff]   ;;  %v8242_v28 = vld [vmem:[%s8867_s5 + $0x30] sm:$0xff]  }
 0xa66   : > { %v5476_v27 = vpop.f32.mrb[19].mxu1 }
 0xa83   : > { %v2972_v39 = vpop.f32.mrb[20].mxu1 }
 0xa84   : > { %v2974_v37 = vpop.f32.mrb[21].mxu1  ;;  %v2973_v2 = vadd.f32 %v2972_v39, %v7781_v52 }
 0xa85   : > { %v2975_v32 = vadd.f32 %v2974_v37, %v7762_v6  ;;  %v2976_v26 = vpop.f32.mrb[22].mxu1 }
 0xa86   : > { %v2977_v43 = vpop.f32.mrb[23].mxu1  ;;  %v3080_v33 = vpack.c.bf16 %v2973_v2, %v2973_v2 }
 0xa87   : > { %v3020_v20 = vmul.f32 %v2975_v32, %v1812_v3 }
 0xa88   : > { %v3085_v22 = vsel %vm2353_vm3, %v3080_v33, 0 }
 0xa89   : > { %v3021_v35 = vadd.f32 %v3020_v20, %v3019_v47 }
 0xa8b   : > { %v3025_v60 = vpack.c.bf16 %v3021_v35, %v3021_v35 }
 0xa8d   : > { %5680 = vmatmul.mubr.bf16.vlgmr.msra.gmra.mrb[24].mxu1 %v3025_v60 }
 0xa8e   : > { %5684 = vmatpush3.bf16.msra.mxu1 %v3085_v22  ;;  %5685 = vmatprep.mubr.msk.bf16.mxu1 %vm6823_vm2, %v8850_v23 }
 0xa8f   : > { %3169 = vmatprep.subr.bf16.mxu1 %v7794_v24 }
 0xb60   : > { %v3061_v31 = vpop.f32.mrb[24].mxu1 }
 0xb61   : > { %v3067_v59 = vmul.f32 0.10206208, %v3061_v31  ;;  %v5681_v52 = vpop.f32.mrb[25].mxu1  ;;  %v8872_v31 = vld [vmem:[#allocation91_spill] sm:$0xff] }
 0xb62   : > { %v3064_v11 = vpop.f32.mrb[26].mxu1 }
 0xb63   : > { %v5682_v6 = vpop.f32.mrb[27].mxu1  ;;  %v3068_v41 = vsel %vm2336_vm4, %v3067_v59, -inf  ;;  %v8873_v11 = vld [vmem:[#allocation92_spill] sm:$0xff] }
 0xb64   : > { %3069 = vmax.xlane.f32.xlu0 %v3068_v41 }
 0xbf1   : > { %v3070_v3 = vpop.xlane.xlu0 %3069 }
 0xbf2   : > { %v3071_v47 = vsub.f32 %v3067_v59, %v3070_v3 }
 0xbf4   : > { %v3072_v49 = vmul.f32 1.442695, %v3071_v47 }
 0xbf6   : > { %6161 = vpow2.f32 %v3072_v49 }
 0xc00   : > { %v6162_v61 = vpop.eup %6161 }
 0xc01   : > { %v3074_v56 = vsel %vm2336_vm4, %v6162_v61, 0.0 }
 0xc02   : > { %3075 = vadd.xlane.f32.xlu1 %v3074_v56  ;;  %v8874_v56 = vld [vmem:[#allocation93_spill] sm:$0xff] }
 0xc8f   : > { %v3076_v51 = vpop.xlane.xlu1 %3075 }
 0xc90   : > { %6163 = vrcp.f32 %v3076_v51 }
 0xc9a   : > { %v6164_v5 = vpop.eup %6163 }
 0xc9b   : > { %v3078_v24 = vmul.f32 %v6164_v5, %v6162_v61 }
 0xc9d   : > { %v3079_v55 = vpack.c.bf16 %v3078_v24, %v3078_v24 }
 0xc9f   : > { %5686 = vmatmul.mubr.msk.bf16.vlgmr.msra.gmra.mrb[28].mxu1 %vm2336_vm4, %v3079_v55 }
 0xca0   : > { %3170 = vmatpush1.bf16.msra.mxu1 %v7791_v21  ;;  %3201 = vmatprep.mubr.bf16.mxu1 %v8856_v25  ;;  %v8153_v21 = vld [vmem:[%s8865_s13] sm:$0xff]  }
 0xca1   : > { %3171 = vmatprep.subr.bf16.mxu1 %v7800_v34  ;;  %v8159_v34 = vld [vmem:[%s8865_s13 + $0x8] sm:$0xff]  }
 0xca4   : > { %3172 = vmatpush1.bf16.msra.mxu1 %v7806_v36  ;;  %v8166_v36 = vld [vmem:[%s8865_s13 + $0x10] sm:$0xff]  }
 0xca5   : > { %3173 = vmatprep.subr.bf16.mxu1 %v7810_v38  ;;  %v8171_v38 = vld [vmem:[%s8865_s13 + $0x18] sm:$0xff]  }
 0xca8   : > { %3174 = vmatpush1.bf16.msra.mxu1 %v7814_v40  ;;  %v8176_v40 = vld [vmem:[%s8865_s13 + $0x20] sm:$0xff]  }
 0xca9   : > { %3175 = vmatprep.subr.bf16.mxu1 %v7818_v42  ;;  %v8181_v42 = vld [vmem:[%s8865_s13 + $0x28] sm:$0xff]  }
 0xcac   : > { %3176 = vmatpush1.bf16.msra.mxu1 %v7822_v44  ;;  %v8186_v44 = vld [vmem:[%s8868_s18] ss:$0 sm:$0xff] }
 0xcad   : > { %3177 = vmatprep.subr.bf16.mxu1 %v7826_v46  ;;  %v8190_v46 = vld [vmem:[%s8865_s13 + $0x30] sm:$0xff]  }
 0xcb0   : > { %3178 = vmatpush1.bf16.msra.mxu1 %v7830_v48  ;;  %v2890_v48 = vadd.f32 %v8125_v9, %v8186_v44  ;;  %v8247_v9 = vld [vmem:[%s8867_s5 + $0x38] sm:$0xff]  }
 0xcb1   : > { %3179 = vmatprep.subr.bf16.mxu1 %v7834_v50  ;;  %v8197_v50 = vld [vmem:[%s8865_s13 + $0x38] sm:$0xff]  }
 0xcb4   : > { %3180 = vmatpush1.bf16.msra.mxu1 %v7838_v53  ;;  %v6219_v53 = vld [vmem:[%s7605_s15] sm:$0xff] }
 0xcb5   : > { %3181 = vmatprep.subr.bf16.mxu1 %v7842_v4  ;;  %v8200_v4 = vadd.f32 %v6219_v53, %v2890_v48 }
 0xcb8   : > { %3182 = vmatpush1.bf16.msra.mxu1 %v7846_v8  ;;  %v8205_v8 = vld [vmem:[%s8867_s5] sm:$0xff]  }
 0xcb9   : > { %3183 = vmatprep.subr.bf16.mxu1 %v7850_v10  ;;  %v8209_v10 = vpack.c.bf16 %v8200_v4, %v8200_v4 }
 0xcbc   : > { %3184 = vmatpush1.bf16.msra.mxu1 %v7854_v1  ;;  %v8215_v1 = vld [vmem:[%s8867_s5 + $0x8] sm:$0xff]  }
 0xcbd   : > { %5689 = vmatprep.subr.bf16.mxu1 %v8850_v23 }
 0xcbf   : > { %3202 = vmatmul.mubr.bf16.vlgmr.msra.gmra.mrb[32].mxu1 %v7973_v16  ;;  %v8222_v16 = vld [vmem:[%s8867_s5 + $0x10] sm:$0xff]  }
 0xcc0   : > { %5690 = vmatpush3.bf16.msra.mxu1 %v8153_v21  ;;  %5705 = vmatprep.mubr.msk.bf16.mxu1 %vm6823_vm2, %v8850_v23 }
 0xcc1   : > { %5691 = vmatprep.subr.bf16.mxu1 %v8850_v23 }
 0xcc4   : > { %5692 = vmatpush3.bf16.msra.mxu1 %v8159_v34 }
 0xcc5   : > { %5693 = vmatprep.subr.bf16.mxu1 %v8850_v23 }
 0xcc8   : > { %5694 = vmatpush3.bf16.msra.mxu1 %v8166_v36 }
 0xcc9   : > { %5695 = vmatprep.subr.bf16.mxu1 %v8850_v23 }
 0xccc   : > { %5696 = vmatpush3.bf16.msra.mxu1 %v8171_v38 }
 0xccd   : > { %5697 = vmatprep.subr.bf16.mxu1 %v8850_v23 }
 0xcd0   : > { %5698 = vmatpush3.bf16.msra.mxu1 %v8176_v40 }
 0xcd1   : > { %5699 = vmatprep.subr.bf16.mxu1 %v8850_v23 }
 0xcd4   : > { %5700 = vmatpush3.bf16.msra.mxu1 %v8181_v42 }
 0xcd5   : > { %5701 = vmatprep.subr.bf16.mxu1 %v8850_v23 }
 0xcd8   : > { %5702 = vmatpush3.bf16.msra.mxu1 %v8190_v46 }
 0xcd9   : > { %5703 = vmatprep.subr.bf16.mxu1 %v8850_v23 }
 0xcdc   : > { %5704 = vmatpush3.bf16.msra.mxu1 %v8197_v50 }
 0xcdd   : > { %5729 = vmatprep.subr.bf16.mxu1 %v8850_v23 }
 0xcdf   : > { %5706 = vmatmul.mubr.bf16.vlgmr.msra.gmra.mrb[36].mxu1 %v8209_v10 }
 0xce0   : > { %5730 = vmatpush3.bf16.msra.mxu1 %v8205_v8  ;;  %5745 = vmatprep.mubr.msk.bf16.mxu1 %vm6823_vm2, %v8850_v23 }
 0xce1   : > { %5731 = vmatprep.subr.bf16.mxu1 %v8850_v23 }
 0xce4   : > { %5732 = vmatpush3.bf16.msra.mxu1 %v8215_v1 }
 0xce5   : > { %5733 = vmatprep.subr.bf16.mxu1 %v8850_v23 }
 0xce8   : > { %5734 = vmatpush3.bf16.msra.mxu1 %v8222_v16 }
 0xce9   : > { %5735 = vmatprep.subr.bf16.mxu1 %v8850_v23 }
 0xcec   : > { %5736 = vmatpush3.bf16.msra.mxu1 %v8227_v62 }
 0xced   : > { %5737 = vmatprep.subr.bf16.mxu1 %v8850_v23 }
 0xcf0   : > { %5738 = vmatpush3.bf16.msra.mxu1 %v8232_v63 }
 0xcf1   : > { %5739 = vmatprep.subr.bf16.mxu1 %v8850_v23 }
 0xcf4   : > { %5740 = vmatpush3.bf16.msra.mxu1 %v8237_v17 }
 0xcf5   : > { %5741 = vmatprep.subr.bf16.mxu1 %v8850_v23 }
 0xcf8   : > { %5742 = vmatpush3.bf16.msra.mxu1 %v8242_v28 }
 0xcf9   : > { %5743 = vmatprep.subr.bf16.mxu1 %v8850_v23 }
 0xcfc   : > { %5744 = vmatpush3.bf16.msra.mxu1 %v8247_v9 }
 0xcfd   : > { %5769 = vmatprep.subr.bf16.mxu1 %v8850_v23 }
 0xcff   : > { %5746 = vmatmul.mubr.bf16.vlgmr.msra.gmra.mrb[40].mxu1 %v8209_v10 }
 0xd00   : > { %5771 = vmatprep.mubr.msk.bf16.mxu1 %vm6823_vm2, %v8850_v23 }
 0xd72   : > { %v3121_v30 = vpop.f32.mrb[28].mxu1 }
 0xd73   : > { %v3127_v27 = vpack.c.bf16 %v3121_v30, %v3121_v30  ;;  %v5687_v39 = vpop.f32.mrb[29].mxu1 }
 0xd74   : > { %v3124_v37 = vpop.f32.mrb[30].mxu1 }
 0xd75   : > { %v5688_v2 = vpop.f32.mrb[31].mxu1  ;;  %3161 = vmatmul.mubr.bf16.vlgmr.msra.gmra.mrb[20].mxu0 %v3127_v27 }
 0xd76   : > { %5492 = vmatpush3.bf16.msra.mxu0 %v7969_v14  ;;  %v8869_v14 = vld [vmem:[#allocation95_spill] sm:$0xff] }
 0xd77   : > { %5493 = vmatprep.subr.bf16.mxu0 %v7976_v18  ;;  %v8870_v18 = vld [vmem:[#allocation96_spill] sm:$0xff]  ;;  %v8875_v2 = vld [vmem:[#allocation99_spill] sm:$0xff] }
 0xd7a   : > { %5494 = vmatpush3.bf16.msra.mxu0 %v7982_v19 }
 0xd7b   : > { %5495 = vmatprep.subr.bf16.mxu0 %v7987_v7  ;;  %v8871_v7 = vld [vmem:[#allocation97_spill] sm:$0xff] }
 0xd7e   : > { %5496 = vmatpush3.bf16.msra.mxu0 %v7994_v29 }
 0xd7f   : > { %5497 = vmatprep.subr.bf16.mxu0 %v7999_v54 }
 0xd82   : > { %5498 = vmatpush3.bf16.msra.mxu0 %v8004_v12 }
 0xd83   : > { %5499 = vmatprep.subr.bf16.mxu0 %v8009_v0 }
 0xd86   : > { %5500 = vmatpush3.bf16.msra.mxu0 %v8014_v57 }
 0xd87   : > { %5501 = vmatprep.subr.bf16.mxu0 %v8019_v13 }
 0xd8a   : > { %5502 = vmatpush3.bf16.msra.mxu0 %v8024_v58 }
 0xd8b   : > { %5503 = vmatprep.subr.bf16.mxu0 %v8029_v15 }
 0xd8e   : > { %5504 = vmatpush3.bf16.msra.mxu0 %v8869_v14 }
 0xd8f   : > { %5505 = vmatprep.subr.bf16.mxu0 %v8870_v18  ;;  %v8876_v18 = vld [vmem:[#allocation98_spill] sm:$0xff] }
 0xd92   : > { %v3203_v19 = vpop.f32.mrb[32].mxu1  ;;  %5506 = vmatpush3.bf16.msra.mxu0 %v8871_v7  ;;  %v8877_v7 = vld [vmem:[#allocation101_spill] sm:$0xff] }
 0xd93   : > { %v3205_v29 = vpop.f32.mrb[33].mxu1  ;;  %5709 = vmatprep.subr.bf16.mxu0 %v8850_v23 }
 0xd94   : > { %v3207_v54 = vpop.f32.mrb[34].mxu1 }
 0xd95   : > { %v3208_v12 = vpop.f32.mrb[35].mxu1  ;;  %v8878_v54 = vld [vmem:[#allocation100_spill] sm:$0xff] }
 0xdb2   : > { %v8271_v0 = vpop.f32.mrb[36].mxu1 }
 0xdb3   : > { %v5707_v57 = vpop.f32.mrb[37].mxu1 }
 0xdb4   : > { %v3526_v13 = vpop.f32.mrb[38].mxu1 }
 0xdb5   : > { %v5708_v32 = vpop.f32.mrb[39].mxu1 }
 0xdd2   : > { %v8273_v58 = vpop.f32.mrb[40].mxu1 }
 0xdd3   : > { %v5747_v15 = vpop.f32.mrb[41].mxu1 }
 0xdd4   : > { %v3662_v26 = vpop.f32.mrb[42].mxu1 }
 0xdd5   : > { %v5748_v43 = vpop.f32.mrb[43].mxu1 }
 0xe48   : > { %v3162_v20 = vpop.f32.mrb[20].mxu0 }
 0xe49   : > { %v3204_v33 = vadd.f32 %v3203_v19, %v3162_v20  ;;  %v3164_v35 = vpop.f32.mrb[21].mxu0 }
 0xe4a   : > { %v3206_v60 = vadd.f32 %v3205_v29, %v3164_v35  ;;  %v3166_v22 = vpop.f32.mrb[22].mxu0 }
 0xe4b   : > { %v3210_v59 = vadd.f32 %v3204_v33, %v8872_v31  ;;  %v3167_v52 = vpop.f32.mrb[23].mxu0 }
 0xe4c   : > { %v3211_v6 = vadd.f32 %v3206_v60, %v8873_v11 }
 0xe4e   : > { %v3212_v41 = vadd.f32 %v3211_v6, %v3210_v59 }
 0xe50   : > { %3213 = vadd.xlane.f32.xlu0 %v3212_v41 }
 0xedd   : > { %v3214_v3 = vpop.xlane.xlu0 %3213 }
 0xede   : > { %v3215_v47 = vmul.f32 0.0052083335, %v3214_v3 }
 0xee0   : > { %v3216_v49 = vsub.f32 %v3210_v59, %v3215_v47  ;;  %v3217_v61 = vsub.f32 %v3211_v6, %v3215_v47 }
 0xee2   : > { %v3219_v51 = vmul.f32 %v8874_v56, %v3217_v61  ;;  %v3220_v5 = vmul.f32 %v3216_v49, %v3216_v49 }
 0xee4   : > { %v3221_v24 = vmul.f32 %v3219_v51, %v3219_v51 }
 0xee6   : > { %v3222_v55 = vadd.f32 %v3221_v24, %v3220_v5 }
 0xee8   : > { %3223 = vadd.xlane.f32.xlu1 %v3222_v55 }
 0xf75   : > { %v3224_v48 = vpop.xlane.xlu1 %3223 }
 0xf76   : > { %v3225_v53 = vmul.f32 0.0052083335, %v3224_v48 }
 0xf78   : > { %v3226_v30 = vadd.f32 1e-05, %v3225_v53 }
 0xf7a   : > { %6165 = vrsqrt.f32 %v3226_v30 }
 0xf84   : > { %v6166_v27 = vpop.eup %6165 }
 0xf85   : > { %v3228_v39 = vmul.f32 %v6166_v27, %v3216_v49  ;;  %v3229_v37 = vmul.f32 %v6166_v27, %v3219_v51 }
 0xf87   : > { %v3231_v14 = vmul.f32 %v3229_v37, %v8875_v2  ;;  %v3230_v19 = vmul.f32 %v3228_v39, %v8876_v18 }
 0xf89   : > { %v3233_v29 = vadd.f32 %v3231_v14, %v8877_v7  ;;  %v3232_v12 = vadd.f32 %v3230_v19, %v8878_v54 }
 0xf8b   : > { %v3237_v57 = vmul.f32 0.70710677, %v3233_v29  ;;  %v3236_v13 = vmul.f32 0.70710677, %v3232_v12 }
 0xf8d   : > { %v3243_v32 = vand.u32 2147483647, %v3237_v57  ;;  %v3242_v15 = vand.u32 2147483647, %v3236_v13  ;;  %vm3239_vm8 = vcmp.ge.f32.partialorder %v3237_v57, 0.0  ;;  %vm3238_vm9 = vcmp.ge.f32.partialorder %v3236_v13, 0.0 }
 0xf8e   : > { %v8374_v13 = vld [vmem:[%s7596_s6 + $0x50] ss:$8 sps:$4 sm:$0xff]  }
 0xf8f   : > { %v3245_v26 = vmul.f32 0.3275911, %v3243_v32  ;;  %v3244_v43 = vmul.f32 0.3275911, %v3242_v15  ;;  %v3271_v35 = vsub.f32 0.0, %v3243_v32  ;;  %v3270_v60 = vsub.f32 0.0, %v3242_v15 }
 0xf91   : > { %v3247_v20 = vadd.f32 1.0, %v3245_v26  ;;  %v3246_v33 = vadd.f32 1.0, %v3244_v43  ;;  %v3273_v31 = vmul.f32 %v3271_v35, %v3243_v32  ;;  %v3272_v11 = vmul.f32 %v3270_v60, %v3242_v15 }
 0xf92   : > { %v3241_v26 = vsel %vm3239_vm8, 1.0, %v8707_v45  ;;  %v3235_v60 = vmul.f32 0.5, %v3233_v29 }
 0xf93   : > { %6167 = vrcp.f32 %v3247_v20  ;;  %v3276_v3 = vmul.f32 1.442695, %v3273_v31  ;;  %v3274_v61 = vmul.f32 1.442695, %v3272_v11 }
 0xf94   : > { %6169 = vrcp.f32 %v3246_v33  ;;  %v3240_v33 = vsel %vm3238_vm9, 1.0, %v8707_v45 }
 0xf95   : > { %6171 = vpow2.f32 %v3276_v3  ;;  %v8378_v3 = vld [vmem:[%s7596_s6 + $0x64] ss:$8 sps:$4 sm:$0xff]  }
 0xf96   : > { %6173 = vpow2.f32 %v3274_v61  ;;  %v8390_v61 = vld [vmem:[%s7596_s6 + $0x70] ss:$8 sps:$4 sm:$0xff]  }
 0xf9d   : > { %v6168_v22 = vpop.eup %6167 }
 0xf9e   : > { %v6170_v59 = vpop.eup %6169  ;;  %v3253_v52 = vmul.f32 1.0614054, %v6168_v22 }
 0xf9f   : > { %v3252_v6 = vmul.f32 1.0614054, %v6170_v59  ;;  %v6172_v18 = vpop.eup %6171 }
 0xfa0   : > { %v3255_v41 = vadd.f32 -1.4531521, %v3253_v52  ;;  %v6174_v7 = vpop.eup %6173  ;;  %v3234_v52 = vmul.f32 0.5, %v3232_v12  ;;  %v8879_v12 = vld [vmem:[#allocation94_spill] sm:$0xff] }
 0xfa1   : > { %v3254_v47 = vadd.f32 -1.4531521, %v3252_v6 }
 0xfa2   : > { %v3257_v49 = vmul.f32 %v6168_v22, %v3255_v41 }
 0xfa3   : > { %v3256_v51 = vmul.f32 %v6170_v59, %v3254_v47  ;;  %v8382_v47 = vld [vmem:[%s7596_s6 + $0x60] ss:$8 sps:$4 sm:$0xff]  }
 0xfa4   : > { %v3259_v5 = vadd.f32 1.4214138, %v3257_v49  ;;  %v8386_v49 = vld [vmem:[%s7596_s6 + $0x74] ss:$8 sps:$4 sm:$0xff]  }
 0xfa5   : > { %v3258_v24 = vadd.f32 1.4214138, %v3256_v51  ;;  %v5349_v51 = vld [vmem:[%s1640_s26] ss:$0 sm:$0xff]  ;;  %s8882_s26 = scalar_lea.vmem [#allocation19], %s8866_s17 }
 0xfa6   : > { %v3261_v55 = vmul.f32 %v6168_v22, %v3259_v5 }
 0xfa7   : > { %v3260_v48 = vmul.f32 %v6170_v59, %v3258_v24 }
 0xfa8   : > { %v3263_v53 = vadd.f32 -0.28449672, %v3261_v55 }
 0xfa9   : > { %v3262_v30 = vadd.f32 -0.28449672, %v3260_v48 }
 0xfaa   : > { %v3265_v27 = vmul.f32 %v6168_v22, %v3263_v53 }
 0xfab   : > { %v3264_v39 = vmul.f32 %v6170_v59, %v3262_v30 }
 0xfac   : > { %v3267_v37 = vadd.f32 0.2548296, %v3265_v27  ;;  %v3524_v27 = vadd.f32 %v5349_v51, %v8271_v0 }
 0xfad   : > { %v3266_v2 = vadd.f32 0.2548296, %v3264_v39 }
 0xfae   : > { %v3269_v14 = vmul.f32 %v6168_v22, %v3267_v37  ;;  %v8404_v39 = vpack.c.bf16 %v3524_v27, %v3524_v27 }
 0xfaf   : > { %v3268_v19 = vmul.f32 %v6170_v59, %v3266_v2 }
 0xfb0   : > { %v3279_v54 = vmul.f32 %v6172_v18, %v3269_v14 }
 0xfb1   : > { %v3278_v32 = vmul.f32 %v6174_v7, %v3268_v19 }
 0xfb2   : > { %v3281_v15 = vsub.f32 1.0, %v3279_v54 }
 0xfb3   : > { %v3280_v43 = vsub.f32 1.0, %v3278_v32 }
 0xfb4   : > { %v3283_v20 = vmul.f32 %v3281_v15, %v3241_v26 }
 0xfb5   : > { %v3282_v35 = vmul.f32 %v3280_v43, %v3240_v33 }
 0xfb6   : > { %v3285_v31 = vadd.f32 1.0, %v3283_v20 }
 0xfb7   : > { %v3284_v11 = vadd.f32 1.0, %v3282_v35 }
 0xfb8   : > { %v3287_v22 = vmul.f32 %v3285_v31, %v3235_v60 }
 0xfb9   : > { %v3286_v6 = vmul.f32 %v3284_v11, %v3234_v52 }
 0xfba   : > { %v3289_v59 = vpack.c.bf16 %v3287_v22, %v3287_v22 }
 0xfbb   : > { %v3288_v41 = vpack.c.bf16 %v3286_v6, %v3286_v6 }
 0xfbc   : > { %3322 = vmatprep.mubr.bf16.mxu0 %v3289_v59 }
 0xfbd   : > { %3323 = vmatmul.mubr.bf16.vlgmr.msra.gmra.mrb[24].mxu0 %v3288_v41 }
 0xfbe   : > { %5710 = vmatpush3.bf16.msra.mxu0 %v8153_v21  ;;  %5725 = vmatprep.mubr.msk.bf16.mxu0 %vm6823_vm2, %v8850_v23 }
 0xfbf   : > { %5711 = vmatprep.subr.bf16.mxu0 %v8850_v23 }
 0xfc2   : > { %5712 = vmatpush3.bf16.msra.mxu0 %v8159_v34 }
 0xfc3   : > { %5713 = vmatprep.subr.bf16.mxu0 %v8850_v23 }
 0xfc6   : > { %5714 = vmatpush3.bf16.msra.mxu0 %v8166_v36 }
 0xfc7   : > { %5715 = vmatprep.subr.bf16.mxu0 %v8850_v23 }
 0xfca   : > { %5716 = vmatpush3.bf16.msra.mxu0 %v8171_v38 }
 0xfcb   : > { %5717 = vmatprep.subr.bf16.mxu0 %v8850_v23 }
 0xfce   : > { %5718 = vmatpush3.bf16.msra.mxu0 %v8176_v40 }
 0xfcf   : > { %5719 = vmatprep.subr.bf16.mxu0 %v8850_v23 }
 0xfd2   : > { %5720 = vmatpush3.bf16.msra.mxu0 %v8181_v42 }
 0xfd3   : > { %5721 = vmatprep.subr.bf16.mxu0 %v8850_v23 }
 0xfd6   : > { %5722 = vmatpush3.bf16.msra.mxu0 %v8190_v46  ;;  %v8332_v46 = vld [vmem:[%s7596_s6] ss:$8 sps:$4 sm:$0xff]  }
 0xfd7   : > { %5723 = vmatprep.subr.bf16.mxu0 %v8850_v23 }
 0xfda   : > { %5724 = vmatpush3.bf16.msra.mxu0 %v8197_v50  ;;  %v8336_v50 = vld [vmem:[%s7596_s6 + $0x14] ss:$8 sps:$4 sm:$0xff]  }
 0xfdb   : > { %5749 = vmatprep.subr.bf16.mxu0 %v8850_v23 }
0x1090   : > { %v5507_v21 = vpop.f32.mrb[24].mxu0 }
0x1091   : > { %v5508_v34 = vpop.f32.mrb[25].mxu0 }
0x1092   : > { %v5509_v36 = vadd.f32 %v5508_v34, %v5507_v21  ;;  %v5510_v38 = vpop.f32.mrb[26].mxu0 }
0x1093   : > { %v5511_v29 = vpop.f32.mrb[27].mxu0 }
0x1094   : > { %v3325_v40 = vadd.f32 %v5509_v36, %v8186_v44  ;;  %v8328_v44 = vld [vmem:[%s7596_s6 + $0x4] ss:$8 sps:$4 sm:$0xff]  }
0x1096   : > { %v8304_v57 = vadd.f32 %v3325_v40, %v8879_v12 }
0x1098   : > { %8880 = vst [vmem:[#allocation95_spill] sm:$0xff] %v8304_v57  ;;  %v8308_v42 = vpack.c.bf16 %v8304_v57, %v8304_v57 }
0x109a   : > { %5726 = vmatmul.mubr.bf16.vlgmr.msra.gmra.mrb[28].mxu0 %v8308_v42 }
0x109b   : > { %5750 = vmatpush3.bf16.msra.mxu0 %v8205_v8  ;;  %5765 = vmatprep.mubr.msk.bf16.mxu0 %vm6823_vm2, %v8850_v23  ;;  %v8341_v8 = vld [vmem:[%s7596_s6 + $0x10] ss:$8 sps:$4 sm:$0xff]  }
0x109c   : > { %5751 = vmatprep.subr.bf16.mxu0 %v8850_v23 }
0x109f   : > { %5752 = vmatpush3.bf16.msra.mxu0 %v8215_v1  ;;  %v8346_v1 = vld [vmem:[%s7596_s6 + $0x24] ss:$8 sps:$4 sm:$0xff]  }
0x10a0   : > { %5753 = vmatprep.subr.bf16.mxu0 %v8850_v23 }
0x10a3   : > { %5754 = vmatpush3.bf16.msra.mxu0 %v8222_v16  ;;  %v8350_v16 = vld [vmem:[%s7596_s6 + $0x20] ss:$8 sps:$4 sm:$0xff]  }
0x10a4   : > { %5755 = vmatprep.subr.bf16.mxu0 %v8850_v23 }
0x10a7   : > { %5756 = vmatpush3.bf16.msra.mxu0 %v8227_v62  ;;  %v8354_v62 = vld [vmem:[%s7596_s6 + $0x34] ss:$8 sps:$4 sm:$0xff]  }
0x10a8   : > { %5757 = vmatprep.subr.bf16.mxu0 %v8850_v23 }
0x10ab   : > { %5758 = vmatpush3.bf16.msra.mxu0 %v8232_v63  ;;  %v8358_v63 = vld [vmem:[%s7596_s6 + $0x30] ss:$8 sps:$4 sm:$0xff]  }
0x10ac   : > { %5759 = vmatprep.subr.bf16.mxu0 %v8850_v23 }
0x10af   : > { %5760 = vmatpush3.bf16.msra.mxu0 %v8237_v17  ;;  %v8362_v17 = vld [vmem:[%s7596_s6 + $0x44] ss:$8 sps:$4 sm:$0xff]  }
0x10b0   : > { %5761 = vmatprep.subr.bf16.mxu0 %v8850_v23 }
0x10b3   : > { %5762 = vmatpush3.bf16.msra.mxu0 %v8242_v28  ;;  %v8366_v28 = vld [vmem:[%s7596_s6 + $0x40] ss:$8 sps:$4 sm:$0xff]  }
0x10b4   : > { %5763 = vmatprep.subr.bf16.mxu0 %v8850_v23 }
0x10b7   : > { %5764 = vmatpush3.bf16.msra.mxu0 %v8247_v9  ;;  %v8370_v9 = vld [vmem:[%s7596_s6 + $0x54] ss:$8 sps:$4 sm:$0xff]   ;;  %s8883_s6 = sld [smem:[#allocation87_spill]] }
0x10b8   : > { %4008 = vmatprep.subr.bf16.mxu0 %v8328_v44 }
0x10ba   : > { %5766 = vmatmul.mubr.bf16.vlgmr.msra.gmra.mrb[32].mxu0 %v8308_v42 }
0x10bb   : > { %4009 = vmatpush1.bf16.msra.mxu0 %v8332_v46  ;;  %4040 = vmatprep.mubr.bf16.mxu0 %v8856_v25 }
0x10bc   : > { %4010 = vmatprep.subr.bf16.mxu0 %v8336_v50 }
0x10bd   : > { %v6109_v41 = vld [vmem:[%s8883_s6 + $0x4] ss:$8 sps:$4 sm:$0xff]   ;;  %v6107_v21 = vld [vmem:[%s8883_s6] ss:$8 sps:$4 sm:$0xff]   ;;  %v6112_v34 = vld [vmem:[%s8883_s6 + $0x14] ss:$8 sps:$4 sm:$0xff]  }
0x10be   : > { %v6110_v36 = vld [vmem:[%s8883_s6 + $0x10] ss:$8 sps:$4 sm:$0xff]   ;;  %v6115_v38 = vld [vmem:[%s8883_s6 + $0x24] ss:$8 sps:$4 sm:$0xff]   ;;  %v6113_v29 = vld [vmem:[%s8883_s6 + $0x20] ss:$8 sps:$4 sm:$0xff]  }
0x10bf   : > { %4011 = vmatpush1.bf16.msra.mxu0 %v8341_v8  ;;  %v6118_v40 = vld [vmem:[%s8883_s6 + $0x34] ss:$8 sps:$4 sm:$0xff]   ;;  %v6116_v12 = vld [vmem:[%s8883_s6 + $0x30] ss:$8 sps:$4 sm:$0xff]  }
0x10c0   : > { %4012 = vmatprep.subr.bf16.mxu0 %v8346_v1  ;;  %v6130_v27 = vld [vmem:[%s8883_s6 + $0x74] ss:$8 sps:$4 sm:$0xff]  }
0x10c3   : > { %4013 = vmatpush1.bf16.msra.mxu0 %v8350_v16 }
0x10c4   : > { %4014 = vmatprep.subr.bf16.mxu0 %v8354_v62 }
0x10c7   : > { %4015 = vmatpush1.bf16.msra.mxu0 %v8358_v63 }
0x10c8   : > { %4016 = vmatprep.subr.bf16.mxu0 %v8362_v17 }
0x10cb   : > { %4017 = vmatpush1.bf16.msra.mxu0 %v8366_v28 }
0x10cc   : > { %4018 = vmatprep.subr.bf16.mxu0 %v8370_v9 }
0x10cf   : > { %4019 = vmatpush1.bf16.msra.mxu0 %v8374_v13 }
0x10d0   : > { %4020 = vmatprep.subr.bf16.mxu0 %v8378_v3 }
0x10d3   : > { %4021 = vmatpush1.bf16.msra.mxu0 %v8382_v47 }
0x10d4   : > { %4022 = vmatprep.subr.bf16.mxu0 %v8386_v49 }
0x10d7   : > { %4023 = vmatpush1.bf16.msra.mxu0 %v8390_v61 }
0x10d8   : > { %4405 = vmatprep.subr.bf16.mxu0 %v6109_v41 }
0x10da   : > { %4041 = vmatmul.mubr.bf16.vlgmr.msra.gmra.mrb[36].mxu0 %v8209_v10  ;;  %v8411_v10 = vld [vmem:[%s8882_s26] ss:$0 sm:$0xff] }
0x10db   : > { %4437 = vmatprep.mubr.bf16.mxu0 %v8856_v25  ;;  %4406 = vmatpush1.bf16.msra.mxu0 %v6107_v21 }
0x10dc   : > { %4407 = vmatprep.subr.bf16.mxu0 %v6112_v34 }
0x10df   : > { %4408 = vmatpush1.bf16.msra.mxu0 %v6110_v36 }
0x10e0   : > { %4409 = vmatprep.subr.bf16.mxu0 %v6115_v38 }
0x10e3   : > { %4410 = vmatpush1.bf16.msra.mxu0 %v6113_v29 }
0x10e4   : > { %4411 = vmatprep.subr.bf16.mxu0 %v6118_v40 }
0x10e7   : > { %4412 = vmatpush1.bf16.msra.mxu0 %v6116_v12 }
0x116d   : > { %v3564_v5 = vpop.f32.mrb[28].mxu0 }
0x116e   : > { %v3565_v24 = vadd.f32 %v5349_v51, %v3564_v5  ;;  %v5727_v55 = vpop.f32.mrb[29].mxu0  ;;  %v6121_v51 = vld [vmem:[%s8883_s6 + $0x44] ss:$8 sps:$4 sm:$0xff]   ;;  %v6119_v5 = vld [vmem:[%s8883_s6 + $0x40] ss:$8 sps:$4 sm:$0xff]  }
0x116f   : > { %v3567_v48 = vpop.f32.mrb[30].mxu0  ;;  %4413 = vmatprep.subr.bf16.mxu0 %v6121_v51  ;;  %v6122_v55 = vld [vmem:[%s8883_s6 + $0x50] ss:$8 sps:$4 sm:$0xff]  }
0x1170   : > { %v8399_v53 = vpack.c.bf16 %v3565_v24, %v3565_v24  ;;  %v5728_v30 = vpop.f32.mrb[31].mxu0  ;;  %v6124_v24 = vld [vmem:[%s8883_s6 + $0x54] ss:$8 sps:$4 sm:$0xff]   ;;  %4414 = vmatpush1.bf16.msra.mxu0 %v6119_v5  ;;  %v6127_v48 = vld [vmem:[%s8883_s6 + $0x64] ss:$8 sps:$4 sm:$0xff]  }
0x1171   : > { %4415 = vmatprep.subr.bf16.mxu0 %v6124_v24  ;;  %v6125_v30 = vld [vmem:[%s8883_s6 + $0x60] ss:$8 sps:$4 sm:$0xff]  }
0x1172   : > { %5770 = vmatpush3.bf16.xpose.msra.mxu1 %v8399_v53 }
0x1173   : > { %5775 = vmatprep.subr.bf16.mxu1 %v8850_v23 }
0x1174   : > { %4416 = vmatpush1.bf16.msra.mxu0 %v6122_v55 }
0x1175   : > { %4417 = vmatprep.subr.bf16.mxu0 %v6127_v48 }
0x1178   : > { %4418 = vmatpush1.bf16.msra.mxu0 %v6125_v30 }
0x1179   : > { %5772 = vmatmul.mubr.bf16.vlgmr.msra.gmra.mrb[44].mxu1 %v8404_v39  ;;  %4419 = vmatprep.subr.bf16.mxu0 %v6130_v27 }
0x117a   : > { %5777 = vmatprep.mubr.msk.bf16.mxu1 %vm6823_vm2, %v8850_v23 }
0x118d   : > { %v3700_v37 = vpop.f32.mrb[32].mxu0 }
0x118e   : > { %v3701_v2 = vadd.f32 %v8411_v10, %v3700_v37  ;;  %v5767_v14 = vpop.f32.mrb[33].mxu0  ;;  %v6128_v37 = vld [vmem:[%s8883_s6 + $0x70] ss:$8 sps:$4 sm:$0xff]  }
0x118f   : > { %v3703_v18 = vpop.f32.mrb[34].mxu0  ;;  %4420 = vmatpush1.bf16.msra.mxu0 %v6128_v37 }
0x1190   : > { %v3706_v19 = vpack.c.bf16 %v3701_v2, %v3701_v2  ;;  %v5768_v7 = vpop.f32.mrb[35].mxu0 }
0x1192   : > { %v3764_v0 = vsel %vm2353_vm3, %v3706_v19, 0 }
0x1193   : > { %5776 = vmatpush3.bf16.msra.mxu1 %v3764_v0 }
0x1194   : > { %3887 = vmatprep.subr.bf16.mxu1 %v6109_v41 }
0x11ad   : > { %v8415_v54 = vpop.f32.mrb[36].mxu0 }
0x11ae   : > { %v8417_v32 = vpop.f32.mrb[37].mxu0 }
0x11af   : > { %v4046_v15 = vpop.f32.mrb[38].mxu0 }
0x11b0   : > { %v4047_v26 = vpop.f32.mrb[39].mxu0 }
0x124c   : > { %v3741_v43 = vpop.f32.mrb[44].mxu1 }
0x124d   : > { %v3747_v20 = vmul.f32 0.10206208, %v3741_v43  ;;  %v5773_v33 = vpop.f32.mrb[45].mxu1 }
0x124e   : > { %v3744_v35 = vpop.f32.mrb[46].mxu1  ;;  %v8884_v33 = vld [vmem:[#allocation89_spill] sm:$0xff] }
0x124f   : > { %v5774_v60 = vpop.f32.mrb[47].mxu1  ;;  %v3748_v31 = vsel %vm2336_vm4, %v3747_v20, -inf }
0x1250   : > { %3749 = vmax.xlane.f32.xlu0 %v3748_v31  ;;  %v8886_v31 = vld [vmem:[#allocation90_spill] sm:$0xff] }
0x12dd   : > { %v3750_v52 = vpop.xlane.xlu0 %3749 }
0x12de   : > { %v3751_v11 = vsub.f32 %v3747_v20, %v3750_v52  ;;  %v3363_v20 = vld [vmem:[%s7599_s29] sm:$0x3]  ;;  %s8892_s29 = scalar_lea.vmem [#allocation22], %s8845_s16 }
0x12df   : > { %v8441_v35 = vrot.slane %v3363_v20, %v8884_v33  ;;  %v8444_v52 = vrot.slane %v3363_v20, %v8886_v31  ;;  %v8508_v20 = vld [vmem:[%s8888_s21 + $0x38] sm:$0xff]  }
0x12e0   : > { %v3752_v22 = vmul.f32 1.442695, %v3751_v11  ;;  %8891 = vst [vmem:[#allocation99_spill] sm:$0xff] %v8508_v20 }
0x12e1   : > { %8885 = vst [vmem:[#allocation96_spill] sm:$0xff] %v8441_v35  ;;  %8887 = vst [vmem:[#allocation97_spill] sm:$0xff] %v8444_v52 }
0x12e2   : > { %6175 = vpow2.f32 %v3752_v22 }
0x12ec   : > { %v6176_v6 = vpop.eup %6175 }
0x12ed   : > { %v3754_v59 = vsel %vm2336_vm4, %v6176_v6, 0.0 }
0x12ee   : > { %3755 = vadd.xlane.f32.xlu1 %v3754_v59 }
0x137b   : > { %v3756_v2 = vpop.xlane.xlu1 %3755 }
0x137c   : > { %6177 = vrcp.f32 %v3756_v2  ;;  %v8472_v2 = vld [vmem:[%s8888_s21 + $0x58] sm:$0xff]  }
0x1386   : > { %v6178_v14 = vpop.eup %6177 }
0x1387   : > { %v3758_v18 = vmul.f32 %v6178_v14, %v6176_v6  ;;  %v8476_v14 = vld [vmem:[%s8888_s21 + $0x18] sm:$0xff]  }
0x1389   : > { %v3759_v19 = vpack.c.bf16 %v3758_v18, %v3758_v18  ;;  %v8480_v18 = vld [vmem:[%s8888_s21 + $0x60] sm:$0xff]  }
0x138b   : > { %5778 = vmatmul.mubr.msk.bf16.vlgmr.msra.gmra.mrb[48].mxu1 %vm2336_vm4, %v3759_v19  ;;  %v8484_v19 = vld [vmem:[%s8888_s21 + $0x20] sm:$0xff]  }
0x138c   : > { %3888 = vmatpush1.bf16.msra.mxu1 %v6107_v21  ;;  %3919 = vmatprep.mubr.bf16.mxu1 %v8856_v25 }
0x138d   : > { %3889 = vmatprep.subr.bf16.mxu1 %v6112_v34 }
0x1390   : > { %3890 = vmatpush1.bf16.msra.mxu1 %v6110_v36 }
0x1391   : > { %3891 = vmatprep.subr.bf16.mxu1 %v6115_v38 }
0x1394   : > { %3892 = vmatpush1.bf16.msra.mxu1 %v6113_v29 }
0x1395   : > { %3893 = vmatprep.subr.bf16.mxu1 %v6118_v40 }
0x1398   : > { %3894 = vmatpush1.bf16.msra.mxu1 %v6116_v12 }
0x1399   : > { %3895 = vmatprep.subr.bf16.mxu1 %v6121_v51 }
0x139c   : > { %3896 = vmatpush1.bf16.msra.mxu1 %v6119_v5 }
0x139d   : > { %3897 = vmatprep.subr.bf16.mxu1 %v6124_v24  ;;  %v6131_v24 = vld [vmem:[%s8888_s21 + $0x40] sm:$0xff]  }
0x139e   : > { %5579 = vmatprep.subr.bf16.mxu0 %v6131_v24 }
0x13a0   : > { %3898 = vmatpush1.bf16.msra.mxu1 %v6122_v55  ;;  %v8453_v55 = vld [vmem:[%s8888_s21] sm:$0xff]  }
0x13a1   : > { %3899 = vmatprep.subr.bf16.mxu1 %v6127_v48  ;;  %v8456_v48 = vld [vmem:[%s8888_s21 + $0x48] sm:$0xff]  }
0x13a4   : > { %3900 = vmatpush1.bf16.msra.mxu1 %v6125_v30  ;;  %v8460_v30 = vld [vmem:[%s8888_s21 + $0x8] sm:$0xff]  }
0x13a5   : > { %3901 = vmatprep.subr.bf16.mxu1 %v6130_v27  ;;  %v8464_v27 = vld [vmem:[%s8888_s21 + $0x50] sm:$0xff]  }
0x13a8   : > { %3902 = vmatpush1.bf16.msra.mxu1 %v6128_v37  ;;  %v8468_v37 = vld [vmem:[%s8888_s21 + $0x10] sm:$0xff]  }
0x13a9   : > { %5553 = vmatprep.subr.bf16.mxu1 %v6131_v24 }
0x145e   : > { %v3800_v7 = vpop.f32.mrb[48].mxu1 }
0x145f   : > { %v3806_v0 = vpack.c.bf16 %v3800_v7, %v3800_v7  ;;  %v5779_v15 = vpop.f32.mrb[49].mxu1  ;;  %v8488_v7 = vld [vmem:[%s8888_s21 + $0x68] sm:$0xff]  }
0x1460   : > { %v3803_v26 = vpop.f32.mrb[50].mxu1  ;;  %v8496_v15 = vld [vmem:[%s8888_s21 + $0x70] sm:$0xff]  }
0x1461   : > { %v5780_v43 = vpop.f32.mrb[51].mxu1  ;;  %3920 = vmatmul.mubr.bf16.vlgmr.msra.gmra.mrb[52].mxu1 %v3806_v0  ;;  %v8492_v0 = vld [vmem:[%s8888_s21 + $0x28] sm:$0xff]   ;;  %v8500_v26 = vld [vmem:[%s8888_s21 + $0x30] sm:$0xff]  }
0x1462   : > { %5554 = vmatpush3.bf16.msra.mxu1 %v8453_v55  ;;  %8889 = vst [vmem:[#allocation91_spill] sm:$0xff] %v8500_v26  ;;  %v8504_v43 = vld [vmem:[%s8888_s21 + $0x78] sm:$0xff]  }
0x1463   : > { %5555 = vmatprep.subr.bf16.mxu1 %v8456_v48  ;;  %8890 = vst [vmem:[#allocation92_spill] sm:$0xff] %v8504_v43 }
0x1466   : > { %5556 = vmatpush3.bf16.msra.mxu1 %v8460_v30 }
0x1467   : > { %5557 = vmatprep.subr.bf16.mxu1 %v8464_v27 }
0x146a   : > { %5558 = vmatpush3.bf16.msra.mxu1 %v8468_v37 }
0x146b   : > { %5559 = vmatprep.subr.bf16.mxu1 %v8472_v2 }
0x146e   : > { %5560 = vmatpush3.bf16.msra.mxu1 %v8476_v14 }
0x146f   : > { %5561 = vmatprep.subr.bf16.mxu1 %v8480_v18 }
0x1472   : > { %5562 = vmatpush3.bf16.msra.mxu1 %v8484_v19 }
0x1473   : > { %5563 = vmatprep.subr.bf16.mxu1 %v8488_v7 }
0x1476   : > { %5564 = vmatpush3.bf16.msra.mxu1 %v8492_v0 }
0x1477   : > { %5565 = vmatprep.subr.bf16.mxu1 %v8496_v15 }
0x147a   : > { %5566 = vmatpush3.bf16.msra.mxu1 %v8500_v26 }
0x147b   : > { %5567 = vmatprep.subr.bf16.mxu1 %v8504_v43 }
0x147e   : > { %5568 = vmatpush3.bf16.msra.mxu1 %v8508_v20 }
0x147f   : > { %5781 = vmatprep.subr.bf16.mxu1 %v8850_v23 }
0x1534   : > { %v3921_v60 = vpop.f32.mrb[52].mxu1 }
0x1535   : > { %v4043_v11 = vadd.f32 %v8415_v54, %v3921_v60  ;;  %v3923_v22 = vpop.f32.mrb[53].mxu1 }
0x1536   : > { %v4045_v6 = vadd.f32 %v8417_v32, %v3923_v22  ;;  %v3925_v59 = vpop.f32.mrb[54].mxu1 }
0x1537   : > { %v4060_v41 = vadd.f32 %v8441_v35, %v4043_v11  ;;  %v3926_v21 = vpop.f32.mrb[55].mxu1  ;;  %v3365_v59 = vld [vmem:[%s8893_s1] sm:$0x3] }
0x1538   : > { %v4061_v34 = vadd.f32 %v8444_v52, %v4045_v6  ;;  %v3364_v6 = vld [vmem:[%s8892_s29] sm:$0x3] }
0x1539   : > { %v8521_v21 = vrot.slane %v3364_v6, %v8886_v31 }
0x153a   : > { %v4062_v36 = vadd.f32 %v4061_v34, %v4060_v41 }
0x153b   : > { %8895 = vst [vmem:[#allocation101_spill] sm:$0xff] %v8521_v21 }
0x153c   : > { %4063 = vadd.xlane.f32.xlu0 %v4062_v36 }
0x15c9   : > { %v4064_v38 = vpop.xlane.xlu0 %4063 }
0x15ca   : > { %v4065_v29 = vmul.f32 0.0052083335, %v4064_v38 }
0x15cc   : > { %v4066_v40 = vsub.f32 %v4060_v41, %v4065_v29  ;;  %v4067_v54 = vsub.f32 %v4061_v34, %v4065_v29  ;;  %v8518_v41 = vrot.slane %v3364_v6, %v8884_v33  ;;  %v8524_v29 = vrot.slane %v3365_v59, %v8884_v33 }
0x15ce   : > { %v4069_v32 = vmul.f32 %v8874_v56, %v4067_v54  ;;  %v4070_v12 = vmul.f32 %v4066_v40, %v4066_v40  ;;  %8894 = vst [vmem:[#allocation98_spill] sm:$0xff] %v8518_v41  ;;  %8896 = vst [vmem:[#allocation100_spill] sm:$0xff] %v8524_v29  ;;  %v8527_v54 = vrot.slane %v3365_v59, %v8886_v31 }
0x15d0   : > { %v4071_v51 = vmul.f32 %v4069_v32, %v4069_v32  ;;  %8897 = vst [vmem:[#allocation94_spill] sm:$0xff] %v8527_v54 }
0x15d2   : > { %v4072_v5 = vadd.f32 %v4071_v51, %v4070_v12 }
0x15d4   : > { %4073 = vadd.xlane.f32.xlu1 %v4072_v5 }
0x1661   : > { %v4074_v60 = vpop.xlane.xlu1 %4073 }
0x1662   : > { %v4075_v11 = vmul.f32 0.0052083335, %v4074_v60 }
0x1664   : > { %v4076_v22 = vadd.f32 1e-05, %v4075_v11 }
0x1666   : > { %6179 = vrsqrt.f32 %v4076_v22 }
0x1670   : > { %v6180_v34 = vpop.eup %6179 }
0x1671   : > { %v4078_v36 = vmul.f32 %v6180_v34, %v4066_v40  ;;  %v4079_v38 = vmul.f32 %v6180_v34, %v4069_v32 }
0x1673   : > { %v4092_v12 = vmul.f32 %v8521_v21, %v4079_v38  ;;  %v4091_v51 = vmul.f32 %v8518_v41, %v4078_v36 }
0x1675   : > { %v4105_v5 = vadd.f32 %v8527_v54, %v4092_v12  ;;  %v4104_v24 = vadd.f32 %v8524_v29, %v4091_v51 }
0x1677   : > { %v4109_v60 = vmul.f32 0.70710677, %v4105_v5  ;;  %v4108_v11 = vmul.f32 0.70710677, %v4104_v24 }
0x1679   : > { %v4115_v22 = vand.u32 2147483647, %v4109_v60  ;;  %v4114_v6 = vand.u32 2147483647, %v4108_v11  ;;  %vm4111_vm10 = vcmp.ge.f32.partialorder %v4109_v60, 0.0  ;;  %vm4110_vm11 = vcmp.ge.f32.partialorder %v4108_v11, 0.0 }
0x167a   : > { %v3660_v60 = vadd.f32 %v8411_v10, %v8273_v58 }
0x167b   : > { %v4117_v40 = vmul.f32 0.3275911, %v4115_v22  ;;  %v4116_v32 = vmul.f32 0.3275911, %v4114_v6  ;;  %v4143_v31 = vsub.f32 0.0, %v4115_v22  ;;  %v4142_v59 = vsub.f32 0.0, %v4114_v6 }
0x167d   : > { %v4119_v34 = vadd.f32 1.0, %v4117_v40  ;;  %v4118_v33 = vadd.f32 1.0, %v4116_v32  ;;  %v4145_v38 = vmul.f32 %v4143_v31, %v4115_v22  ;;  %v4144_v21 = vmul.f32 %v4142_v59, %v4114_v6 }
0x167f   : > { %6181 = vrcp.f32 %v4119_v34  ;;  %v4148_v51 = vmul.f32 1.442695, %v4145_v38  ;;  %v4146_v56 = vmul.f32 1.442695, %v4144_v21 }
0x1680   : > { %6183 = vrcp.f32 %v4118_v33 }
0x1681   : > { %6185 = vpow2.f32 %v4148_v51 }
0x1682   : > { %6187 = vpow2.f32 %v4146_v56 }
0x1689   : > { %v6182_v45 = vpop.eup %6181 }
0x168a   : > { %v6184_v57 = vpop.eup %6183  ;;  %v4125_v36 = vmul.f32 1.0614054, %v6182_v45 }
0x168b   : > { %v4124_v12 = vmul.f32 1.0614054, %v6184_v57  ;;  %v6186_v59 = vpop.eup %6185 }
0x168c   : > { %v4127_v54 = vadd.f32 -1.4531521, %v4125_v36  ;;  %v6188_v38 = vpop.eup %6187 }
0x168d   : > { %v4126_v29 = vadd.f32 -1.4531521, %v4124_v12 }
0x168e   : > { %v4129_v41 = vmul.f32 %v6182_v45, %v4127_v54 }
0x168f   : > { %v4128_v52 = vmul.f32 %v6184_v57, %v4126_v29  ;;  %v8898_v29 = vmov -1.0  }
0x1690   : > { %v4131_v35 = vadd.f32 1.4214138, %v4129_v41  ;;  %v4112_v12 = vsel %vm4110_vm11, 1.0, %v8898_v29 }
0x1691   : > { %v4130_v40 = vadd.f32 1.4214138, %v4128_v52  ;;  %v4113_v52 = vsel %vm4111_vm10, 1.0, %v8898_v29 }
0x1692   : > { %v4133_v32 = vmul.f32 %v6182_v45, %v4131_v35 }
0x1693   : > { %v4132_v34 = vmul.f32 %v6184_v57, %v4130_v40  ;;  %v4107_v40 = vmul.f32 0.5, %v4105_v5  ;;  %v3665_v5 = vpack.c.bf16 %v3660_v60, %v3660_v60 }
0x1694   : > { %v4135_v33 = vadd.f32 -0.28449672, %v4133_v32 }
0x1695   : > { %v4134_v20 = vadd.f32 -0.28449672, %v4132_v34 }
0x1696   : > { %v4137_v43 = vmul.f32 %v6182_v45, %v4135_v33 }
0x1697   : > { %v4136_v22 = vmul.f32 %v6184_v57, %v4134_v20 }
0x1698   : > { %v4139_v31 = vadd.f32 0.2548296, %v4137_v43  ;;  %v4106_v43 = vmul.f32 0.5, %v4104_v24  ;;  %v4362_v24 = vsel %vm2353_vm3, %v3665_v5, 0  ;;  %v8906_v5 = vld [vmem:[#allocation98_spill] sm:$0xff] }
0x1699   : > { %v4138_v26 = vadd.f32 0.2548296, %v4136_v22 }
0x169a   : > { %v4141_v6 = vmul.f32 %v6182_v45, %v4139_v31 }
0x169b   : > { %v4140_v36 = vmul.f32 %v6184_v57, %v4138_v26 }
0x169c   : > { %v4151_v54 = vmul.f32 %v6186_v59, %v4141_v6 }
0x169d   : > { %v4150_v21 = vmul.f32 %v6188_v38, %v4140_v36 }
0x169e   : > { %v4153_v41 = vsub.f32 1.0, %v4151_v54 }
0x169f   : > { %v4152_v35 = vsub.f32 1.0, %v4150_v21 }
0x16a0   : > { %v4155_v56 = vmul.f32 %v4153_v41, %v4113_v52 }
0x16a1   : > { %v4154_v51 = vmul.f32 %v4152_v35, %v4112_v12 }
0x16a2   : > { %v4157_v20 = vadd.f32 1.0, %v4155_v56 }
0x16a3   : > { %v4156_v32 = vadd.f32 1.0, %v4154_v51 }
0x16a4   : > { %v4159_v45 = vmul.f32 %v4157_v20, %v4107_v40 }
0x16a5   : > { %v4158_v34 = vmul.f32 %v4156_v32, %v4106_v43 }
0x16a6   : > { %v4161_v57 = vpack.c.bf16 %v4159_v45, %v4159_v45 }
0x16a7   : > { %v4160_v26 = vpack.c.bf16 %v4158_v34, %v4158_v34 }
0x16a8   : > { %4296 = vmatprep.mubr.bf16.mxu1 %v4161_v57 }
0x16a9   : > { %4297 = vmatmul.mubr.bf16.vlgmr.msra.gmra.mrb[56].mxu1 %v4160_v26 }
0x16aa   : > { %5782 = vmatpush3.bf16.xpose.msra.mxu1 %v8404_v39  ;;  %5783 = vmatprep.mubr.msk.bf16.mxu1 %vm6823_vm2, %v8850_v23  ;;  %v8549_v39 = vld [vmem:[%s1652_s0] ss:$0 sm:$0xff] }
0x16ab   : > { %5787 = vmatprep.subr.bf16.mxu1 %v8850_v23 }
0x16b1   : > { %5784 = vmatmul.mubr.bf16.vlgmr.msra.gmra.mrb[60].mxu1 %v8399_v53 }
0x16b2   : > { %5788 = vmatpush3.bf16.msra.mxu1 %v4362_v24  ;;  %5789 = vmatprep.mubr.msk.bf16.mxu1 %vm6823_vm2, %v8850_v23 }
0x16b3   : > { %4446 = vmatprep.subr.bf16.mxu1 %v8328_v44 }
0x177c   : > { %v5569_v58 = vpop.f32.mrb[56].mxu1 }
0x177d   : > { %v5570_v10 = vpop.f32.mrb[57].mxu1 }
0x177e   : > { %v5571_v11 = vadd.f32 %v5570_v10, %v5569_v58  ;;  %v5572_v33 = vpop.f32.mrb[58].mxu1  ;;  %v8907_v58 = vld [vmem:[#allocation101_spill] sm:$0xff] }
0x177f   : > { %v5573_v22 = vpop.f32.mrb[59].mxu1 }
0x1780   : > { %v4299_v31 = vadd.f32 %v5571_v11, %v8549_v39  ;;  %v8908_v11 = vld [vmem:[#allocation94_spill] sm:$0xff]  ;;  %v8909_v22 = vld [vmem:[#allocation100_spill] sm:$0xff] }
0x1782   : > { %v4304_v6 = vadd.f32 %v4299_v31, %v8200_v4 }
0x1784   : > { %4608 = vst [vmem:[%s7605_s15] sm:$0xff] %v4304_v6  ;;  %v4339_v53 = vpop.f32.mrb[60].mxu1 }
0x1785   : > { %v4345_v59 = vmul.f32 0.10206208, %v4339_v53  ;;  %v5785_v36 = vpop.f32.mrb[61].mxu1 }
0x1786   : > { %v4342_v38 = vpop.f32.mrb[62].mxu1 }
0x1787   : > { %v5786_v23 = vpop.f32.mrb[63].mxu1  ;;  %v4346_v44 = vsel %vm2336_vm4, %v4345_v59, -inf }
0x1788   : > { %4347 = vmax.xlane.f32.xlu0 %v4346_v44 }
0x1815   : > { %v4348_v54 = vpop.xlane.xlu0 %4347 }
0x1816   : > { %v4349_v21 = vsub.f32 %v4345_v59, %v4348_v54 }
0x1818   : > { %v4350_v41 = vmul.f32 1.442695, %v4349_v21 }
0x181a   : > { %6189 = vpow2.f32 %v4350_v41 }
0x1824   : > { %v6190_v52 = vpop.eup %6189 }
0x1825   : > { %v4352_v35 = vsel %vm2336_vm4, %v6190_v52, 0.0 }
0x1826   : > { %4353 = vadd.xlane.f32.xlu1 %v4352_v35 }
0x18b3   : > { %v4354_v56 = vpop.xlane.xlu1 %4353 }
0x18b4   : > { %6191 = vrcp.f32 %v4354_v56 }
0x18be   : > { %v6192_v4 = vpop.eup %6191 }
0x18bf   : > { %v4356_v12 = vmul.f32 %v6192_v4, %v6190_v52 }
0x18c1   : > { %v4357_v51 = vpack.c.bf16 %v4356_v12, %v4356_v12 }
0x18c3   : > { %5790 = vmatmul.mubr.msk.bf16.vlgmr.msra.gmra.mrb[64].mxu1 %vm2336_vm4, %v4357_v51 }
0x18c4   : > { %4447 = vmatpush1.bf16.msra.mxu1 %v8332_v46  ;;  %4478 = vmatprep.mubr.bf16.mxu1 %v8856_v25 }
0x18c5   : > { %4448 = vmatprep.subr.bf16.mxu1 %v8336_v50 }
0x18c8   : > { %4449 = vmatpush1.bf16.msra.mxu1 %v8341_v8 }
0x18c9   : > { %4450 = vmatprep.subr.bf16.mxu1 %v8346_v1 }
0x18cc   : > { %4451 = vmatpush1.bf16.msra.mxu1 %v8350_v16  ;;  %v8901_v16 = vld [vmem:[#allocation92_spill] sm:$0xff] }
0x18cd   : > { %4452 = vmatprep.subr.bf16.mxu1 %v8354_v62 }
0x18d0   : > { %4453 = vmatpush1.bf16.msra.mxu1 %v8358_v63  ;;  %v8902_v63 = vld [vmem:[#allocation99_spill] sm:$0xff] }
0x18d1   : > { %4454 = vmatprep.subr.bf16.mxu1 %v8362_v17 }
0x18d4   : > { %4455 = vmatpush1.bf16.msra.mxu1 %v8366_v28 }
0x18d5   : > { %4456 = vmatprep.subr.bf16.mxu1 %v8370_v9 }
0x18d8   : > { %4457 = vmatpush1.bf16.msra.mxu1 %v8374_v13 }
0x18d9   : > { %4458 = vmatprep.subr.bf16.mxu1 %v8378_v3 }
0x18dc   : > { %4459 = vmatpush1.bf16.msra.mxu1 %v8382_v47 }
0x18dd   : > { %4460 = vmatprep.subr.bf16.mxu1 %v8386_v49 }
0x18e0   : > { %4461 = vmatpush1.bf16.msra.mxu1 %v8390_v61 }
0x18e3   : > { %4479 = vmatmul.mubr.bf16.vlgmr.msra.gmra.mrb[68].mxu1 %v8308_v42  ;;  %v8900_v42 = vld [vmem:[#allocation91_spill] sm:$0xff] }
0x1996   : > { %v4398_v25 = vpop.f32.mrb[64].mxu1 }
0x1997   : > { %v4404_v46 = vpack.c.bf16 %v4398_v25, %v4398_v25  ;;  %v5791_v50 = vpop.f32.mrb[65].mxu1 }
0x1998   : > { %v4401_v8 = vpop.f32.mrb[66].mxu1 }
0x1999   : > { %v5792_v1 = vpop.f32.mrb[67].mxu1  ;;  %4438 = vmatmul.mubr.bf16.vlgmr.msra.gmra.mrb[40].mxu0 %v4404_v46 }
0x199a   : > { %5580 = vmatpush3.bf16.msra.mxu0 %v8453_v55  ;;  %v8903_v55 = vld [vmem:[#allocation96_spill] sm:$0xff] }
0x199b   : > { %5581 = vmatprep.subr.bf16.mxu0 %v8456_v48 }
0x199e   : > { %5582 = vmatpush3.bf16.msra.mxu0 %v8460_v30 }
0x199f   : > { %5583 = vmatprep.subr.bf16.mxu0 %v8464_v27  ;;  %v8904_v27 = vld [vmem:[#allocation97_spill] sm:$0xff] }
0x19a2   : > { %5584 = vmatpush3.bf16.msra.mxu0 %v8468_v37 }
0x19a3   : > { %5585 = vmatprep.subr.bf16.mxu0 %v8472_v2 }
0x19a6   : > { %5586 = vmatpush3.bf16.msra.mxu0 %v8476_v14 }
0x19a7   : > { %5587 = vmatprep.subr.bf16.mxu0 %v8480_v18 }
0x19aa   : > { %5588 = vmatpush3.bf16.msra.mxu0 %v8484_v19 }
0x19ab   : > { %5589 = vmatprep.subr.bf16.mxu0 %v8488_v7 }
0x19ae   : > { %5590 = vmatpush3.bf16.msra.mxu0 %v8492_v0  ;;  %v8905_v0 = vld [vmem:[#allocation93_spill] sm:$0xff] }
0x19af   : > { %5591 = vmatprep.subr.bf16.mxu0 %v8496_v15 }
0x19b2   : > { %5592 = vmatpush3.bf16.msra.mxu0 %v8900_v42 }
0x19b3   : > { %5593 = vmatprep.subr.bf16.mxu0 %v8901_v16 }
0x19b6   : > { %v4480_v62 = vpop.f32.mrb[68].mxu1  ;;  %5594 = vmatpush3.bf16.msra.mxu0 %v8902_v63 }
0x19b7   : > { %v4482_v17 = vpop.f32.mrb[69].mxu1 }
0x19b8   : > { %v4484_v28 = vpop.f32.mrb[70].mxu1 }
0x19b9   : > { %v4485_v9 = vpop.f32.mrb[71].mxu1 }
0x1a6c   : > { %v4439_v13 = vpop.f32.mrb[40].mxu0 }
0x1a6d   : > { %v4481_v3 = vadd.f32 %v4480_v62, %v4439_v13  ;;  %v4441_v47 = vpop.f32.mrb[41].mxu0 }
0x1a6e   : > { %v4483_v49 = vadd.f32 %v4482_v17, %v4441_v47  ;;  %v4443_v61 = vpop.f32.mrb[42].mxu0 }
0x1a6f   : > { %v4487_v48 = vadd.f32 %v4481_v3, %v8903_v55  ;;  %v4444_v30 = vpop.f32.mrb[43].mxu0 }
0x1a70   : > { %v4488_v37 = vadd.f32 %v4483_v49, %v8904_v27 }
0x1a72   : > { %v4489_v2 = vadd.f32 %v4488_v37, %v4487_v48 }
0x1a74   : > { %4490 = vadd.xlane.f32.xlu0 %v4489_v2 }
0x1b01   : > { %v4491_v14 = vpop.xlane.xlu0 %4490 }
0x1b02   : > { %v4492_v18 = vmul.f32 0.0052083335, %v4491_v14 }
0x1b04   : > { %v4493_v19 = vsub.f32 %v4487_v48, %v4492_v18  ;;  %v4494_v7 = vsub.f32 %v4488_v37, %v4492_v18 }
0x1b06   : > { %v4496_v15 = vmul.f32 %v8905_v0, %v4494_v7  ;;  %v4497_v40 = vmul.f32 %v4493_v19, %v4493_v19 }
0x1b08   : > { %v4498_v20 = vmul.f32 %v4496_v15, %v4496_v15 }
0x1b0a   : > { %v4499_v43 = vadd.f32 %v4498_v20, %v4497_v40 }
0x1b0c   : > { %4500 = vadd.xlane.f32.xlu1 %v4499_v43 }
0x1b99   : > { %v4501_v32 = vpop.xlane.xlu1 %4500 }
0x1b9a   : > { %v4502_v45 = vmul.f32 0.0052083335, %v4501_v32 }
0x1b9c   : > { %v4503_v34 = vadd.f32 1e-05, %v4502_v45 }
0x1b9e   : > { %6193 = vrsqrt.f32 %v4503_v34 }
0x1ba8   : > { %v6194_v57 = vpop.eup %6193 }
0x1ba9   : > { %v4505_v26 = vmul.f32 %v6194_v57, %v4493_v19  ;;  %v4506_v60 = vmul.f32 %v6194_v57, %v4496_v15 }
0x1bab   : > { %v4507_v24 = vmul.f32 %v4505_v26, %v8906_v5  ;;  %v4508_v10 = vmul.f32 %v4506_v60, %v8907_v58 }
0x1bad   : > { %v4510_v33 = vadd.f32 %v4508_v10, %v8908_v11  ;;  %v4509_v31 = vadd.f32 %v4507_v24, %v8909_v22 }
0x1baf   : > { %v4514_v6 = vmul.f32 0.70710677, %v4510_v33  ;;  %v4513_v53 = vmul.f32 0.70710677, %v4509_v31  ;;  %v4512_v15 = vmul.f32 0.5, %v4510_v33  ;;  %v4511_v20 = vmul.f32 0.5, %v4509_v31 }
0x1bb1   : > { %v4520_v59 = vand.u32 2147483647, %v4514_v6  ;;  %v4519_v36 = vand.u32 2147483647, %v4513_v53  ;;  %vm4516_vm12 = vcmp.ge.f32.partialorder %v4514_v6, 0.0  ;;  %vm4515_vm13 = vcmp.ge.f32.partialorder %v4513_v53, 0.0 }
0x1bb2   : > { %v4518_v14 = vsel %vm4516_vm12, 1.0, %v8898_v29  ;;  %v4517_v7 = vsel %vm4515_vm13, 1.0, %v8898_v29  ;;  %v8910_v29 = vld [vmem:[#allocation95_spill] sm:$0xff] }
0x1bb3   : > { %v4522_v38 = vmul.f32 0.3275911, %v4520_v59  ;;  %v4521_v23 = vmul.f32 0.3275911, %v4519_v36  ;;  %v4548_v21 = vsub.f32 0.0, %v4520_v59  ;;  %v4547_v41 = vsub.f32 0.0, %v4519_v36 }
0x1bb5   : > { %v4524_v44 = vadd.f32 1.0, %v4522_v38  ;;  %v4523_v54 = vadd.f32 1.0, %v4521_v23  ;;  %v4550_v35 = vmul.f32 %v4548_v21, %v4520_v59  ;;  %v4549_v12 = vmul.f32 %v4547_v41, %v4519_v36 }
0x1bb7   : > { %6195 = vrcp.f32 %v4524_v44  ;;  %v4553_v46 = vmul.f32 1.442695, %v4550_v35  ;;  %v4551_v1 = vmul.f32 1.442695, %v4549_v12 }
0x1bb8   : > { %6197 = vrcp.f32 %v4523_v54 }
0x1bb9   : > { %6199 = vpow2.f32 %v4553_v46 }
0x1bba   : > { %6201 = vpow2.f32 %v4551_v1 }
0x1bc1   : > { %v6196_v52 = vpop.eup %6195 }
0x1bc2   : > { %v6198_v56 = vpop.eup %6197  ;;  %v4530_v4 = vmul.f32 1.0614054, %v6196_v52 }
0x1bc3   : > { %v4529_v51 = vmul.f32 1.0614054, %v6198_v56  ;;  %v6200_v55 = vpop.eup %6199 }
0x1bc4   : > { %v4532_v25 = vadd.f32 -1.4531521, %v4530_v4  ;;  %v6202_v30 = vpop.eup %6201 }
0x1bc5   : > { %v4531_v50 = vadd.f32 -1.4531521, %v4529_v51 }
0x1bc6   : > { %v4534_v8 = vmul.f32 %v6196_v52, %v4532_v25 }
0x1bc7   : > { %v4533_v42 = vmul.f32 %v6198_v56, %v4531_v50 }
0x1bc8   : > { %v4536_v16 = vadd.f32 1.4214138, %v4534_v8 }
0x1bc9   : > { %v4535_v62 = vadd.f32 1.4214138, %v4533_v42 }
0x1bca   : > { %v4538_v63 = vmul.f32 %v6196_v52, %v4536_v16 }
0x1bcb   : > { %v4537_v17 = vmul.f32 %v6198_v56, %v4535_v62 }
0x1bcc   : > { %v4540_v28 = vadd.f32 -0.28449672, %v4538_v63 }
0x1bcd   : > { %v4539_v9 = vadd.f32 -0.28449672, %v4537_v17 }
0x1bce   : > { %v4542_v13 = vmul.f32 %v6196_v52, %v4540_v28 }
0x1bcf   : > { %v4541_v3 = vmul.f32 %v6198_v56, %v4539_v9 }
0x1bd0   : > { %v4544_v47 = vadd.f32 0.2548296, %v4542_v13 }
0x1bd1   : > { %v4543_v49 = vadd.f32 0.2548296, %v4541_v3 }
0x1bd2   : > { %v4546_v61 = vmul.f32 %v6196_v52, %v4544_v47 }
0x1bd3   : > { %v4545_v48 = vmul.f32 %v6198_v56, %v4543_v49 }
0x1bd4   : > { %v4556_v27 = vmul.f32 %v6200_v55, %v4546_v61 }
0x1bd5   : > { %v4555_v37 = vmul.f32 %v6202_v30, %v4545_v48 }
0x1bd6   : > { %v4558_v2 = vsub.f32 1.0, %v4556_v27 }
0x1bd7   : > { %v4557_v18 = vsub.f32 1.0, %v4555_v37 }
0x1bd8   : > { %v4560_v19 = vmul.f32 %v4558_v2, %v4518_v14 }
0x1bd9   : > { %v4559_v0 = vmul.f32 %v4557_v18, %v4517_v7 }
0x1bda   : > { %v4562_v40 = vadd.f32 1.0, %v4560_v19 }
0x1bdb   : > { %v4561_v43 = vadd.f32 1.0, %v4559_v0 }
0x1bdc   : > { %v4564_v32 = vmul.f32 %v4562_v40, %v4512_v15 }
0x1bdd   : > { %v4563_v45 = vmul.f32 %v4561_v43, %v4511_v20 }
0x1bde   : > { %v4566_v34 = vpack.c.bf16 %v4564_v32, %v4564_v32 }
0x1bdf   : > { %v4565_v57 = vpack.c.bf16 %v4563_v45, %v4563_v45 }
0x1be0   : > { %4599 = vmatprep.mubr.bf16.mxu0 %v4566_v34 }
0x1be1   : > { %4600 = vmatmul.mubr.bf16.vlgmr.msra.gmra.mrb[44].mxu0 %v4565_v57 }
0x1cb4   : > { %v5595_v26 = vpop.f32.mrb[44].mxu0 }
0x1cb5   : > { %v5596_v60 = vpop.f32.mrb[45].mxu0 }
0x1cb6   : > { %v5597_v5 = vadd.f32 %v5596_v60, %v5595_v26  ;;  %v5598_v24 = vpop.f32.mrb[46].mxu0 }
0x1cb7   : > { %v5599_v58 = vpop.f32.mrb[47].mxu0 }
0x1cb8   : > { %v4602_v10 = vadd.f32 %v5597_v5, %v8549_v39 }
0x1cba   : > { %v4607_v11 = vadd.f32 %v4602_v10, %v8910_v29 }
0x1cbc   : > { %4609 = vst [vmem:[%s7609_s20] sm:$0xff] %v4607_v11 }
0x1cbd PF: > { %s8911_s15 = sld [smem:[#allocation72_spill]]  ;;  %s8912_s7 = sld [smem:[#allocation66_spill]] }
0x1cbe   : > { %s8913_s0 = sld [smem:[#allocation67_spill]]  ;;  %s8914_s10 = sld [smem:[#allocation75_spill]] }
0x1cbf   : > { %s8915_s11 = sld [smem:[#allocation70_spill]]  ;;  %s8917_s16 = sld [smem:[#allocation73_spill]] }
0x1cc0   : > { %s8918_s18 = sld [smem:[#allocation74_spill]] }
0x1cc3   : > { %s95_s22 = sadd.s32 1, %s8911_s15   ;;  %s8916_s15 = sld [smem:[#allocation71_spill]] }
0x1cc4   : > { %p92_p9 = scmp.ge.s32.totalorder %s95_s22, 14  }
0x1cc6   :  { %94 = sbr.rel (!%p92_p9) target bundleno = 86 (0x56), region = 423 }
0x1ccd   :  { %4643 = vsyncpa [#allocation3], 1 }
0x1cce   :  { %4645 = vsyncpa [#allocation3 + $0x1], 1 }
0x1ccf   :  { %4646 = vsyncpa [#allocation5], 1 }
0x1cd0   :  { %4648 = vsyncpa [#allocation5 + $0x1], 1 }
0x1cd1   :  { %4649 = vsyncpa [#allocation8], 1 }
0x1cd2   :  { %4651 = vsyncpa [#allocation8 + $0x1], 1 }
0x1cd3   :  { %4652 = vsyncpa [#allocation11], 1 }
0x1cd4   :  { %4654 = vsyncpa [#allocation11 + $0x1], 1 }
0x1cd5   :  { %4655 = vsyncpa [#allocation14], 1 }
0x1cd6   :  { %4657 = vsyncpa [#allocation14 + $0x1], 1 }
0x1cd7   :  { %4658 = vsyncpa [#allocation17], 1 }
0x1cd8   :  { %4660 = vsyncpa [#allocation17 + $0x1], 1 }
0x1cd9   :  { %4661 = vsyncpa [#allocation20], 1 }
0x1cda   :  { %4663 = vsyncpa [#allocation20 + $0x1], 1 }
0x1cdb   :  { %4664 = vsyncpa [#allocation23], 1 }
0x1cdc   :  { %4666 = vsyncpa [#allocation23 + $0x1], 1 }
0x1cdd   :  { %4667 = vsyncpa [#allocation26], 1 }
0x1cde   :  { %4669 = vsyncpa [#allocation26 + $0x1], 1 }

</bundles_post_ra>
